<compile_context>
chip_gen: v5e
topology: v5e:2x2
jax: 0.10.0
libtpu: 0.0.40
codegen_flags: <defaults>
</compile_context>

<pallas_src>
import functools

import jax
import jax.numpy as jnp
from jax.experimental import pallas as pl
from jax.experimental.pallas import tpu as pltpu

EPS = 1e-5  # BatchNorm2d default eps


# ---------------------------------------------------------------------------
# Fused kernel: DC (residual double conv, folded BN+ReLU) + 1x1 channel conv
# ---------------------------------------------------------------------------
def _up_dc_kernel(Lo, W2p, C, head,
                  xpad_ref, mask_ref, w1_ref, s1_ref, t1_ref,
                  w2_ref, s2_ref, t2_ref, wch_ref, bch_ref,
                  out_ref, pbuf):
    # xpad_ref: (1, Pflat, C) bf16   padded concat input, flat spatial x channels
    # mask_ref: (Lo, 1)      f32     1 inside image width, 0 on width-halo cols
    # w1/w2   : (9, C, C)    bf16    per-tap channel-contraction weights
    # s*/t*   : (1, C)       f32     folded BN scale / shift
    # wch     : (C, Cout)    bf16,   bch: (1, Cout) f32
    # out_ref : (1, Lo, Cout) f32    pitched output (width-halo cols are garbage)
    # pbuf    : (Pflat, C)   f32     padded intermediate scratch
    f32 = jnp.float32
    bf16 = jnp.bfloat16
    tail = pbuf.shape[0] - head - Lo

    # Zero only the tiny top/bottom halo rows of the persistent scratch.
    # Interior rows are fully overwritten below; width-halo columns are zeroed
    # through the multiplicative mask, so no full-buffer clear is needed.
    pbuf[0:head, :] = jnp.zeros((head, C), f32)
    pbuf[head + Lo:, :] = jnp.zeros((tail, C), f32)

    # Load the bf16 tile once; widen to f32 so shifted slicing stays on the
    # well-supported 32-bit path, then cast each slice back to bf16 for the MXU.
    xin = xpad_ref[0].astype(f32)                        # (Pflat, C)

    # --- conv1 (3x3, pad=1): 9 channel-contraction matmuls on shifted views ---
    acc = jnp.zeros((Lo, C), f32)
    for ky in range(3):
        for kx in range(3):
            off = ky * W2p + kx
            xs = xin[off:off + Lo, :].astype(bf16)
            acc = acc + jnp.dot(xs, w1_ref[ky * 3 + kx],
                                preferred_element_type=f32)
    h1 = jnp.maximum(acc * s1_ref[...] + t1_ref[...], 0.0)

    # Place into padded scratch; mask zeroes the width-halo garbage columns so
    # conv2 sees proper zero padding.
    pbuf[head:head + Lo, :] = h1 * mask_ref[...]

    # --- conv2 (3x3, pad=1) ---
    acc2 = jnp.zeros((Lo, C), f32)
    for ky in range(3):
        for kx in range(3):
            off = ky * W2p + kx
            xs = pbuf[off:off + Lo, :].astype(bf16)
            acc2 = acc2 + jnp.dot(xs, w2_ref[ky * 3 + kx],
                                  preferred_element_type=f32)
    h2 = jnp.maximum(acc2 * s2_ref[...] + t2_ref[...], 0.0)

    # --- residual + 1x1 channel conv ---
    xres = xin[head:head + Lo, :] + h2
    out = jnp.dot(xres.astype(bf16), wch_ref[...],
                  preferred_element_type=f32) + bch_ref[...]
    out_ref[0] = out.astype(out_ref.dtype)


# ---------------------------------------------------------------------------
# Wrapper: upsample + concat + pad prep (one XLA pass), then one pallas_call
# ---------------------------------------------------------------------------
def up_forward(x1, x2, p):
    f32, bf16 = jnp.float32, jnp.bfloat16
    N, Cin, H, W = x1.shape
    Cout = p["up_w"].shape[1]
    C = Cin                               # concat channels == in_channels
    H2, W2 = 2 * H, 2 * W
    W2p = W2 + 2                          # padded row pitch
    Lo = H2 * W2p                         # pitched spatial rows per image
    Pflat = (H2 + 3) * W2p                # padded (+1 spare row) flat length
    head = W2p + 1                        # flat offset of interior pixel (0, 0)

    # ---- ConvTranspose2d(k=2, s=2): one dense (Cin -> 2x2xCout) contraction;
    #      the 4 sub-pixel outputs interleave into stride-2 layout by reshape.
    up = jnp.einsum("nchw,codx->nhdwxo", x1.astype(f32), p["up_w"].astype(f32))
    up = up.reshape(N, H2, W2, Cout) + p["up_b"][None, None, None, :]

    # ---- concat [x2, up(x1)] channels-last, zero-pad spatially, flatten, bf16
    x2n = jnp.transpose(x2, (0, 2, 3, 1)).astype(f32)
    xcat = jnp.concatenate([x2n, up], axis=-1)           # (N, H2, W2, C)
    xpad = jnp.pad(xcat, ((0, 0), (1, 2), (1, 1), (0, 0)))
    xpad = xpad.reshape(N, Pflat, C).astype(bf16)

    # ---- per-tap conv weights (channel contraction only) + folded BN --------
    def taps(w):                          # (O, I, 3, 3) -> (9, I, O)
        return jnp.stack([w[:, :, ky, kx].T for ky in range(3)
                          for kx in range(3)]).astype(bf16)

    def fold_bn(bias, g, beta, mean, var):
        s = (g / jnp.sqrt(var + EPS)).astype(f32)
        t = (beta + (bias - mean) * s).astype(f32)
        return s.reshape(1, -1), t.reshape(1, -1)

    w1 = taps(p["c1_w"])
    s1, t1 = fold_bn(p["c1_b"], p["bn1_g"], p["bn1_b"], p["bn1_m"], p["bn1_v"])
    w2 = taps(p["c2_w"])
    s2, t2 = fold_bn(p["c2_b"], p["bn2_g"], p["bn2_b"], p["bn2_m"], p["bn2_v"])
    wch = p["ch_w"][:, :, 0, 0].T.astype(bf16)           # (C, Cout)
    bch = p["ch_b"].reshape(1, Cout).astype(f32)

    # mask over pitched rows: 1 inside the image width, 0 on the width halo
    mask = ((jnp.arange(Lo, dtype=jnp.int32) % W2p) < W2)
    mask = mask.astype(f32).reshape(Lo, 1)

    kernel = functools.partial(_up_dc_kernel, Lo, W2p, C, head)
    out_flat = pl.pallas_call(
        kernel,
        out_shape=jax.ShapeDtypeStruct((N, Lo, Cout), f32),
        grid=(N,),
        in_specs=[
            pl.BlockSpec((1, Pflat, C), lambda n: (n, 0, 0)),
            pl.BlockSpec((Lo, 1), lambda n: (0, 0)),
            pl.BlockSpec((9, C, C), lambda n: (0, 0, 0)),
            pl.BlockSpec((1, C), lambda n: (0, 0)),
            pl.BlockSpec((1, C), lambda n: (0, 0)),
            pl.BlockSpec((9, C, C), lambda n: (0, 0, 0)),
            pl.BlockSpec((1, C), lambda n: (0, 0)),
            pl.BlockSpec((1, C), lambda n: (0, 0)),
            pl.BlockSpec((C, Cout), lambda n: (0, 0)),
            pl.BlockSpec((1, Cout), lambda n: (0, 0)),
        ],
        out_specs=pl.BlockSpec((1, Lo, Cout), lambda n: (n, 0, 0)),
        scratch_shapes=[pltpu.VMEM((Pflat, C), jnp.float32)],
        compiler_params=pltpu.CompilerParams(
            dimension_semantics=("parallel",)),
    )(xpad, mask, w1, s1, t1, w2, s2, t2, wch, bch)

    # drop the width-halo garbage columns, convert back to NCHW
    out = out_flat.reshape(N, H2, W2p, Cout)[:, :, :W2, :]
    return jnp.transpose(out, (0, 3, 1, 2))


# ---------------------------------------------------------------------------
# Pure-JAX reference (NCHW, f32), inference-mode BN — used to check the kernel
# ---------------------------------------------------------------------------
def up_forward_ref(x1, x2, p):
    N, Cin, H, W = x1.shape
    Cout = p["up_w"].shape[1]
    H2, W2 = 2 * H, 2 * W

    t = jnp.einsum("nchw,codx->nohdwx", x1, p["up_w"])
    up = t.reshape(N, Cout, H2, W2) + p["up_b"][None, :, None, None]
    x = jnp.concatenate([x2, up], axis=1)

    def conv3(z, w, b):
        zp = jnp.pad(z, ((0, 0), (0, 0), (1, 1), (1, 1)))
        Hh, Ww = z.shape[2], z.shape[3]
        acc = jnp.zeros((z.shape[0], w.shape[0], Hh, Ww), z.dtype) + b[None, :, None, None]
        for ky in range(3):
            for kx in range(3):
                acc = acc + jnp.einsum("nchw,oc->nohw",
                                       zp[:, :, ky:ky + Hh, kx:kx + Ww], w[:, :, ky, kx])
        return acc

    def bn(z, g, b, m, v):
        return (g[None, :, None, None] * (z - m[None, :, None, None])
                / jnp.sqrt(v[None, :, None, None] + EPS) + b[None, :, None, None])

    h = jax.nn.relu(bn(conv3(x, p["c1_w"], p["c1_b"]),
                       p["bn1_g"], p["bn1_b"], p["bn1_m"], p["bn1_v"]))
    h = jax.nn.relu(bn(conv3(h, p["c2_w"], p["c2_b"]),
                       p["bn2_g"], p["bn2_b"], p["bn2_m"], p["bn2_v"]))
    xr = x + h
    return jnp.einsum("nchw,oc->nohw", xr, p["ch_w"][:, :, 0, 0]) + p["ch_b"][None, :, None, None]


if __name__ == "__main__":
    f32 = jnp.float32
    N, Cin, Cout, H, W = 2, 8, 4, 8, 8          # x2 has Cout channels at 2x spatial
    key = jax.random.PRNGKey(0)
    keys = jax.random.split(key, 18)

    def nrm(k, shape, scale=0.1):
        return scale * jax.random.normal(k, shape, f32)

    params = {
        "up_w": nrm(keys[0], (Cin, Cout, 2, 2)),
        "up_b": nrm(keys[1], (Cout,)),
        "c1_w": nrm(keys[2], (Cin, Cin, 3, 3)),
        "c1_b": nrm(keys[3], (Cin,)),
        "bn1_g": 1.0 + 0.1 * jax.random.normal(keys[4], (Cin,), f32),
        "bn1_b": nrm(keys[5], (Cin,)),
        "bn1_m": nrm(keys[6], (Cin,)),
        "bn1_v": 1.0 + 0.5 * jax.random.uniform(keys[7], (Cin,), dtype=f32),
        "c2_w": nrm(keys[8], (Cin, Cin, 3, 3)),
        "c2_b": nrm(keys[9], (Cin,)),
        "bn2_g": 1.0 + 0.1 * jax.random.normal(keys[10], (Cin,), f32),
        "bn2_b": nrm(keys[11], (Cin,)),
        "bn2_m": nrm(keys[12], (Cin,)),
        "bn2_v": 1.0 + 0.5 * jax.random.uniform(keys[13], (Cin,), dtype=f32),
        "ch_w": nrm(keys[14], (Cout, Cin, 1, 1)),
        "ch_b": nrm(keys[15], (Cout,)),
    }
    x1 = jax.random.normal(keys[16], (N, Cin, H, W), f32)
    x2 = jax.random.normal(keys[17], (N, Cout, 2 * H, 2 * W), f32)

    fwd = jax.jit(up_forward)               # weight prep + input prep fold into one jit
    out = jax.block_until_ready(fwd(x1, x2, params))
    assert out.shape == (N, Cout, 2 * H, 2 * W), out.shape

    ref = up_forward_ref(x1, x2, params)
    if not bool(jnp.allclose(out, ref, atol=2e-2, rtol=2e-2)):
        raise AssertionError(f"kernel/reference mismatch, max abs err = "
                             f"{float(jnp.max(jnp.abs(out - ref)))}")
    print("KERNEL_OK")
</pallas_src>

<mosaic_0001>
module attributes {stable_mosaic.version = 11 : i64} {
  func.func @_up_dc_kernel(%arg0: i32, %arg1: memref<1x342x8xbf16, #tpu.memory_space<vmem>>, %arg2: memref<288x1xf32, #tpu.memory_space<vmem>>, %arg3: memref<9x8x8xbf16, #tpu.memory_space<vmem>>, %arg4: memref<1x8xf32, #tpu.memory_space<vmem>>, %arg5: memref<1x8xf32, #tpu.memory_space<vmem>>, %arg6: memref<9x8x8xbf16, #tpu.memory_space<vmem>>, %arg7: memref<1x8xf32, #tpu.memory_space<vmem>>, %arg8: memref<1x8xf32, #tpu.memory_space<vmem>>, %arg9: memref<8x4xbf16, #tpu.memory_space<vmem>>, %arg10: memref<1x4xf32, #tpu.memory_space<vmem>>, %arg11: memref<1x288x4xf32, #tpu.memory_space<vmem>>, %arg12: memref<342x8xf32, #tpu.memory_space<vmem>>) attributes {dimension_semantics = [#tpu.dimension_semantics<parallel>], iteration_bounds = array<i64: 2>, scalar_prefetch = 0 : i64, scratch_operands = 1 : i64, tpu.core_type = #tpu.core_type<tc>, window_params = [{transform_indices = @transform_0, window_bounds = array<i64: 1, 342, 8>}, {pipeline_mode = #tpu.pipeline_mode<synchronous>, transform_indices = @transform_1, window_bounds = array<i64: 288, 1>}, {pipeline_mode = #tpu.pipeline_mode<synchronous>, transform_indices = @transform_2, window_bounds = array<i64: 9, 8, 8>}, {pipeline_mode = #tpu.pipeline_mode<synchronous>, transform_indices = @transform_3, window_bounds = array<i64: 1, 8>}, {pipeline_mode = #tpu.pipeline_mode<synchronous>, transform_indices = @transform_4, window_bounds = array<i64: 1, 8>}, {pipeline_mode = #tpu.pipeline_mode<synchronous>, transform_indices = @transform_5, window_bounds = array<i64: 9, 8, 8>}, {pipeline_mode = #tpu.pipeline_mode<synchronous>, transform_indices = @transform_6, window_bounds = array<i64: 1, 8>}, {pipeline_mode = #tpu.pipeline_mode<synchronous>, transform_indices = @transform_7, window_bounds = array<i64: 1, 8>}, {pipeline_mode = #tpu.pipeline_mode<synchronous>, transform_indices = @transform_8, window_bounds = array<i64: 8, 4>}, {pipeline_mode = #tpu.pipeline_mode<synchronous>, transform_indices = @transform_9, window_bounds = array<i64: 1, 4>}, {transform_indices = @transform_10, window_bounds = array<i64: 1, 288, 4>}]} {
    %cst = arith.constant 0.000000e+00 : f32
    %0 = vector.broadcast %cst : f32 to vector<19x8xf32>
    %c0 = arith.constant 0 : index
    %c0_0 = arith.constant 0 : index
    %1 = vector.load %arg12[%c0, %c0_0] : memref<342x8xf32, #tpu.memory_space<vmem>>, vector<19x8xf32>
    tpu.vector_store %arg12[%c0, %c0_0], %0 {strides = array<i32>} : memref<342x8xf32, #tpu.memory_space<vmem>>, vector<19x8xf32>,
    %cst_1 = arith.constant 0.000000e+00 : f32
    %2 = vector.broadcast %cst_1 : f32 to vector<35x8xf32>
    %c307 = arith.constant 307 : index
    %c0_2 = arith.constant 0 : index
    %3 = vector.load %arg12[%c307, %c0_2] : memref<342x8xf32, #tpu.memory_space<vmem>>, vector<35x8xf32>
    tpu.vector_store %arg12[%c307, %c0_2], %2 {strides = array<i32>} : memref<342x8xf32, #tpu.memory_space<vmem>>, vector<35x8xf32>,
    %c0_3 = arith.constant 0 : index
    %c0_4 = arith.constant 0 : index
    %c0_5 = arith.constant 0 : index
    %4 = vector.load %arg1[%c0_3, %c0_4, %c0_5] : memref<1x342x8xbf16, #tpu.memory_space<vmem>>, vector<1x342x8xbf16>
    %5 = vector.shape_cast %4 : vector<1x342x8xbf16> to vector<342x8xbf16>
    %6 = arith.extf %5 : vector<342x8xbf16> to vector<342x8xf32>
    %cst_6 = arith.constant 0.000000e+00 : f32
    %7 = vector.broadcast %cst_6 : f32 to vector<288x8xf32>
    %8 = vector.extract_strided_slice %6 {offsets = [0, 0], sizes = [288, 8], strides = [1, 1]} : vector<342x8xf32> to vector<288x8xf32>
    %9 = arith.truncf %8 : vector<288x8xf32> to vector<288x8xbf16>
    %c0_7 = arith.constant 0 : index
    %c0_8 = arith.constant 0 : index
    %c0_9 = arith.constant 0 : index
    %10 = vector.load %arg3[%c0_7, %c0_8, %c0_9] : memref<9x8x8xbf16, #tpu.memory_space<vmem>>, vector<1x8x8xbf16>
    %11 = vector.shape_cast %10 : vector<1x8x8xbf16> to vector<8x8xbf16>
    %cst_10 = arith.constant dense<0.000000e+00> : vector<288x8xf32>
    %12 = tpu.matmul %9, %11, %cst_10 {dimension_numbers = #tpu.dot_dimension_numbers<[1], [0], [0], [1], [0, 0, 1, 1], [], []>} : vector<288x8xbf16>, vector<8x8xbf16>, vector<288x8xf32> -> vector<288x8xf32>
    %13 = arith.addf %7, %12 : vector<288x8xf32>
    %14 = vector.extract_strided_slice %6 {offsets = [1, 0], sizes = [288, 8], strides = [1, 1]} : vector<342x8xf32> to vector<288x8xf32>
    %15 = arith.truncf %14 : vector<288x8xf32> to vector<288x8xbf16>
    %c1 = arith.constant 1 : index
    %c0_11 = arith.constant 0 : index
    %c0_12 = arith.constant 0 : index
    %16 = vector.load %arg3[%c1, %c0_11, %c0_12] : memref<9x8x8xbf16, #tpu.memory_space<vmem>>, vector<1x8x8xbf16>
    %17 = vector.shape_cast %16 : vector<1x8x8xbf16> to vector<8x8xbf16>
    %cst_13 = arith.constant dense<0.000000e+00> : vector<288x8xf32>
    %18 = tpu.matmul %15, %17, %cst_13 {dimension_numbers = #tpu.dot_dimension_numbers<[1], [0], [0], [1], [0, 0, 1, 1], [], []>} : vector<288x8xbf16>, vector<8x8xbf16>, vector<288x8xf32> -> vector<288x8xf32>
    %19 = arith.addf %13, %18 : vector<288x8xf32>
    %20 = vector.extract_strided_slice %6 {offsets = [2, 0], sizes = [288, 8], strides = [1, 1]} : vector<342x8xf32> to vector<288x8xf32>
    %21 = arith.truncf %20 : vector<288x8xf32> to vector<288x8xbf16>
    %c2 = arith.constant 2 : index
    %c0_14 = arith.constant 0 : index
    %c0_15 = arith.constant 0 : index
    %22 = vector.load %arg3[%c2, %c0_14, %c0_15] : memref<9x8x8xbf16, #tpu.memory_space<vmem>>, vector<1x8x8xbf16>
    %23 = vector.shape_cast %22 : vector<1x8x8xbf16> to vector<8x8xbf16>
    %cst_16 = arith.constant dense<0.000000e+00> : vector<288x8xf32>
    %24 = tpu.matmul %21, %23, %cst_16 {dimension_numbers = #tpu.dot_dimension_numbers<[1], [0], [0], [1], [0, 0, 1, 1], [], []>} : vector<288x8xbf16>, vector<8x8xbf16>, vector<288x8xf32> -> vector<288x8xf32>
    %25 = arith.addf %19, %24 : vector<288x8xf32>
    %26 = vector.extract_strided_slice %6 {offsets = [18, 0], sizes = [288, 8], strides = [1, 1]} : vector<342x8xf32> to vector<288x8xf32>
    %27 = arith.truncf %26 : vector<288x8xf32> to vector<288x8xbf16>
    %c3 = arith.constant 3 : index
    %c0_17 = arith.constant 0 : index
    %c0_18 = arith.constant 0 : index
    %28 = vector.load %arg3[%c3, %c0_17, %c0_18] : memref<9x8x8xbf16, #tpu.memory_space<vmem>>, vector<1x8x8xbf16>
    %29 = vector.shape_cast %28 : vector<1x8x8xbf16> to vector<8x8xbf16>
    %cst_19 = arith.constant dense<0.000000e+00> : vector<288x8xf32>
    %30 = tpu.matmul %27, %29, %cst_19 {dimension_numbers = #tpu.dot_dimension_numbers<[1], [0], [0], [1], [0, 0, 1, 1], [], []>} : vector<288x8xbf16>, vector<8x8xbf16>, vector<288x8xf32> -> vector<288x8xf32>
    %31 = arith.addf %25, %30 : vector<288x8xf32>
    %32 = vector.extract_strided_slice %6 {offsets = [19, 0], sizes = [288, 8], strides = [1, 1]} : vector<342x8xf32> to vector<288x8xf32>
    %33 = arith.truncf %32 : vector<288x8xf32> to vector<288x8xbf16>
    %c4 = arith.constant 4 : index
    %c0_20 = arith.constant 0 : index
    %c0_21 = arith.constant 0 : index
    %34 = vector.load %arg3[%c4, %c0_20, %c0_21] : memref<9x8x8xbf16, #tpu.memory_space<vmem>>, vector<1x8x8xbf16>
    %35 = vector.shape_cast %34 : vector<1x8x8xbf16> to vector<8x8xbf16>
    %cst_22 = arith.constant dense<0.000000e+00> : vector<288x8xf32>
    %36 = tpu.matmul %33, %35, %cst_22 {dimension_numbers = #tpu.dot_dimension_numbers<[1], [0], [0], [1], [0, 0, 1, 1], [], []>} : vector<288x8xbf16>, vector<8x8xbf16>, vector<288x8xf32> -> vector<288x8xf32>
    %37 = arith.addf %31, %36 : vector<288x8xf32>
    %38 = vector.extract_strided_slice %6 {offsets = [20, 0], sizes = [288, 8], strides = [1, 1]} : vector<342x8xf32> to vector<288x8xf32>
    %39 = arith.truncf %38 : vector<288x8xf32> to vector<288x8xbf16>
    %c5 = arith.constant 5 : index
    %c0_23 = arith.constant 0 : index
    %c0_24 = arith.constant 0 : index
    %40 = vector.load %arg3[%c5, %c0_23, %c0_24] : memref<9x8x8xbf16, #tpu.memory_space<vmem>>, vector<1x8x8xbf16>
    %41 = vector.shape_cast %40 : vector<1x8x8xbf16> to vector<8x8xbf16>
    %cst_25 = arith.constant dense<0.000000e+00> : vector<288x8xf32>
    %42 = tpu.matmul %39, %41, %cst_25 {dimension_numbers = #tpu.dot_dimension_numbers<[1], [0], [0], [1], [0, 0, 1, 1], [], []>} : vector<288x8xbf16>, vector<8x8xbf16>, vector<288x8xf32> -> vector<288x8xf32>
    %43 = arith.addf %37, %42 : vector<288x8xf32>
    %44 = vector.extract_strided_slice %6 {offsets = [36, 0], sizes = [288, 8], strides = [1, 1]} : vector<342x8xf32> to vector<288x8xf32>
    %45 = arith.truncf %44 : vector<288x8xf32> to vector<288x8xbf16>
    %c6 = arith.constant 6 : index
    %c0_26 = arith.constant 0 : index
    %c0_27 = arith.constant 0 : index
    %46 = vector.load %arg3[%c6, %c0_26, %c0_27] : memref<9x8x8xbf16, #tpu.memory_space<vmem>>, vector<1x8x8xbf16>
    %47 = vector.shape_cast %46 : vector<1x8x8xbf16> to vector<8x8xbf16>
    %cst_28 = arith.constant dense<0.000000e+00> : vector<288x8xf32>
    %48 = tpu.matmul %45, %47, %cst_28 {dimension_numbers = #tpu.dot_dimension_numbers<[1], [0], [0], [1], [0, 0, 1, 1], [], []>} : vector<288x8xbf16>, vector<8x8xbf16>, vector<288x8xf32> -> vector<288x8xf32>
    %49 = arith.addf %43, %48 : vector<288x8xf32>
    %50 = vector.extract_strided_slice %6 {offsets = [37, 0], sizes = [288, 8], strides = [1, 1]} : vector<342x8xf32> to vector<288x8xf32>
    %51 = arith.truncf %50 : vector<288x8xf32> to vector<288x8xbf16>
    %c7 = arith.constant 7 : index
    %c0_29 = arith.constant 0 : index
    %c0_30 = arith.constant 0 : index
    %52 = vector.load %arg3[%c7, %c0_29, %c0_30] : memref<9x8x8xbf16, #tpu.memory_space<vmem>>, vector<1x8x8xbf16>
    %53 = vector.shape_cast %52 : vector<1x8x8xbf16> to vector<8x8xbf16>
    %cst_31 = arith.constant dense<0.000000e+00> : vector<288x8xf32>
    %54 = tpu.matmul %51, %53, %cst_31 {dimension_numbers = #tpu.dot_dimension_numbers<[1], [0], [0], [1], [0, 0, 1, 1], [], []>} : vector<288x8xbf16>, vector<8x8xbf16>, vector<288x8xf32> -> vector<288x8xf32>
    %55 = arith.addf %49, %54 : vector<288x8xf32>
    %56 = vector.extract_strided_slice %6 {offsets = [38, 0], sizes = [288, 8], strides = [1, 1]} : vector<342x8xf32> to vector<288x8xf32>
    %57 = arith.truncf %56 : vector<288x8xf32> to vector<288x8xbf16>
    %c8 = arith.constant 8 : index
    %c0_32 = arith.constant 0 : index
    %c0_33 = arith.constant 0 : index
    %58 = vector.load %arg3[%c8, %c0_32, %c0_33] : memref<9x8x8xbf16, #tpu.memory_space<vmem>>, vector<1x8x8xbf16>
    %59 = vector.shape_cast %58 : vector<1x8x8xbf16> to vector<8x8xbf16>
    %cst_34 = arith.constant dense<0.000000e+00> : vector<288x8xf32>
    %60 = tpu.matmul %57, %59, %cst_34 {dimension_numbers = #tpu.dot_dimension_numbers<[1], [0], [0], [1], [0, 0, 1, 1], [], []>} : vector<288x8xbf16>, vector<8x8xbf16>, vector<288x8xf32> -> vector<288x8xf32>
    %61 = arith.addf %55, %60 : vector<288x8xf32>
    %c0_35 = arith.constant 0 : index
    %c0_36 = arith.constant 0 : index
    %62 = vector.load %arg4[%c0_35, %c0_36] : memref<1x8xf32, #tpu.memory_space<vmem>>, vector<1x8xf32>
    %63 = vector.broadcast %62 : vector<1x8xf32> to vector<288x8xf32>
    %64 = arith.mulf %61, %63 : vector<288x8xf32>
    %c0_37 = arith.constant 0 : index
    %c0_38 = arith.constant 0 : index
    %65 = vector.load %arg5[%c0_37, %c0_38] : memref<1x8xf32, #tpu.memory_space<vmem>>, vector<1x8xf32>
    %66 = vector.broadcast %65 : vector<1x8xf32> to vector<288x8xf32>
    %67 = arith.addf %64, %66 : vector<288x8xf32>
    %cst_39 = arith.constant 0.000000e+00 : f32
    %68 = vector.broadcast %cst_39 : f32 to vector<288x8xf32>
    %69 = arith.maximumf %67, %68 : vector<288x8xf32>
    %c0_40 = arith.constant 0 : index
    %c0_41 = arith.constant 0 : index
    %70 = vector.load %arg2[%c0_40, %c0_41] : memref<288x1xf32, #tpu.memory_space<vmem>>, vector<288x1xf32>
    %71 = vector.broadcast %70 : vector<288x1xf32> to vector<288x8xf32>
    %72 = arith.mulf %69, %71 : vector<288x8xf32>
    %c19 = arith.constant 19 : index
    %c0_42 = arith.constant 0 : index
    %73 = vector.load %arg12[%c19, %c0_42] : memref<342x8xf32, #tpu.memory_space<vmem>>, vector<288x8xf32>
    tpu.vector_store %arg12[%c19, %c0_42], %72 {strides = array<i32>} : memref<342x8xf32, #tpu.memory_space<vmem>>, vector<288x8xf32>,
    %cst_43 = arith.constant 0.000000e+00 : f32
    %74 = vector.broadcast %cst_43 : f32 to vector<288x8xf32>
    %c0_44 = arith.constant 0 : index
    %c0_45 = arith.constant 0 : index
    %75 = vector.load %arg12[%c0_44, %c0_45] : memref<342x8xf32, #tpu.memory_space<vmem>>, vector<288x8xf32>
    %76 = arith.truncf %75 : vector<288x8xf32> to vector<288x8xbf16>
    %c0_46 = arith.constant 0 : index
    %c0_47 = arith.constant 0 : index
    %c0_48 = arith.constant 0 : index
    %77 = vector.load %arg6[%c0_46, %c0_47, %c0_48] : memref<9x8x8xbf16, #tpu.memory_space<vmem>>, vector<1x8x8xbf16>
    %78 = vector.shape_cast %77 : vector<1x8x8xbf16> to vector<8x8xbf16>
    %cst_49 = arith.constant dense<0.000000e+00> : vector<288x8xf32>
    %79 = tpu.matmul %76, %78, %cst_49 {dimension_numbers = #tpu.dot_dimension_numbers<[1], [0], [0], [1], [0, 0, 1, 1], [], []>} : vector<288x8xbf16>, vector<8x8xbf16>, vector<288x8xf32> -> vector<288x8xf32>
    %80 = arith.addf %74, %79 : vector<288x8xf32>
    %c1_50 = arith.constant 1 : index
    %c0_51 = arith.constant 0 : index
    %81 = vector.load %arg12[%c1_50, %c0_51] : memref<342x8xf32, #tpu.memory_space<vmem>>, vector<288x8xf32>
    %82 = arith.truncf %81 : vector<288x8xf32> to vector<288x8xbf16>
    %c1_52 = arith.constant 1 : index
    %c0_53 = arith.constant 0 : index
    %c0_54 = arith.constant 0 : index
    %83 = vector.load %arg6[%c1_52, %c0_53, %c0_54] : memref<9x8x8xbf16, #tpu.memory_space<vmem>>, vector<1x8x8xbf16>
    %84 = vector.shape_cast %83 : vector<1x8x8xbf16> to vector<8x8xbf16>
    %cst_55 = arith.constant dense<0.000000e+00> : vector<288x8xf32>
    %85 = tpu.matmul %82, %84, %cst_55 {dimension_numbers = #tpu.dot_dimension_numbers<[1], [0], [0], [1], [0, 0, 1, 1], [], []>} : vector<288x8xbf16>, vector<8x8xbf16>, vector<288x8xf32> -> vector<288x8xf32>
    %86 = arith.addf %80, %85 : vector<288x8xf32>
    %c2_56 = arith.constant 2 : index
    %c0_57 = arith.constant 0 : index
    %87 = vector.load %arg12[%c2_56, %c0_57] : memref<342x8xf32, #tpu.memory_space<vmem>>, vector<288x8xf32>
    %88 = arith.truncf %87 : vector<288x8xf32> to vector<288x8xbf16>
    %c2_58 = arith.constant 2 : index
    %c0_59 = arith.constant 0 : index
    %c0_60 = arith.constant 0 : index
    %89 = vector.load %arg6[%c2_58, %c0_59, %c0_60] : memref<9x8x8xbf16, #tpu.memory_space<vmem>>, vector<1x8x8xbf16>
    %90 = vector.shape_cast %89 : vector<1x8x8xbf16> to vector<8x8xbf16>
    %cst_61 = arith.constant dense<0.000000e+00> : vector<288x8xf32>
    %91 = tpu.matmul %88, %90, %cst_61 {dimension_numbers = #tpu.dot_dimension_numbers<[1], [0], [0], [1], [0, 0, 1, 1], [], []>} : vector<288x8xbf16>, vector<8x8xbf16>, vector<288x8xf32> -> vector<288x8xf32>
    %92 = arith.addf %86, %91 : vector<288x8xf32>
    %c18 = arith.constant 18 : index
    %c0_62 = arith.constant 0 : index
    %93 = vector.load %arg12[%c18, %c0_62] : memref<342x8xf32, #tpu.memory_space<vmem>>, vector<288x8xf32>
    %94 = arith.truncf %93 : vector<288x8xf32> to vector<288x8xbf16>
    %c3_63 = arith.constant 3 : index
    %c0_64 = arith.constant 0 : index
    %c0_65 = arith.constant 0 : index
    %95 = vector.load %arg6[%c3_63, %c0_64, %c0_65] : memref<9x8x8xbf16, #tpu.memory_space<vmem>>, vector<1x8x8xbf16>
    %96 = vector.shape_cast %95 : vector<1x8x8xbf16> to vector<8x8xbf16>
    %cst_66 = arith.constant dense<0.000000e+00> : vector<288x8xf32>
    %97 = tpu.matmul %94, %96, %cst_66 {dimension_numbers = #tpu.dot_dimension_numbers<[1], [0], [0], [1], [0, 0, 1, 1], [], []>} : vector<288x8xbf16>, vector<8x8xbf16>, vector<288x8xf32> -> vector<288x8xf32>
    %98 = arith.addf %92, %97 : vector<288x8xf32>
    %c19_67 = arith.constant 19 : index
    %c0_68 = arith.constant 0 : index
    %99 = vector.load %arg12[%c19_67, %c0_68] : memref<342x8xf32, #tpu.memory_space<vmem>>, vector<288x8xf32>
    %100 = arith.truncf %99 : vector<288x8xf32> to vector<288x8xbf16>
    %c4_69 = arith.constant 4 : index
    %c0_70 = arith.constant 0 : index
    %c0_71 = arith.constant 0 : index
    %101 = vector.load %arg6[%c4_69, %c0_70, %c0_71] : memref<9x8x8xbf16, #tpu.memory_space<vmem>>, vector<1x8x8xbf16>
    %102 = vector.shape_cast %101 : vector<1x8x8xbf16> to vector<8x8xbf16>
    %cst_72 = arith.constant dense<0.000000e+00> : vector<288x8xf32>
    %103 = tpu.matmul %100, %102, %cst_72 {dimension_numbers = #tpu.dot_dimension_numbers<[1], [0], [0], [1], [0, 0, 1, 1], [], []>} : vector<288x8xbf16>, vector<8x8xbf16>, vector<288x8xf32> -> vector<288x8xf32>
    %104 = arith.addf %98, %103 : vector<288x8xf32>
    %c20 = arith.constant 20 : index
    %c0_73 = arith.constant 0 : index
    %105 = vector.load %arg12[%c20, %c0_73] : memref<342x8xf32, #tpu.memory_space<vmem>>, vector<288x8xf32>
    %106 = arith.truncf %105 : vector<288x8xf32> to vector<288x8xbf16>
    %c5_74 = arith.constant 5 : index
    %c0_75 = arith.constant 0 : index
    %c0_76 = arith.constant 0 : index
    %107 = vector.load %arg6[%c5_74, %c0_75, %c0_76] : memref<9x8x8xbf16, #tpu.memory_space<vmem>>, vector<1x8x8xbf16>
    %108 = vector.shape_cast %107 : vector<1x8x8xbf16> to vector<8x8xbf16>
    %cst_77 = arith.constant dense<0.000000e+00> : vector<288x8xf32>
    %109 = tpu.matmul %106, %108, %cst_77 {dimension_numbers = #tpu.dot_dimension_numbers<[1], [0], [0], [1], [0, 0, 1, 1], [], []>} : vector<288x8xbf16>, vector<8x8xbf16>, vector<288x8xf32> -> vector<288x8xf32>
    %110 = arith.addf %104, %109 : vector<288x8xf32>
    %c36 = arith.constant 36 : index
    %c0_78 = arith.constant 0 : index
    %111 = vector.load %arg12[%c36, %c0_78] : memref<342x8xf32, #tpu.memory_space<vmem>>, vector<288x8xf32>
    %112 = arith.truncf %111 : vector<288x8xf32> to vector<288x8xbf16>
    %c6_79 = arith.constant 6 : index
    %c0_80 = arith.constant 0 : index
    %c0_81 = arith.constant 0 : index
    %113 = vector.load %arg6[%c6_79, %c0_80, %c0_81] : memref<9x8x8xbf16, #tpu.memory_space<vmem>>, vector<1x8x8xbf16>
    %114 = vector.shape_cast %113 : vector<1x8x8xbf16> to vector<8x8xbf16>
    %cst_82 = arith.constant dense<0.000000e+00> : vector<288x8xf32>
    %115 = tpu.matmul %112, %114, %cst_82 {dimension_numbers = #tpu.dot_dimension_numbers<[1], [0], [0], [1], [0, 0, 1, 1], [], []>} : vector<288x8xbf16>, vector<8x8xbf16>, vector<288x8xf32> -> vector<288x8xf32>
    %116 = arith.addf %110, %115 : vector<288x8xf32>
    %c37 = arith.constant 37 : index
    %c0_83 = arith.constant 0 : index
    %117 = vector.load %arg12[%c37, %c0_83] : memref<342x8xf32, #tpu.memory_space<vmem>>, vector<288x8xf32>
    %118 = arith.truncf %117 : vector<288x8xf32> to vector<288x8xbf16>
    %c7_84 = arith.constant 7 : index
    %c0_85 = arith.constant 0 : index
    %c0_86 = arith.constant 0 : index
    %119 = vector.load %arg6[%c7_84, %c0_85, %c0_86] : memref<9x8x8xbf16, #tpu.memory_space<vmem>>, vector<1x8x8xbf16>
    %120 = vector.shape_cast %119 : vector<1x8x8xbf16> to vector<8x8xbf16>
    %cst_87 = arith.constant dense<0.000000e+00> : vector<288x8xf32>
    %121 = tpu.matmul %118, %120, %cst_87 {dimension_numbers = #tpu.dot_dimension_numbers<[1], [0], [0], [1], [0, 0, 1, 1], [], []>} : vector<288x8xbf16>, vector<8x8xbf16>, vector<288x8xf32> -> vector<288x8xf32>
    %122 = arith.addf %116, %121 : vector<288x8xf32>
    %c38 = arith.constant 38 : index
    %c0_88 = arith.constant 0 : index
    %123 = vector.load %arg12[%c38, %c0_88] : memref<342x8xf32, #tpu.memory_space<vmem>>, vector<288x8xf32>
    %124 = arith.truncf %123 : vector<288x8xf32> to vector<288x8xbf16>
    %c8_89 = arith.constant 8 : index
    %c0_90 = arith.constant 0 : index
    %c0_91 = arith.constant 0 : index
    %125 = vector.load %arg6[%c8_89, %c0_90, %c0_91] : memref<9x8x8xbf16, #tpu.memory_space<vmem>>, vector<1x8x8xbf16>
    %126 = vector.shape_cast %125 : vector<1x8x8xbf16> to vector<8x8xbf16>
    %cst_92 = arith.constant dense<0.000000e+00> : vector<288x8xf32>
    %127 = tpu.matmul %124, %126, %cst_92 {dimension_numbers = #tpu.dot_dimension_numbers<[1], [0], [0], [1], [0, 0, 1, 1], [], []>} : vector<288x8xbf16>, vector<8x8xbf16>, vector<288x8xf32> -> vector<288x8xf32>
    %128 = arith.addf %122, %127 : vector<288x8xf32>
    %c0_93 = arith.constant 0 : index
    %c0_94 = arith.constant 0 : index
    %129 = vector.load %arg7[%c0_93, %c0_94] : memref<1x8xf32, #tpu.memory_space<vmem>>, vector<1x8xf32>
    %130 = vector.broadcast %129 : vector<1x8xf32> to vector<288x8xf32>
    %131 = arith.mulf %128, %130 : vector<288x8xf32>
    %c0_95 = arith.constant 0 : index
    %c0_96 = arith.constant 0 : index
    %132 = vector.load %arg8[%c0_95, %c0_96] : memref<1x8xf32, #tpu.memory_space<vmem>>, vector<1x8xf32>
    %133 = vector.broadcast %132 : vector<1x8xf32> to vector<288x8xf32>
    %134 = arith.addf %131, %133 : vector<288x8xf32>
    %cst_97 = arith.constant 0.000000e+00 : f32
    %135 = vector.broadcast %cst_97 : f32 to vector<288x8xf32>
    %136 = arith.maximumf %134, %135 : vector<288x8xf32>
    %137 = vector.extract_strided_slice %6 {offsets = [19, 0], sizes = [288, 8], strides = [1, 1]} : vector<342x8xf32> to vector<288x8xf32>
    %138 = arith.addf %137, %136 : vector<288x8xf32>
    %139 = arith.truncf %138 : vector<288x8xf32> to vector<288x8xbf16>
    %c0_98 = arith.constant 0 : index
    %c0_99 = arith.constant 0 : index
    %140 = vector.load %arg9[%c0_98, %c0_99] : memref<8x4xbf16, #tpu.memory_space<vmem>>, vector<8x4xbf16>
    %cst_100 = arith.constant dense<0.000000e+00> : vector<288x4xf32>
    %141 = tpu.matmul %139, %140, %cst_100 {dimension_numbers = #tpu.dot_dimension_numbers<[1], [0], [0], [1], [0, 0, 1, 1], [], []>} : vector<288x8xbf16>, vector<8x4xbf16>, vector<288x4xf32> -> vector<288x4xf32>
    %c0_101 = arith.constant 0 : index
    %c0_102 = arith.constant 0 : index
    %142 = vector.load %arg10[%c0_101, %c0_102] : memref<1x4xf32, #tpu.memory_space<vmem>>, vector<1x4xf32>
    %143 = vector.broadcast %142 : vector<1x4xf32> to vector<288x4xf32>
    %144 = arith.addf %141, %143 : vector<288x4xf32>
    %c0_103 = arith.constant 0 : index
    %c0_104 = arith.constant 0 : index
    %c0_105 = arith.constant 0 : index
    %145 = vector.load %arg11[%c0_103, %c0_104, %c0_105] : memref<1x288x4xf32, #tpu.memory_space<vmem>>, vector<1x288x4xf32>
    %146 = vector.shape_cast %145 : vector<1x288x4xf32> to vector<288x4xf32>
    %147 = vector.shape_cast %144 : vector<288x4xf32> to vector<1x288x4xf32>
    tpu.vector_store %arg11[%c0_103, %c0_104, %c0_105], %147 {strides = array<i32>} : memref<1x288x4xf32, #tpu.memory_space<vmem>>, vector<1x288x4xf32>,
    return
  }
  func.func @transform_0(%arg0: i32) -> (i32, i32, i32) {
    %c0_i32 = arith.constant 0 : i32
    %c0_i32_0 = arith.constant 0 : i32
    %c0_i32_1 = arith.constant 0 : i32
    return %arg0, %c0_i32, %c0_i32_0 : i32, i32, i32
  }
  func.func @transform_1(%arg0: i32) -> (i32, i32) {
    %c0_i32 = arith.constant 0 : i32
    %c0_i32_0 = arith.constant 0 : i32
    %c0_i32_1 = arith.constant 0 : i32
    return %c0_i32, %c0_i32_0 : i32, i32
  }
  func.func @transform_2(%arg0: i32) -> (i32, i32, i32) {
    %c0_i32 = arith.constant 0 : i32
    %c0_i32_0 = arith.constant 0 : i32
    %c0_i32_1 = arith.constant 0 : i32
    %c0_i32_2 = arith.constant 0 : i32
    return %c0_i32, %c0_i32_0, %c0_i32_1 : i32, i32, i32
  }
  func.func @transform_3(%arg0: i32) -> (i32, i32) {
    %c0_i32 = arith.constant 0 : i32
    %c0_i32_0 = arith.constant 0 : i32
    %c0_i32_1 = arith.constant 0 : i32
    return %c0_i32, %c0_i32_0 : i32, i32
  }
  func.func @transform_4(%arg0: i32) -> (i32, i32) {
    %c0_i32 = arith.constant 0 : i32
    %c0_i32_0 = arith.constant 0 : i32
    %c0_i32_1 = arith.constant 0 : i32
    return %c0_i32, %c0_i32_0 : i32, i32
  }
  func.func @transform_5(%arg0: i32) -> (i32, i32, i32) {
    %c0_i32 = arith.constant 0 : i32
    %c0_i32_0 = arith.constant 0 : i32
    %c0_i32_1 = arith.constant 0 : i32
    %c0_i32_2 = arith.constant 0 : i32
    return %c0_i32, %c0_i32_0, %c0_i32_1 : i32, i32, i32
  }
  func.func @transform_6(%arg0: i32) -> (i32, i32) {
    %c0_i32 = arith.constant 0 : i32
    %c0_i32_0 = arith.constant 0 : i32
    %c0_i32_1 = arith.constant 0 : i32
    return %c0_i32, %c0_i32_0 : i32, i32
  }
  func.func @transform_7(%arg0: i32) -> (i32, i32) {
    %c0_i32 = arith.constant 0 : i32
    %c0_i32_0 = arith.constant 0 : i32
    %c0_i32_1 = arith.constant 0 : i32
    return %c0_i32, %c0_i32_0 : i32, i32
  }
  func.func @transform_8(%arg0: i32) -> (i32, i32) {
    %c0_i32 = arith.constant 0 : i32
    %c0_i32_0 = arith.constant 0 : i32
    %c0_i32_1 = arith.constant 0 : i32
    return %c0_i32, %c0_i32_0 : i32, i32
  }
  func.func @transform_9(%arg0: i32) -> (i32, i32) {
    %c0_i32 = arith.constant 0 : i32
    %c0_i32_0 = arith.constant 0 : i32
    %c0_i32_1 = arith.constant 0 : i32
    return %c0_i32, %c0_i32_0 : i32, i32
  }
  func.func @transform_10(%arg0: i32) -> (i32, i32, i32) {
    %c0_i32 = arith.constant 0 : i32
    %c0_i32_0 = arith.constant 0 : i32
    %c0_i32_1 = arith.constant 0 : i32
    return %arg0, %c0_i32, %c0_i32_0 : i32, i32, i32
  }
}

</mosaic_0001>

<bundles_post_ra>
// kernel: up_forward.1
= control target key start
LH: loop header
LB: loop body
LE: loop exit
PB: predicated region body
PF: predicated region fallthrough
CT: control target
= control target key end

     0   :  { %s6405_s13 = smov 0   ;;  %s8921_s0 = inlined_call_operand.vmem [shape: bf16[2,342,8], index: 0, kind: input, shape index: {}]   ;;  %s8922_s1 = inlined_call_operand.vmem [shape: f32[288,1], index: 1, kind: input, shape index: {}]   ;;  %s8923_s2 = inlined_call_operand.vmem [shape: bf16[9,8,8], index: 2, kind: input, shape index: {}]   ;;  %s8924_s3 = inlined_call_operand.vmem [shape: f32[1,8], index: 3, kind: input, shape index: {}]   ;;  %s8925_s4 = inlined_call_operand.vmem [shape: f32[1,8], index: 4, kind: input, shape index: {}]   ;;  %s8926_s5 = inlined_call_operand.vmem [shape: bf16[9,8,8], index: 5, kind: input, shape index: {}]   ;;  %s8927_s6 = inlined_call_operand.vmem [shape: f32[1,8], index: 6, kind: input, shape index: {}]   ;;  %s8928_s7 = inlined_call_operand.vmem [shape: f32[1,8], index: 7, kind: input, shape index: {}]   ;;  %s8929_s8 = inlined_call_operand.vmem [shape: bf16[8,4], index: 8, kind: input, shape index: {}]   ;;  %s8930_s9 = inlined_call_operand.vmem [shape: f32[1,4], index: 9, kind: input, shape index: {}]   ;;  %s8931_s10 = inlined_call_operand.vmem [shape: f32[2,288,4], index: 10, kind: output, shape index: {}]  }
   0x1 LB: > { %s5805_s14 = sadd.s32 4294967295, %s6346_s13   ;;  %p5809_p0 = scmp.ge.s32.totalorder %s6346_s13, 1  ;;  %s6346_s13 = sphi %s6405_s13, %s20_s13  }
   0x2   : > { %p312_p1 = scmp.lt.s32.totalorder %s6346_s13, 3 }
   0x4   : > { %p313_p2 = pnand %p5809_p0, %p312_p1 }
   0x6   : > { %316 = sbr.rel (%p313_p2) target bundleno = 1839 (0x72f), region = 60 }
   0xb   : > { %vm678_vm0 = vcmask 1043456   ;;  %v5853_v0 = vld [vmem:[%s8923_s2 + $0x8] sm:$0xf]  ;;  %v5816_v1 = vld [vmem:[%s8923_s2 + $0x4] sm:$0xf]  ;;  %p350_p3 = scmp.lt.s32.totalorder %s5805_s14, 1 }
   0xc   : > { %v1033_v2 = vsel %vm678_vm0, %v5853_v0, 0  ;;  %v680_v3 = vsel %vm678_vm0, %v5816_v1, 0  ;;  %v471_v4 = vld [vmem:[%s8923_s2] sm:$0xf]  ;;  %v5891_v6 = vld [vmem:[%s8923_s2 + $0x10] sm:$0xf] }
   0xd   : > { %1042 = vmatpush.bf16.msra.mxu2 %v1033_v2  ;;  %6272 = vmatpush.bf16.msra.mxu3 %v680_v3  ;;  %s9142_s14 = smov (!%p350_p3, %s5805_s14), 1  ;;  %v818_v5 = vsel %vm678_vm0, %v471_v4, 0  ;;  %v1467_v7 = vsel %vm678_vm0, %v5891_v6, 0  ;;  %vm361_vm1 = vcmask 64512   ;;  %vm940_vm2 = vcmask 1046528  }
   0xe   : > { %689 = vmatpush.bf16.msra.mxu0 %v680_v3  ;;  %827 = vmatpush.bf16.msra.mxu1 %v818_v5  ;;  %s6275_s23 = smul.u32 172, %s9142_s14  ;;  %vm475_vm3 = vsmask.f32 7424  ;;  %vm1606_vm4 = vcmask 1045504   ;;  %vm1326_vm5 = vsmask.f32 6400 }
   0xf   : > { %vm1992_vm6 = vsmask.f32 5376  ;;  %vm2272_vm7 = vcmask 1044480   ;;  %vm364_vm8 = vcmask 59392   ;;  %vm5217_vm9 = vcmask 1042432   ;;  %s6276_s21 = smul.u32 288, %s9142_s14 }
  0x10   : > { %s6435_s26 = scalar_lea.vmem %s8921_s0, %s6275_s23  ;;  %vm5713_vm10 = vcmask 31744  }
  0x11   : > { %6273 = vmatpush.bf16.msrb.mxu3 %v818_v5  ;;  %v6176_v8 = vld [vmem:[%s6435_s26] sm:$0xff]  ;;  %v6439_v9 = vld [vmem:[%s6435_s26 + $0x8] sm:$0xff]   ;;  %v6442_v10 = vld [vmem:[%s6435_s26 + $0x70] sm:$0xff]   ;;  %s8703_s14 = scalar_lea.vmem %s8931_s10, %s6276_s21 }
  0x12   : > { %1476 = vmatpush.bf16.msrb.mxu0 %v1467_v7  ;;  %v942_v11 = vrot.slane %v6439_v9, 1  ;;  %v6446_v12 = vld [vmem:[%s6435_s26 + $0x78] sm:$0xff]   ;;  %v6449_v13 = vshll.u32 %v6442_v10, 16  ;;  %v6452_v14 = vshrl.u32 %v6442_v10, 16  ;;  %v8935_v15 = vshll.u32 %v6439_v9, 16  ;;  %5835 = vmatmul.msk.bf16.vlgmr.msra.gmra.mxu1 %vm361_vm1, %v6176_v8  ;;  %v6473_v29 = vld [vmem:[%s6435_s26 + $0x80] sm:$0xff]  }
  0x13   : > { %v941_v16 = vrot.slane %v6176_v8, 1  ;;  %v6456_v17 = vshll.u32 %v6446_v12, 16  ;;  %v477_v18 = vshrl.u32 %v6176_v8, 16  ;;  %v479_v19 = vshll.u32 %v6176_v8, 16  ;;  %v6476_v30 = vld [vmem:[%s6435_s26 + $0x10] sm:$0xff]   ;;  %v6506_v43 = vld [vmem:[%s6435_s26 + $0x88] sm:$0xff]  }
  0x14   : > { %8981 = vst [vmem:[#allocation3_spill] sm:$0xff] %v6449_v13  ;;  %v8932_v20 = vrot.slane %v6449_v13, 1  ;;  %v486_v24 = vrot.slane %v8935_v15, 1  ;;  %v6479_v31 = vshrl.u32 %v6446_v12, 16  ;;  %v6482_v32 = vshll.u32 %v6473_v29, 16  ;;  %v6509_v44 = vld [vmem:[%s6435_s26 + $0x18] sm:$0xff]  }
  0x15   : > { %8982 = vst [vmem:[#allocation4_spill] sm:$0xff] %v6452_v14  ;;  %v943_v21 = vsel %vm940_vm2, %v941_v16, %v942_v11  ;;  %v598_v22 = vrot.slane %v6456_v17, 1  ;;  %v481_v23 = vrot.slane %v479_v19, 1  ;;  %v944_v33 = vrot.slane %v6476_v30, 1  ;;  %v6270_v55 = vld [vmem:[%s6435_s26 + $0x90] sm:$0xff]   ;;  %v6547_v60 = vld [vmem:[%s6435_s26 + $0x20] sm:$0xff]  }
  0x16   : > { %8983 = vst [vmem:[#allocation5_spill] sm:$0xff] %v6456_v17  ;;  %5854 = vmatmul.msk.bf16.vlgmr.msra.gmra.mxu2 %vm361_vm1, %v943_v21  ;;  %v594_v25 = vor.u32 %v6452_v14, %v8932_v20  ;;  %v8934_v34 = vshrl.u32 %v6439_v9, 16  ;;  %v6487_v35 = vshll.u32 %v6476_v30, 16  ;;  %v606_v37 = vrot.slane %v6482_v32, 1 }
  0x17   : > { %v482_v26 = vor.u32 %v481_v23, %v477_v18  ;;  %8984 = vst [vmem:[#allocation6_spill] sm:$0xff] %v6479_v31  ;;  %v602_v36 = vor.u32 %v6479_v31, %v598_v22  ;;  %v6492_v38 = vsel %vm940_vm2, %v942_v11, %v944_v33  ;;  %v6512_v45 = vshrl.u32 %v6473_v29, 16  ;;  %v6575_v11 = vld [vmem:[%s6435_s26 + $0x28] sm:$0xff]  }
  0x18   : > { %v599_v27 = vsel %vm475_vm3, %v594_v25, %v598_v22  ;;  %8985 = vst [vmem:[#allocation7_spill] sm:$0xff] %v6482_v32  ;;  %v490_v39 = vor.u32 %v8934_v34, %v486_v24  ;;  %v494_v40 = vrot.slane %v6487_v35, 1  ;;  %v6515_v46 = vshll.u32 %v6506_v43, 16  ;;  %v6598_v25 = vld [vmem:[%s6435_s26 + $0x30] sm:$0xff]   ;;  %v6744_v32 = vld [vmem:[%s6435_s26 + $0x58] sm:$0xff]  }
  0x19   : > { %5831 = vmatmul.msk.bf16.vlgmr.msra.gmra.mxu3 %vm361_vm1, %v599_v27  ;;  %v487_v28 = vsel %vm475_vm3, %v482_v26, %v486_v24  ;;  %v607_v41 = vsel %vm475_vm3, %v602_v36, %v606_v37  ;;  %8986 = vst [vmem:[#allocation8_spill] sm:$0xff] %v6512_v45  ;;  %v946_v47 = vrot.slane %v6509_v44, 1  ;;  %v6519_v48 = vshrl.u32 %v6476_v30, 16 }
  0x1a   : > { %5817 = vmatmul.msk.bf16.vlgmr.msra.gmra.mxu0 %vm361_vm1, %v487_v28  ;;  %6274 = vmatpush.bf16.msra.mxu3 %v1033_v2  ;;  %v495_v42 = vsel %vm475_vm3, %v490_v39, %v494_v40  ;;  %8987 = vst [vmem:[#allocation9_spill] sm:$0xff] %v6515_v46  ;;  %v6522_v49 = vshll.u32 %v6509_v44, 16  ;;  %v610_v50 = vor.u32 %v6512_v45, %v606_v37  ;;  %v614_v51 = vrot.slane %v6515_v46, 1 }
  0x1b   : > { %v6527_v52 = vsel %vm940_vm2, %v944_v33, %v946_v47  ;;  %v498_v53 = vor.u32 %v6519_v48, %v494_v40  ;;  %v6537_v57 = vunpack.c.l.bf16 %v6270_v55  ;;  %v6550_v61 = vshrl.u32 %v6506_v43, 16  ;;  %v6621_v40 = vld [vmem:[%s6435_s26 + $0x38] sm:$0xff]   ;;  %v6644_v55 = vld [vmem:[%s6435_s26 + $0x40] sm:$0xff]   ;;  %8999 = vst [vmem:[#allocation21_spill] sm:$0xff] %v6744_v32 }
  0x1c   : > { %8988 = vst [vmem:[#allocation10_spill] sm:$0xff] %v6522_v49  ;;  %v502_v54 = vrot.slane %v6522_v49, 1  ;;  %v615_v56 = vsel %vm475_vm3, %v610_v50, %v614_v51  ;;  %v948_v63 = vrot.slane %v6547_v60, 1  ;;  %v6555_v0 = vshrl.u32 %v6509_v44, 16 }
  0x1d   : > { %8989 = vst [vmem:[#allocation11_spill] sm:$0xff] %v6537_v57  ;;  %v6544_v59 = vpack.c.bf16 %v6537_v57, %v6537_v57  ;;  %v6558_v1 = vshll.u32 %v6547_v60, 16  ;;  %v618_v2 = vor.u32 %v6550_v61, %v614_v51  ;;  %v950_v16 = vrot.slane %v6575_v11, 1 }
  0x1e   : > { %v503_v58 = vsel %vm475_vm3, %v498_v53, %v502_v54  ;;  %8990 = vst [vmem:[#allocation12_spill] sm:$0xff] %v6550_v61  ;;  %v6562_v4 = vsel %vm940_vm2, %v946_v47, %v948_v63  ;;  %v506_v5 = vor.u32 %v6555_v0, %v502_v54  ;;  %v6579_v18 = vshrl.u32 %v6547_v60, 16 }
  0x1f   : > { %v620_v62 = vshll.u32 %v6544_v59, 16  ;;  %v510_v6 = vrot.slane %v6558_v1, 1  ;;  %v6582_v19 = vshll.u32 %v6575_v11, 16  ;;  %v6585_v21 = vsel %vm940_vm2, %v948_v63, %v950_v16 }
  0x20   : > { %v952_v26 = vrot.slane %v6598_v25, 1  ;;  %v6602_v27 = vshrl.u32 %v6575_v11, 16  ;;  %v6605_v28 = vshll.u32 %v6598_v25, 16  ;;  %v6628_v47 = vshll.u32 %v6621_v40, 16 }
  0x21   : > { %v622_v3 = vrot.slane %v620_v62, 1  ;;  %v511_v8 = vsel %vm475_vm3, %v506_v5, %v510_v6  ;;  %v514_v22 = vor.u32 %v6579_v18, %v510_v6  ;;  %v518_v23 = vrot.slane %v6582_v19, 1  ;;  %v5910_v5 = vld [vmem:[%s8923_s2 + $0x14] sm:$0xf] }
  0x22   : > { %5836 = vmatmul.msk.bf16.gmra.mxu1 %vm361_vm1, %v6439_v9  ;;  %v6608_v33 = vsel %vm940_vm2, %v950_v16, %v952_v26  ;;  %v526_v37 = vrot.slane %v6605_v28, 1  ;;  %v534_v53 = vrot.slane %v6628_v47, 1  ;;  %v6651_v62 = vshll.u32 %v6644_v55, 16 }
  0x23   : > { %v623_v7 = vsel %vm475_vm3, %v618_v2, %v622_v3  ;;  %v519_v24 = vsel %vm475_vm3, %v514_v22, %v518_v23  ;;  %v522_v36 = vor.u32 %v6602_v27, %v518_v23  ;;  %v1699_v6 = vsel %vm678_vm0, %v5910_v5, 0 }
  0x24   : > { %8991 = vst [vmem:[#allocation13_spill] sm:$0xff] %v6651_v62  ;;  %v542_v3 = vrot.slane %v6651_v62, 1  ;;  %1708 = vmatpush.bf16.msrb.mxu1 %v1699_v6  ;;  %v6675_v22 = vshrl.u32 %v6644_v55, 16 }
  0x25   : > { %v527_v39 = vsel %vm475_vm3, %v522_v36, %v526_v37  ;;  %v970_v36 = vrot.slane %v6446_v12, 1 }
  0x26   : > { %5855 = vmatmul.msk.bf16.gmra.mxu2 %vm361_vm1, %v6492_v38 }
  0x29   : > { %5832 = vmatmul.msk.bf16.gmra.mxu3 %vm361_vm1, %v607_v41  ;;  %v954_v41 = vrot.slane %v6621_v40, 1 }
  0x2a   : > { %5818 = vmatmul.msk.bf16.gmra.mxu0 %vm361_vm1, %v495_v42  ;;  %v6625_v42 = vshrl.u32 %v6598_v25, 16 }
  0x2b   : > { %v6631_v50 = vsel %vm940_vm2, %v952_v26, %v954_v41  ;;  %v8933_v26 = vrot.slane %v6442_v10, 1 }
  0x2c   : > { %v530_v51 = vor.u32 %v6625_v42, %v526_v37  ;;  %v5872_v37 = vld [vmem:[%s8923_s2 + $0xc] sm:$0xf] }
  0x2e   : > { %v535_v54 = vsel %vm475_vm3, %v530_v51, %v534_v53 }
  0x32   : > { %5837 = vmatmul.msk.bf16.gmra.mxu1 %vm361_vm1, %v6476_v30 }
  0x36   : > { %5856 = vmatmul.msk.bf16.gmra.mxu2 %vm361_vm1, %v6527_v52 }
  0x39   : > { %5833 = vmatmul.msk.bf16.gmra.mxu3 %vm361_vm1, %v615_v56  ;;  %v956_v56 = vrot.slane %v6644_v55, 1 }
  0x3a   : > { %5819 = vmatmul.msk.bf16.gmra.mxu0 %vm361_vm1, %v503_v58  ;;  %v6648_v58 = vshrl.u32 %v6621_v40, 16 }
  0x3b   : > { %v6654_v63 = vsel %vm940_vm2, %v954_v41, %v956_v56  ;;  %v546_v41 = vor.u32 %v6675_v22, %v542_v3 }
  0x3c   : > { %v538_v2 = vor.u32 %v6648_v58, %v534_v53  ;;  %v1187_v53 = vsel %vm678_vm0, %v5872_v37, 0  ;;  %v6709_v37 = vld [vmem:[%s6435_s26 + $0x50] sm:$0xff]  }
  0x3d   : > { %v960_v20 = vrot.slane %v6709_v37, 1  ;;  %v6748_v17 = vshrl.u32 %v6709_v37, 16 }
  0x3f   : > { %9000 = vst [vmem:[#allocation22_spill] sm:$0xff] %v6748_v17 }
  0x42   : > { %5838 = vmatmul.msk.bf16.gmra.mxu1 %vm361_vm1, %v6509_v44 }
  0x46   : > { %5857 = vmatmul.msk.bf16.gmra.mxu2 %vm361_vm1, %v6562_v4 }
  0x49   : > { %5834 = vmatmul.msk.bf16.gmra.mxu3 %vm361_vm1, %v623_v7  ;;  %v543_v7 = vsel %vm475_vm3, %v538_v2, %v542_v3 }
  0x4a   : > { %5820 = vmatmul.msk.bf16.gmra.mxu0 %vm361_vm1, %v511_v8  ;;  %v6671_v8 = vld [vmem:[%s6435_s26 + $0x48] sm:$0xff]  }
  0x4b   : > { %v958_v16 = vrot.slane %v6671_v8, 1  ;;  %v6678_v23 = vshll.u32 %v6671_v8, 16 }
  0x4d   : > { %8992 = vst [vmem:[#allocation14_spill] sm:$0xff] %v6678_v23  ;;  %v550_v51 = vrot.slane %v6678_v23, 1 }
  0x52   : > { %5839 = vmatmul.msk.bf16.gmra.mxu1 %vm361_vm1, %v6547_v60 }
  0x56   : > { %5858 = vmatmul.msk.bf16.gmra.mxu2 %vm361_vm1, %v6585_v21 }
  0x59   : > { %5849 = vmatmul.msk.bf16.vlgmr.msrb.gmra.mxu3 %vm361_vm1, %v6442_v10 }
  0x5a   : > { %5821 = vmatmul.msk.bf16.gmra.mxu0 %vm361_vm1, %v519_v24  ;;  %1196 = vmatpush.bf16.msrb.mxu3 %v1187_v53 }
  0x62   : > { %5840 = vmatmul.msk.bf16.gmra.mxu1 %vm361_vm1, %v6575_v11 }
  0x66   : > { %5859 = vmatmul.msk.bf16.gmra.mxu2 %vm361_vm1, %v6608_v33 }
  0x69   : > { %5850 = vmatmul.msk.bf16.gmra.mxu3 %vm361_vm1, %v6446_v12  ;;  %v6698_v12 = vsel %vm940_vm2, %v8933_v26, %v970_v36  ;;  %v6713_v26 = vshrl.u32 %v6671_v8, 16 }
  0x6a   : > { %5822 = vmatmul.msk.bf16.gmra.mxu0 %vm361_vm1, %v527_v39  ;;  %v6686_v39 = vsel %vm940_vm2, %v956_v56, %v958_v16  ;;  %8993 = vst [vmem:[#allocation15_spill] sm:$0xff] %v6698_v12  ;;  %v551_v56 = vsel %vm475_vm3, %v546_v41, %v550_v51 }
  0x6b   : > { %8994 = vst [vmem:[#allocation16_spill] sm:$0xff] %v6713_v26  ;;  %v554_v15 = vor.u32 %v6713_v26, %v550_v51 }
  0x72   : > { %5841 = vmatmul.msk.bf16.gmra.mxu1 %vm361_vm1, %v6598_v25 }
  0x76   : > { %5860 = vmatmul.msk.bf16.gmra.mxu2 %vm361_vm1, %v6631_v50 }
  0x79   : > { %5851 = vmatmul.msk.bf16.gmra.mxu3 %vm361_vm1, %v6473_v29 }
  0x7a   : > { %5823 = vmatmul.msk.bf16.gmra.mxu0 %vm361_vm1, %v535_v54 }
  0x82   : > { %5842 = vmatmul.msk.bf16.gmra.mxu1 %vm361_vm1, %v6621_v40 }
  0x86   : > { %5861 = vmatmul.msk.bf16.gmra.mxu2 %vm361_vm1, %v6654_v63 }
  0x89   : > { %5852 = vmatmul.msk.bf16.gmra.mxu3 %vm361_vm1, %v6506_v43 }
  0x8a   : > { %5824 = vmatmul.msk.bf16.gmra.mxu0 %vm361_vm1, %v543_v7 }
  0x8f   : > { %v829_v24 = vpop.f32.mrf.mxu1 }
  0x92   : > { %5843 = vmatmul.msk.bf16.gmra.mxu1 %vm361_vm1, %v6644_v55 }
  0x96   : > { %5862 = vmatmul.msk.bf16.gmra.mxu2 %vm361_vm1, %v6686_v39 }
  0x97   : > { %v691_v54 = vpop.f32.mrf.mxu0  ;;  %v831_v3 = vpop.f32.mrf.mxu1 }
  0x98   : > { %v830_v2 = vadd.f32 %v829_v24, %v691_v54  ;;  %v6716_v24 = vshll.u32 %v6709_v37, 16 }
  0x99   : > { %5868 = vmatmul.msk.bf16.vlgmr.msra.gmra.mxu3 %vm361_vm1, %v6698_v12  ;;  %v1044_v5 = vpop.f32.mrf.mxu2 }
  0x9a   : > { %v6703_v6 = vadd.f32 %v1044_v5, %v830_v2  ;;  %5825 = vmatmul.msk.bf16.gmra.mxu0 %vm361_vm1, %v551_v56  ;;  %8995 = vst [vmem:[#allocation17_spill] sm:$0xff] %v6716_v24  ;;  %v972_v56 = vrot.slane %v6473_v29, 1  ;;  %v6722_v5 = vsel %vm940_vm2, %v958_v16, %v960_v20  ;;  %v558_v57 = vrot.slane %v6716_v24, 1 }
  0x9c   : > { %v6706_v7 = vpop.f32.mrf.mxu3  ;;  %v559_v16 = vsel %vm475_vm3, %v554_v15, %v558_v57  ;;  %v6751_v15 = vshll.u32 %v6744_v32, 16 }
  0x9e   : > { %9001 = vst [vmem:[#allocation23_spill] sm:$0xff] %v6751_v15  ;;  %v566_v14 = vrot.slane %v6751_v15, 1 }
  0x9f   : > { %v693_v53 = vpop.f32.mrf.mxu0  ;;  %v834_v54 = vpop.f32.mrf.mxu1 }
  0xa0   : > { %v832_v41 = vadd.f32 %v831_v3, %v693_v53 }
  0xa1   : > { %v1046_v34 = vpop.f32.mrf.mxu2 }
  0xa2   : > { %v6718_v2 = vadd.f32 %v1046_v34, %v832_v41  ;;  %5844 = vmatmul.msk.bf16.gmra.mxu1 %vm361_vm1, %v6671_v8  ;;  %v6733_v34 = vsel %vm940_vm2, %v970_v36, %v972_v56  ;;  %v962_v36 = vrot.slane %v6744_v32, 1 }
  0xa3   : > { %8997 = vst [vmem:[#allocation19_spill] sm:$0xff] %v6733_v34 }
  0xa4   : > { %8996 = vst [vmem:[#allocation18_spill] sm:$0xff] %v6718_v2  ;;  %v6728_v46 = vpop.f32.mrf.mxu3 }
  0xa6   : > { %5863 = vmatmul.msk.bf16.gmra.mxu2 %vm361_vm1, %v6722_v5 }
  0xa7   : > { %v696_v29 = vpop.f32.mrf.mxu0  ;;  %v836_v53 = vpop.f32.mrf.mxu1 }
  0xa8   : > { %v835_v3 = vadd.f32 %v834_v54, %v696_v29 }
  0xa9   : > { %5869 = vmatmul.msk.bf16.gmra.mxu3 %vm361_vm1, %v6733_v34  ;;  %v1049_v51 = vpop.f32.mrf.mxu2  ;;  %v562_v34 = vor.u32 %v6748_v17, %v558_v57  ;;  %v6786_v17 = vshrl.u32 %v6744_v32, 16 }
  0xaa   : > { %v6738_v41 = vadd.f32 %v1049_v51, %v835_v3  ;;  %5826 = vmatmul.msk.bf16.gmra.mxu0 %vm361_vm1, %v559_v16  ;;  %v6756_v16 = vrot.slane %v6506_v43, 1  ;;  %v6759_v51 = vsel %vm940_vm2, %v960_v20, %v962_v36 }
  0xab   : > { %9004 = vst [vmem:[#allocation26_spill] sm:$0xff] %v6759_v51  ;;  %v567_v20 = vsel %vm475_vm3, %v562_v34, %v566_v14 }
  0xac   : > { %8998 = vst [vmem:[#allocation20_spill] sm:$0xff] %v6738_v41  ;;  %v6741_v61 = vpop.f32.mrf.mxu3 }
  0xad   : > { %9003 = vst [vmem:[#allocation25_spill] sm:$0xff] %v6756_v16 }
  0xae   : > { %9008 = vst [vmem:[#allocation30_spill] sm:$0xff] %v6786_v17 }
  0xaf   : > { %v698_v45 = vpop.f32.mrf.mxu0  ;;  %v839_v29 = vpop.f32.mrf.mxu1 }
  0xb0   : > { %v837_v54 = vadd.f32 %v836_v53, %v698_v45 }
  0xb1   : > { %v1051_v31 = vpop.f32.mrf.mxu2 }
  0xb2   : > { %v6753_v3 = vadd.f32 %v1051_v31, %v837_v54  ;;  %5845 = vmatmul.msk.bf16.gmra.mxu1 %vm361_vm1, %v6709_v37  ;;  %v6771_v31 = vsel %vm940_vm2, %v972_v56, %v6756_v16 }
  0xb3   : > { %9005 = vst [vmem:[#allocation27_spill] sm:$0xff] %v6771_v31 }
  0xb4   : > { %9002 = vst [vmem:[#allocation24_spill] sm:$0xff] %v6753_v3  ;;  %v6765_v12 = vpop.f32.mrf.mxu3  ;;  %v6782_v3 = vld [vmem:[%s6435_s26 + $0x60] sm:$0xff]  }
  0xb5   : > { %9007 = vst [vmem:[#allocation29_spill] sm:$0xff] %v6782_v3  ;;  %v964_v56 = vrot.slane %v6782_v3, 1  ;;  %v6789_v34 = vshll.u32 %v6782_v3, 16 }
  0xb6   : > { %5864 = vmatmul.msk.bf16.gmra.mxu2 %vm361_vm1, %v6759_v51 }
  0xb7   : > { %v701_v43 = vpop.f32.mrf.mxu0  ;;  %v841_v53 = vpop.f32.mrf.mxu1  ;;  %9009 = vst [vmem:[#allocation31_spill] sm:$0xff] %v6789_v34  ;;  %v574_v41 = vrot.slane %v6789_v34, 1 }
  0xb8   : > { %v840_v45 = vadd.f32 %v839_v29, %v701_v43 }
  0xb9   : > { %5870 = vmatmul.msk.bf16.gmra.mxu3 %vm361_vm1, %v6771_v31  ;;  %v1054_v57 = vpop.f32.mrf.mxu2 }
  0xba   : > { %v6776_v54 = vadd.f32 %v1054_v57, %v840_v45  ;;  %5827 = vmatmul.msk.bf16.gmra.mxu0 %vm361_vm1, %v567_v20  ;;  %v976_v20 = vrot.slane %v6544_v59, 1  ;;  %v6795_v57 = vsel %vm940_vm2, %v962_v36, %v964_v56 }
  0xbb   : > { %9011 = vst [vmem:[#allocation33_spill] sm:$0xff] %v6795_v57 }
  0xbc   : > { %9006 = vst [vmem:[#allocation28_spill] sm:$0xff] %v6776_v54  ;;  %v6779_v15 = vpop.f32.mrf.mxu3  ;;  %v570_v54 = vor.u32 %v6786_v17, %v566_v14 }
  0xbe   : > { %v575_v36 = vsel %vm475_vm3, %v570_v54, %v574_v41 }
  0xbf   : > { %v703_v24 = vpop.f32.mrf.mxu0  ;;  %v844_v43 = vpop.f32.mrf.mxu1 }
  0xc0   : > { %v842_v29 = vadd.f32 %v841_v53, %v703_v24  ;;  %v977_v24 = vsel %vm940_vm2, %v6756_v16, %v976_v20  ;;  %v6819_v20 = vshrl.u32 %v6782_v3, 16 }
  0xc1   : > { %v1056_v31 = vpop.f32.mrf.mxu2 }
  0xc2   : > { %v6791_v45 = vadd.f32 %v1056_v31, %v842_v29  ;;  %5846 = vmatmul.msk.bf16.gmra.mxu1 %vm361_vm1, %v6744_v32  ;;  %9013 = vst [vmem:[#allocation35_spill] sm:$0xff] %v6819_v20  ;;  %v5948_v32 = vld [vmem:[%s8923_s2 + $0x1c] sm:$0xf] }
  0xc4   : > { %9010 = vst [vmem:[#allocation32_spill] sm:$0xff] %v6791_v45  ;;  %v6801_v51 = vpop.f32.mrf.mxu3  ;;  %v6815_v45 = vld [vmem:[%s6435_s26 + $0x68] sm:$0xff]  }
  0xc5   : > { %v6822_v54 = vshll.u32 %v6815_v45, 16 }
  0xc6   : > { %5865 = vmatmul.msk.bf16.gmra.mxu2 %vm361_vm1, %v6795_v57  ;;  %v966_v57 = vrot.slane %v6815_v45, 1 }
  0xc7   : > { %v706_v59 = vpop.f32.mrf.mxu0  ;;  %v846_v53 = vpop.f32.mrf.mxu1  ;;  %9014 = vst [vmem:[#allocation36_spill] sm:$0xff] %v6822_v54 }
  0xc8   : > { %v845_v31 = vadd.f32 %v844_v43, %v706_v59  ;;  %v6838_v2 = vsel %vm940_vm2, %v964_v56, %v966_v57 }
  0xc9   : > { %5871 = vmatmul.msk.bf16.gmra.mxu3 %vm361_vm1, %v977_v24  ;;  %v1059_v14 = vpop.f32.mrf.mxu2 }
  0xca   : > { %v6809_v29 = vadd.f32 %v1059_v14, %v845_v31  ;;  %5828 = vmatmul.msk.bf16.gmra.mxu0 %vm361_vm1, %v575_v36  ;;  %v9015_v31 = vshll.u32 %v6439_v9, 16  ;;  %v9016_v36 = vshrl.u32 %v6439_v9, 16 }
  0xcc   : > { %9012 = vst [vmem:[#allocation34_spill] sm:$0xff] %v6809_v29  ;;  %v6812_v34 = vpop.f32.mrf.mxu3  ;;  %v6826_v14 = vrot.slane %v9015_v31, 2  ;;  %v6830_v16 = vrot.slane %v9016_v36, 1  ;;  %v2133_v31 = vsel %vm678_vm0, %v5948_v32, 0 }
  0xcd   : > { %2142 = vmatpush.bf16.msra.mxu3 %v2133_v31  ;;  %v5967_v31 = vld [vmem:[%s8923_s2 + $0x20] sm:$0xf] }
  0xcf   : > { %v708_v17 = vpop.f32.mrf.mxu0  ;;  %v849_v24 = vpop.f32.mrf.mxu1 }
  0xd0   : > { %v847_v43 = vadd.f32 %v846_v53, %v708_v17  ;;  %v578_v17 = vor.u32 %v6819_v20, %v574_v41  ;;  %v582_v53 = vrot.slane %v6822_v54, 1  ;;  %v1329_v54 = vor.u32 %v6826_v14, %v6830_v16 }
  0xd1   : > { %v1061_v59 = vpop.f32.mrf.mxu2  ;;  %v6869_v14 = vshrl.u32 %v6815_v45, 16 }
  0xd2   : > { %v6832_v29 = vadd.f32 %v1061_v59, %v847_v43  ;;  %5847 = vmatmul.msk.bf16.gmra.mxu1 %vm361_vm1, %v6782_v3  ;;  %v5929_v43 = vld [vmem:[%s8923_s2 + $0x18] sm:$0xf]  ;;  %v583_v56 = vsel %vm475_vm3, %v578_v17, %v582_v53 }
  0xd3   : > { %v1853_v36 = vsel %vm678_vm0, %v5929_v43, 0  ;;  %v2365_v43 = vsel %vm678_vm0, %v5967_v31, 0  ;;  %v586_v31 = vor.u32 %v6869_v14, %v582_v53 }
  0xd4   : > { %9017 = vst [vmem:[#allocation37_spill] sm:$0xff] %v6832_v29  ;;  %v6848_v59 = vpop.f32.mrf.mxu3  ;;  %1862 = vmatpush.bf16.msrb.mxu2 %v1853_v36  ;;  %2374 = vmatpush.bf16.msra.mxu0 %v2365_v43 }
  0xd6   : > { %5866 = vmatmul.msk.bf16.gmra.mxu2 %vm361_vm1, %v6838_v2 }
  0xd7   : > { %v711_v41 = vpop.f32.mrf.mxu0  ;;  %v851_v29 = vpop.f32.mrf.mxu1 }
  0xd8   : > { %v850_v32 = vadd.f32 %v849_v24, %v711_v41 }
  0xd9   : > { %5873 = vmatmul.msk.bf16.vlgmr.msrb.gmra.mxu3 %vm361_vm1, %v6492_v38  ;;  %v1064_v20 = vpop.f32.mrf.mxu2 }
  0xda   : > { %v6858_v3 = vadd.f32 %v1064_v20, %v850_v32  ;;  %5829 = vmatmul.msk.bf16.gmra.mxu0 %vm361_vm1, %v583_v56  ;;  %v9018_v56 = vrot.slane %v6442_v10, 1 }
  0xdc   : > { %v899_v17 = vpop.f32.mrf.mxu3  ;;  %v6876_v32 = vsel %vm940_vm2, %v966_v57, %v9018_v56 }
  0xdd   : > { %v6866_v16 = vadd.f32 %v899_v17, %v6706_v7  ;;  %v9019_v17 = vrot.slane %v6449_v13, 1 }
  0xdf   : > { %v713_v24 = vpop.f32.mrf.mxu0  ;;  %v854_v20 = vpop.f32.mrf.mxu1  ;;  %v591_v10 = vsel %vm475_vm3, %v586_v31, %v9019_v17  ;;  %v1330_v31 = vrot.slane %v6519_v48, 1 }
  0xe0   : > { %v852_v38 = vadd.f32 %v851_v29, %v713_v24 }
  0xe1   : > { %v1066_v36 = vpop.f32.mrf.mxu2 }
  0xe2   : > { %v6871_v41 = vadd.f32 %v1066_v36, %v852_v38  ;;  %5848 = vmatmul.msk.bf16.gmra.mxu1 %vm361_vm1, %v6815_v45  ;;  %v1607_v36 = vrot.slane %v6439_v9, 2 }
  0xe4   : > { %v901_v7 = vpop.f32.mrf.mxu3 }
  0xe5   : > { %v6882_v43 = vadd.f32 %v901_v7, %v6728_v46  ;;  %v1608_v7 = vrot.slane %v6476_v30, 2 }
  0xe6   : > { %5867 = vmatmul.msk.bf16.gmra.mxu2 %vm361_vm1, %v6876_v32 }
  0xe7   : > { %v716_v29 = vpop.f32.mrf.mxu0  ;;  %v856_v57 = vpop.f32.mrf.mxu1 }
  0xe8   : > { %v855_v24 = vadd.f32 %v854_v20, %v716_v29  ;;  %v1610_v20 = vrot.slane %v6509_v44, 2 }
  0xe9   : > { %5874 = vmatmul.msk.bf16.gmra.mxu3 %vm361_vm1, %v6527_v52  ;;  %v1069_v53 = vpop.f32.mrf.mxu2  ;;  %v1331_v52 = vrot.slane %v6487_v35, 2 }
  0xea   : > { %v6891_v38 = vadd.f32 %v1069_v53, %v855_v24  ;;  %5830 = vmatmul.msk.bf16.gmra.mxu0 %vm361_vm1, %v591_v10  ;;  %v1609_v10 = vsel %vm1606_vm4, %v1607_v36, %v1608_v7  ;;  %v1611_v9 = vsel %vm1606_vm4, %v1608_v7, %v1610_v20 }
  0xec   : > { %v904_v46 = vpop.f32.mrf.mxu3 }
  0xed   : > { %v6896_v56 = vadd.f32 %v904_v46, %v6741_v61  ;;  %v1332_v61 = vor.u32 %v1331_v52, %v1330_v31 }
  0xef   : > { %v718_v13 = vpop.f32.mrf.mxu0  ;;  %v859_v17 = vpop.f32.mrf.mxu1 }
  0xf0   : > { %v857_v29 = vadd.f32 %v856_v57, %v718_v13  ;;  %v1333_v13 = vsel %vm1326_vm5, %v1329_v54, %v1332_v61  ;;  %v1335_v54 = vrot.slane %v6522_v49, 2 }
  0xf1   : > { %v1071_v24 = vpop.f32.mrf.mxu2 }
  0xf2   : > { %v6903_v53 = vadd.f32 %v1071_v24, %v857_v29  ;;  %5911 = vmatmul.msk.bf16.vlgmr.msrb.gmra.mxu1 %vm361_vm1, %v1609_v10  ;;  %v1612_v10 = vrot.slane %v6547_v60, 2  ;;  %v1334_v24 = vrot.slane %v6555_v0, 1 }
  0xf4   : > { %v906_v30 = vpop.f32.mrf.mxu3 }
  0xf5   : > { %v6908_v44 = vadd.f32 %v906_v30, %v6765_v12 }
  0xf6   : > { %5930 = vmatmul.msk.bf16.vlgmr.msrb.gmra.mxu2 %vm361_vm1, %v1611_v9 }
  0xf7   : > { %v721_v46 = vpop.f32.mrf.mxu0  ;;  %v861_v36 = vpop.f32.mrf.mxu1 }
  0xf8   : > { %v860_v57 = vadd.f32 %v859_v17, %v721_v46 }
  0xf9   : > { %5875 = vmatmul.msk.bf16.gmra.mxu3 %vm361_vm1, %v6562_v4  ;;  %v1074_v29 = vpop.f32.mrf.mxu2 }
  0xfa   : > { %v6914_v7 = vadd.f32 %v1074_v29, %v860_v57  ;;  %5892 = vmatmul.msk.bf16.vlgmr.msrb.gmra.mxu0 %vm361_vm1, %v1333_v13  ;;  %v1613_v57 = vsel %vm1606_vm4, %v1610_v20, %v1612_v10  ;;  %v1336_v29 = vor.u32 %v1335_v54, %v1334_v24  ;;  %v1614_v24 = vrot.slane %v6575_v11, 2 }
  0xfb   : > { %v1338_v54 = vrot.slane %v6579_v18, 1 }
  0xfc   : > { %v909_v31 = vpop.f32.mrf.mxu3 }
  0xfd   : > { %v6918_v52 = vadd.f32 %v909_v31, %v6779_v15  ;;  %v1337_v31 = vsel %vm1326_vm5, %v1332_v61, %v1336_v29  ;;  %v1339_v61 = vrot.slane %v6558_v1, 2 }
  0xff   : > { %v723_v12 = vpop.f32.mrf.mxu0  ;;  %v864_v30 = vpop.f32.mrf.mxu1 }
 0x100   : > { %v862_v17 = vadd.f32 %v861_v36, %v723_v12 }
 0x101   : > { %v1076_v46 = vpop.f32.mrf.mxu2 }
 0x102   : > { %v6923_v4 = vadd.f32 %v1076_v46, %v862_v17  ;;  %5912 = vmatmul.msk.bf16.gmra.mxu1 %vm361_vm1, %v1611_v9 }
 0x104   : > { %v911_v13 = vpop.f32.mrf.mxu3 }
 0x105   : > { %v6928_v15 = vadd.f32 %v911_v13, %v6801_v51 }
 0x106   : > { %5931 = vmatmul.msk.bf16.gmra.mxu2 %vm361_vm1, %v1613_v57 }
 0x107   : > { %v726_v60 = vpop.f32.mrf.mxu0  ;;  %v866_v36 = vpop.f32.mrf.mxu1 }
 0x108   : > { %v865_v49 = vadd.f32 %v864_v30, %v726_v60  ;;  %v1340_v60 = vor.u32 %v1339_v61, %v1338_v54  ;;  %v1616_v54 = vrot.slane %v6598_v25, 2  ;;  %v1342_v61 = vrot.slane %v6602_v27, 1 }
 0x109   : > { %5876 = vmatmul.msk.bf16.gmra.mxu3 %vm361_vm1, %v6585_v21  ;;  %v1079_v12 = vpop.f32.mrf.mxu2 }
 0x10a   : > { %v6934_v17 = vadd.f32 %v1079_v12, %v865_v49  ;;  %5893 = vmatmul.msk.bf16.gmra.mxu0 %vm361_vm1, %v1337_v31  ;;  %v1615_v49 = vsel %vm1606_vm4, %v1612_v10, %v1614_v24  ;;  %v1341_v12 = vsel %vm1326_vm5, %v1336_v29, %v1340_v60  ;;  %v1343_v29 = vrot.slane %v6582_v19, 2 }
 0x10c   : > { %v914_v20 = vpop.f32.mrf.mxu3 }
 0x10d   : > { %v6938_v9 = vadd.f32 %v914_v20, %v6812_v34 }
 0x10f   : > { %v728_v51 = vpop.f32.mrf.mxu0  ;;  %v869_v46 = vpop.f32.mrf.mxu1 }
 0x110   : > { %v867_v30 = vadd.f32 %v866_v36, %v728_v51 }
 0x111   : > { %v1081_v13 = vpop.f32.mrf.mxu2 }
 0x112   : > { %v6943_v21 = vadd.f32 %v1081_v13, %v867_v30  ;;  %5913 = vmatmul.msk.bf16.gmra.mxu1 %vm361_vm1, %v1613_v57 }
 0x114   : > { %v916_v31 = vpop.f32.mrf.mxu3 }
 0x115   : > { %v6948_v34 = vadd.f32 %v916_v31, %v6848_v59 }
 0x116   : > { %5932 = vmatmul.msk.bf16.gmra.mxu2 %vm361_vm1, %v1615_v49 }
 0x117   : > { %v731_v11 = vpop.f32.mrf.mxu0  ;;  %v871_v36 = vpop.f32.mrf.mxu1 }
 0x118   : > { %v870_v20 = vadd.f32 %v869_v46, %v731_v11  ;;  %v1617_v11 = vsel %vm1606_vm4, %v1614_v24, %v1616_v54 }
 0x119   : > { %5877 = vmatmul.msk.bf16.gmra.mxu3 %vm361_vm1, %v6608_v33  ;;  %v1084_v51 = vpop.f32.mrf.mxu2 }
 0x11a   : > { %v6954_v30 = vadd.f32 %v1084_v51, %v870_v20  ;;  %5894 = vmatmul.msk.bf16.gmra.mxu0 %vm361_vm1, %v1341_v12  ;;  %v1344_v20 = vor.u32 %v1343_v29, %v1342_v61  ;;  %v1618_v61 = vrot.slane %v6621_v40, 2  ;;  %v1346_v29 = vrot.slane %v6625_v42, 1 }
 0x11c   : > { %v1114_v10 = vpop.f32.mrf.mxu3  ;;  %v1345_v51 = vsel %vm1326_vm5, %v1340_v60, %v1344_v20  ;;  %v1347_v60 = vrot.slane %v6605_v28, 2 }
 0x11d   : > { %v6958_v57 = vadd.f32 %v1114_v10, %v6866_v16 }
 0x11f   : > { %v733_v59 = vpop.f32.mrf.mxu0  ;;  %v874_v13 = vpop.f32.mrf.mxu1 }
 0x120   : > { %v872_v46 = vadd.f32 %v871_v36, %v733_v59 }
 0x121   : > { %v1086_v31 = vpop.f32.mrf.mxu2 }
 0x122   : > { %v6963_v33 = vadd.f32 %v1086_v31, %v872_v46  ;;  %5914 = vmatmul.msk.bf16.gmra.mxu1 %vm361_vm1, %v1615_v49 }
 0x124   : > { %v1116_v12 = vpop.f32.mrf.mxu3 }
 0x125   : > { %v6968_v16 = vadd.f32 %v1116_v12, %v6882_v43 }
 0x126   : > { %5933 = vmatmul.msk.bf16.gmra.mxu2 %vm361_vm1, %v1617_v11 }
 0x127   : > { %9020 = vst [vmem:[#allocation38_spill] sm:$0xff] %v6968_v16  ;;  %v736_v25 = vpop.f32.mrf.mxu0  ;;  %v876_v36 = vpop.f32.mrf.mxu1 }
 0x128   : > { %v875_v10 = vadd.f32 %v874_v13, %v736_v25  ;;  %v1619_v25 = vsel %vm1606_vm4, %v1616_v54, %v1618_v61 }
 0x129   : > { %5878 = vmatmul.msk.bf16.gmra.mxu3 %vm361_vm1, %v6631_v50  ;;  %v1089_v59 = vpop.f32.mrf.mxu2 }
 0x12a   : > { %v6974_v46 = vadd.f32 %v1089_v59, %v875_v10  ;;  %5895 = vmatmul.msk.bf16.gmra.mxu0 %vm361_vm1, %v1345_v51  ;;  %v1348_v10 = vor.u32 %v1347_v60, %v1346_v29  ;;  %v1620_v29 = vrot.slane %v6644_v55, 2  ;;  %v1350_v60 = vrot.slane %v6648_v58, 1 }
 0x12c   : > { %v1119_v24 = vpop.f32.mrf.mxu3  ;;  %v1349_v59 = vsel %vm1326_vm5, %v1344_v20, %v1348_v10  ;;  %v1351_v20 = vrot.slane %v6628_v47, 2 }
 0x12d   : > { %v6978_v49 = vadd.f32 %v1119_v24, %v6896_v56 }
 0x12f   : > { %9021 = vst [vmem:[#allocation39_spill] sm:$0xff] %v6978_v49  ;;  %v738_v43 = vpop.f32.mrf.mxu0  ;;  %v879_v31 = vpop.f32.mrf.mxu1 }
 0x130   : > { %v877_v13 = vadd.f32 %v876_v36, %v738_v43 }
 0x131   : > { %v1091_v12 = vpop.f32.mrf.mxu2 }
 0x132   : > { %v6983_v50 = vadd.f32 %v1091_v12, %v877_v13  ;;  %5915 = vmatmul.msk.bf16.gmra.mxu1 %vm361_vm1, %v1617_v11 }
 0x134   : > { %v1121_v51 = vpop.f32.mrf.mxu3 }
 0x135   : > { %v6988_v56 = vadd.f32 %v1121_v51, %v6908_v44 }
 0x136   : > { %5934 = vmatmul.msk.bf16.gmra.mxu2 %vm361_vm1, %v1619_v25 }
 0x137   : > { %9022 = vst [vmem:[#allocation40_spill] sm:$0xff] %v6988_v56  ;;  %v741_v40 = vpop.f32.mrf.mxu0  ;;  %v881_v36 = vpop.f32.mrf.mxu1 }
 0x138   : > { %v880_v24 = vadd.f32 %v879_v31, %v741_v40  ;;  %v1621_v40 = vsel %vm1606_vm4, %v1618_v61, %v1620_v29 }
 0x139   : > { %5879 = vmatmul.msk.bf16.gmra.mxu3 %vm361_vm1, %v6654_v63  ;;  %v1094_v43 = vpop.f32.mrf.mxu2 }
 0x13a   : > { %v6994_v13 = vadd.f32 %v1094_v43, %v880_v24  ;;  %5896 = vmatmul.msk.bf16.gmra.mxu0 %vm361_vm1, %v1349_v59  ;;  %v1352_v24 = vor.u32 %v1351_v20, %v1350_v60  ;;  %v1622_v60 = vrot.slane %v6671_v8, 2  ;;  %v1354_v20 = vrot.slane %v6675_v22, 1 }
 0x13c   : > { %v1124_v54 = vpop.f32.mrf.mxu3  ;;  %v1353_v43 = vsel %vm1326_vm5, %v1348_v10, %v1352_v24  ;;  %v1355_v10 = vrot.slane %v6651_v62, 2 }
 0x13d   : > { %v6998_v11 = vadd.f32 %v1124_v54, %v6918_v52 }
 0x13f   : > { %9023 = vst [vmem:[#allocation41_spill] sm:$0xff] %v6998_v11  ;;  %v743_v44 = vpop.f32.mrf.mxu0  ;;  %v884_v12 = vpop.f32.mrf.mxu1 }
 0x140   : > { %v882_v31 = vadd.f32 %v881_v36, %v743_v44 }
 0x141   : > { %v1096_v51 = vpop.f32.mrf.mxu2 }
 0x142   : > { %v7003_v63 = vadd.f32 %v1096_v51, %v882_v31  ;;  %5916 = vmatmul.msk.bf16.gmra.mxu1 %vm361_vm1, %v1619_v25 }
 0x144   : > { %v1126_v59 = vpop.f32.mrf.mxu3 }
 0x145   : > { %v7008_v52 = vadd.f32 %v1126_v59, %v6928_v15 }
 0x146   : > { %5935 = vmatmul.msk.bf16.gmra.mxu2 %vm361_vm1, %v1621_v40 }
 0x147   : > { %9024 = vst [vmem:[#allocation42_spill] sm:$0xff] %v7008_v52  ;;  %v746_v55 = vpop.f32.mrf.mxu0  ;;  %v886_v36 = vpop.f32.mrf.mxu1  ;;  %v9031_v52 = vld [vmem:[#allocation22_spill] sm:$0xff] }
 0x148   : > { %v885_v54 = vadd.f32 %v884_v12, %v746_v55  ;;  %v1623_v55 = vsel %vm1606_vm4, %v1620_v29, %v1622_v60  ;;  %v1362_v11 = vrot.slane %v9031_v52, 1 }
 0x149   : > { %5880 = vmatmul.msk.bf16.gmra.mxu3 %vm361_vm1, %v6686_v39  ;;  %v1099_v44 = vpop.f32.mrf.mxu2 }
 0x14a   : > { %v7014_v31 = vadd.f32 %v1099_v44, %v885_v54  ;;  %5897 = vmatmul.msk.bf16.gmra.mxu0 %vm361_vm1, %v1353_v43  ;;  %v1356_v54 = vor.u32 %v1355_v10, %v1354_v20  ;;  %v1624_v20 = vrot.slane %v6709_v37, 2  ;;  %v1358_v10 = vrot.slane %v6713_v26, 1  ;;  %v5986_v37 = vld [vmem:[%s8926_s5 + $0x4] sm:$0xf]  ;;  %v9038_v26 = vld [vmem:[#allocation30_spill] sm:$0xff] }
 0x14b   : > { %v1366_v49 = vrot.slane %v9038_v26, 1 }
 0x14c   : > { %v1129_v61 = vpop.f32.mrf.mxu3  ;;  %v1357_v44 = vsel %vm1326_vm5, %v1352_v24, %v1356_v54  ;;  %v1359_v24 = vrot.slane %v6678_v23, 2 }
 0x14d   : > { %v7018_v25 = vadd.f32 %v1129_v61, %v6938_v9 }
 0x14f   : > { %9025 = vst [vmem:[#allocation43_spill] sm:$0xff] %v7018_v25  ;;  %v748_v15 = vpop.f32.mrf.mxu0  ;;  %v889_v51 = vpop.f32.mrf.mxu1  ;;  %v9030_v25 = vld [vmem:[#allocation21_spill] sm:$0xff] }
 0x150   : > { %v887_v12 = vadd.f32 %v886_v36, %v748_v15 }
 0x151   : > { %v1101_v59 = vpop.f32.mrf.mxu2 }
 0x152   : > { %v7023_v39 = vadd.f32 %v1101_v59, %v887_v12  ;;  %5917 = vmatmul.msk.bf16.gmra.mxu1 %vm361_vm1, %v1621_v40 }
 0x154   : > { %v1131_v43 = vpop.f32.mrf.mxu3 }
 0x155   : > { %v7028_v9 = vadd.f32 %v1131_v43, %v6948_v34 }
 0x156   : > { %5936 = vmatmul.msk.bf16.gmra.mxu2 %vm361_vm1, %v1623_v55 }
 0x157   : > { %9026 = vst [vmem:[#allocation44_spill] sm:$0xff] %v7028_v9  ;;  %v751_v8 = vpop.f32.mrf.mxu0  ;;  %v891_v36 = vpop.f32.mrf.mxu1 }
 0x158   : > { %v890_v61 = vadd.f32 %v889_v51, %v751_v8 }
 0x159   : > { %5881 = vmatmul.msk.bf16.gmra.mxu3 %vm361_vm1, %v6722_v5  ;;  %v1104_v15 = vpop.f32.mrf.mxu2  ;;  %v1625_v5 = vsel %vm1606_vm4, %v1622_v60, %v1624_v20 }
 0x15a   : > { %v7034_v12 = vadd.f32 %v1104_v15, %v890_v61  ;;  %5898 = vmatmul.msk.bf16.gmra.mxu0 %vm361_vm1, %v1357_v44  ;;  %v1360_v61 = vor.u32 %v1359_v24, %v1358_v10  ;;  %v9027_v15 = vld [vmem:[#allocation18_spill] sm:$0xff] }
 0x15b   : > { %v9028_v10 = vld [vmem:[#allocation26_spill] sm:$0xff] }
 0x15c   : > { %v1198_v29 = vpop.f32.mrf.mxu3 }
 0x15d   : > { %v1288_v40 = vadd.f32 %v1198_v29, %v6703_v6 }
 0x15f   : > { %v753_v34 = vpop.f32.mrf.mxu0  ;;  %v894_v59 = vpop.f32.mrf.mxu1 }
 0x160   : > { %v892_v51 = vadd.f32 %v891_v36, %v753_v34  ;;  %v3072_v36 = vsel %vm678_vm0, %v5986_v37, 0  ;;  %v1361_v34 = vsel %vm1326_vm5, %v1356_v54, %v1360_v61  ;;  %v1626_v37 = vrot.slane %v9030_v25, 2  ;;  %v9032_v54 = vld [vmem:[#allocation17_spill] sm:$0xff] }
 0x161   : > { %v1106_v43 = vpop.f32.mrf.mxu2  ;;  %3081 = vmatpush.bf16.msra.mxu1 %v3072_v36  ;;  %v1363_v36 = vrot.slane %v9032_v54, 2 }
 0x162   : > { %v7041_v8 = vadd.f32 %v1106_v43, %v892_v51  ;;  %5918 = vmatmul.msk.bf16.gmra.mxu1 %vm361_vm1, %v1623_v55 }
 0x164   : > { %v1200_v44 = vpop.f32.mrf.mxu3 }
 0x165   : > { %v1289_v6 = vadd.f32 %v1200_v44, %v9027_v15  ;;  %v9029_v44 = vld [vmem:[#allocation20_spill] sm:$0xff] }
 0x166   : > { %5937 = vmatmul.msk.bf16.gmra.mxu2 %vm361_vm1, %v1625_v5 }
 0x167   : > { %v756_v29 = vpop.f32.mrf.mxu0  ;;  %v896_v60 = vpop.f32.mrf.mxu1 }
 0x168   : > { %v895_v51 = vadd.f32 %v894_v59, %v756_v29 }
 0x169   : > { %5882 = vmatmul.msk.bf16.gmra.mxu3 %vm361_vm1, %v9028_v10  ;;  %v1109_v55 = vpop.f32.mrf.mxu2  ;;  %v1364_v10 = vor.u32 %v1363_v36, %v1362_v11 }
 0x16a   : > { %v7054_v24 = vadd.f32 %v1109_v55, %v895_v51  ;;  %5899 = vmatmul.msk.bf16.gmra.mxu0 %vm361_vm1, %v1361_v34  ;;  %v1627_v51 = vsel %vm1606_vm4, %v1624_v20, %v1626_v37  ;;  %v9033_v55 = vld [vmem:[#allocation24_spill] sm:$0xff] }
 0x16c   : > { %v1203_v43 = vpop.f32.mrf.mxu3 }
 0x16d   : > { %v1290_v15 = vadd.f32 %v1203_v43, %v9029_v44  ;;  %v1365_v44 = vsel %vm1326_vm5, %v1360_v61, %v1364_v10  ;;  %v9039_v61 = vld [vmem:[#allocation23_spill] sm:$0xff] }
 0x16f   : > { %v758_v9 = vpop.f32.mrf.mxu0  ;;  %v1710_v29 = vpop.f32.mrf.mxu1 }
 0x170   : > { %v897_v59 = vadd.f32 %v896_v60, %v758_v9  ;;  %v9034_v9 = vld [vmem:[#allocation33_spill] sm:$0xff] }
 0x171   : > { %v1111_v56 = vpop.f32.mrf.mxu2 }
 0x172   : > { %v7061_v23 = vadd.f32 %v1111_v56, %v897_v59  ;;  %5919 = vmatmul.msk.bf16.gmra.mxu1 %vm361_vm1, %v1625_v5  ;;  %v9036_v5 = vld [vmem:[#allocation28_spill] sm:$0xff] }
 0x174   : > { %v1205_v34 = vpop.f32.mrf.mxu3 }
 0x175   : > { %v1291_v43 = vadd.f32 %v1205_v34, %v9033_v55  ;;  %v9037_v34 = vld [vmem:[#allocation29_spill] sm:$0xff] }
 0x176   : > { %5938 = vmatmul.msk.bf16.gmra.mxu2 %vm361_vm1, %v1627_v51  ;;  %v1628_v55 = vrot.slane %v9037_v34, 2 }
 0x177   : > { %v1478_v25 = vpop.f32.mrf.mxu0  ;;  %v1712_v54 = vpop.f32.mrf.mxu1 }
 0x178   : > { %v1568_v52 = vadd.f32 %v1478_v25, %v1288_v40  ;;  %v1367_v40 = vrot.slane %v9039_v61, 2 }
 0x179   : > { %5883 = vmatmul.msk.bf16.gmra.mxu3 %vm361_vm1, %v9034_v9  ;;  %v1864_v56 = vpop.f32.mrf.mxu2 }
 0x17a   : > { %v1800_v60 = vadd.f32 %v1710_v29, %v1568_v52  ;;  %5900 = vmatmul.msk.bf16.gmra.mxu0 %vm361_vm1, %v1365_v44  ;;  %v1629_v52 = vsel %vm1606_vm4, %v1626_v37, %v1628_v55  ;;  %v1368_v29 = vor.u32 %v1367_v40, %v1366_v49 }
 0x17c   : > { %v1208_v11 = vpop.f32.mrf.mxu3  ;;  %v7071_v20 = vadd.f32 %v1864_v56, %v1800_v60  ;;  %v9041_v60 = vld [vmem:[#allocation32_spill] sm:$0xff]  ;;  %v1369_v34 = vsel %vm1326_vm5, %v1364_v10, %v1368_v29  ;;  %v9044_v10 = vld [vmem:[#allocation31_spill] sm:$0xff] }
 0x17d   : > { %v1292_v36 = vadd.f32 %v1208_v11, %v9036_v5 }
 0x17e   : > { %9035 = vst [vmem:[#allocation18_spill] sm:$0xff] %v7071_v20 }
 0x17f   : > { %v1480_v59 = vpop.f32.mrf.mxu0  ;;  %v1715_v16 = vpop.f32.mrf.mxu1 }
 0x180   : > { %v1569_v25 = vadd.f32 %v1480_v59, %v1289_v6 }
 0x181   : > { %v1866_v62 = vpop.f32.mrf.mxu2 }
 0x182   : > { %v1801_v9 = vadd.f32 %v1712_v54, %v1569_v25  ;;  %5920 = vmatmul.msk.bf16.gmra.mxu1 %vm361_vm1, %v1627_v51  ;;  %v1630_v25 = vrot.slane %v6815_v45, 2 }
 0x184   : > { %v1210_v44 = vpop.f32.mrf.mxu3  ;;  %v7079_v56 = vadd.f32 %v1866_v62, %v1801_v9  ;;  %v9042_v62 = vld [vmem:[#allocation34_spill] sm:$0xff]  ;;  %v9043_v9 = vld [vmem:[#allocation35_spill] sm:$0xff] }
 0x185   : > { %v1293_v11 = vadd.f32 %v1210_v44, %v9041_v60  ;;  %v1370_v44 = vrot.slane %v9043_v9, 1 }
 0x186   : > { %9040 = vst [vmem:[#allocation26_spill] sm:$0xff] %v7079_v56  ;;  %5939 = vmatmul.msk.bf16.gmra.mxu2 %vm361_vm1, %v1629_v52 }
 0x187   : > { %v1483_v5 = vpop.f32.mrf.mxu0  ;;  %v1717_v6 = vpop.f32.mrf.mxu1 }
 0x188   : > { %v1570_v20 = vadd.f32 %v1483_v5, %v1290_v15  ;;  %v1371_v15 = vrot.slane %v9044_v10, 2 }
 0x189   : > { %5884 = vmatmul.msk.bf16.gmra.mxu3 %vm361_vm1, %v6838_v2  ;;  %v1869_v54 = vpop.f32.mrf.mxu2 }
 0x18a   : > { %v1802_v37 = vadd.f32 %v1715_v16, %v1570_v20  ;;  %5901 = vmatmul.msk.bf16.gmra.mxu0 %vm361_vm1, %v1369_v34  ;;  %v1631_v16 = vsel %vm1606_vm4, %v1628_v55, %v1630_v25  ;;  %v1372_v20 = vor.u32 %v1371_v15, %v1370_v44 }
 0x18c   : > { %v1213_v49 = vpop.f32.mrf.mxu3  ;;  %v7087_v51 = vadd.f32 %v1869_v54, %v1802_v37  ;;  %v9046_v37 = vld [vmem:[#allocation37_spill] sm:$0xff] }
 0x18d   : > { %v1294_v59 = vadd.f32 %v1213_v49, %v9042_v62  ;;  %v1373_v62 = vsel %vm1326_vm5, %v1368_v29, %v1372_v20  ;;  %v9048_v29 = vld [vmem:[#allocation36_spill] sm:$0xff] }
 0x18f   : > { %v1485_v40 = vpop.f32.mrf.mxu0  ;;  %v1720_v5 = vpop.f32.mrf.mxu1 }
 0x190   : > { %v1571_v60 = vadd.f32 %v1485_v40, %v1291_v43 }
 0x191   : > { %v1871_v56 = vpop.f32.mrf.mxu2 }
 0x192   : > { %v1803_v2 = vadd.f32 %v1717_v6, %v1571_v60  ;;  %5921 = vmatmul.msk.bf16.gmra.mxu1 %vm361_vm1, %v1629_v52  ;;  %v6295_v60 = vld [vmem:[%s6435_s26 + $0x70] sm:$0xff]  }
 0x194   : > { %v1215_v34 = vpop.f32.mrf.mxu3  ;;  %v7095_v54 = vadd.f32 %v1871_v56, %v1803_v2  ;;  %v1632_v2 = vrot.slane %v6295_v60, 2  ;;  %v9050_v60 = vld [vmem:[#allocation15_spill] sm:$0xff] }
 0x195   : > { %v1295_v49 = vadd.f32 %v1215_v34, %v9046_v37  ;;  %v1374_v34 = vrot.slane %v6869_v14, 1 }
 0x196   : > { %9045 = vst [vmem:[#allocation20_spill] sm:$0xff] %v7095_v54  ;;  %5940 = vmatmul.msk.bf16.gmra.mxu2 %vm361_vm1, %v1631_v16 }
 0x197   : > { %v1488_v45 = vpop.f32.mrf.mxu0  ;;  %v1722_v40 = vpop.f32.mrf.mxu1 }
 0x198   : > { %v1572_v43 = vadd.f32 %v1488_v45, %v1292_v36  ;;  %v1375_v36 = vrot.slane %v9048_v29, 2 }
 0x199   : > { %5885 = vmatmul.msk.bf16.gmra.mxu3 %vm361_vm1, %v6876_v32  ;;  %v1874_v55 = vpop.f32.mrf.mxu2 }
 0x19a   : > { %v1804_v6 = vadd.f32 %v1720_v5, %v1572_v43  ;;  %5902 = vmatmul.msk.bf16.gmra.mxu0 %vm361_vm1, %v1373_v62  ;;  %v1633_v5 = vsel %vm1606_vm4, %v1630_v25, %v1632_v2  ;;  %v1376_v43 = vor.u32 %v1375_v36, %v1374_v34  ;;  %v6296_v36 = vld [vmem:[%s6435_s26 + $0x78] sm:$0xff]  }
 0x19c   : > { %v1218_v52 = vpop.f32.mrf.mxu3  ;;  %v7103_v44 = vadd.f32 %v1874_v55, %v1804_v6 }
 0x19d   : > { %v1296_v56 = vadd.f32 %v1218_v52, %v6858_v3  ;;  %v1377_v52 = vsel %vm1326_vm5, %v1372_v20, %v1376_v43  ;;  %v9052_v20 = vld [vmem:[#allocation3_spill] sm:$0xff] }
 0x19e   : > { %9047 = vst [vmem:[#allocation21_spill] sm:$0xff] %v7103_v44 }
 0x19f   : > { %v1490_v15 = vpop.f32.mrf.mxu0  ;;  %v1725_v45 = vpop.f32.mrf.mxu1 }
 0x1a0   : > { %v1573_v37 = vadd.f32 %v1490_v15, %v1293_v11 }
 0x1a1   : > { %v1876_v54 = vpop.f32.mrf.mxu2 }
 0x1a2   : > { %v1805_v32 = vadd.f32 %v1722_v40, %v1573_v37  ;;  %5922 = vmatmul.msk.bf16.gmra.mxu1 %vm361_vm1, %v1631_v16  ;;  %v1634_v37 = vrot.slane %v6296_v36, 2 }
 0x1a4   : > { %v1220_v62 = vpop.f32.mrf.mxu3  ;;  %v7111_v55 = vadd.f32 %v1876_v54, %v1805_v32  ;;  %v9051_v32 = vld [vmem:[#allocation4_spill] sm:$0xff] }
 0x1a5   : > { %v1297_v3 = vadd.f32 %v1220_v62, %v6871_v41  ;;  %v1378_v62 = vrot.slane %v9051_v32, 1 }
 0x1a6   : > { %9049 = vst [vmem:[#allocation24_spill] sm:$0xff] %v7111_v55  ;;  %5941 = vmatmul.msk.bf16.gmra.mxu2 %vm361_vm1, %v1633_v5 }
 0x1a7   : > { %v1493_v6 = vpop.f32.mrf.mxu0  ;;  %v1727_v15 = vpop.f32.mrf.mxu1 }
 0x1a8   : > { %v1574_v11 = vadd.f32 %v1493_v6, %v1294_v59  ;;  %v1379_v59 = vrot.slane %v9052_v20, 2 }
 0x1a9   : > { %5886 = vmatmul.msk.bf16.gmra.mxu3 %vm361_vm1, %v9050_v60  ;;  %v1879_v25 = vpop.f32.mrf.mxu2 }
 0x1aa   : > { %v1806_v40 = vadd.f32 %v1725_v45, %v1574_v11  ;;  %5903 = vmatmul.msk.bf16.gmra.mxu0 %vm361_vm1, %v1377_v52  ;;  %v1635_v45 = vsel %vm1606_vm4, %v1632_v2, %v1634_v37  ;;  %v1380_v11 = vor.u32 %v1379_v59, %v1378_v62 }
 0x1ac   : > { %v1223_v16 = vpop.f32.mrf.mxu3  ;;  %v7119_v34 = vadd.f32 %v1879_v25, %v1806_v40  ;;  %v2618_v40 = vld [vmem:[%s8922_s1] sm:$0xff] }
 0x1ad   : > { %v1298_v54 = vadd.f32 %v1223_v16, %v6891_v38  ;;  %v6348_v38 = vmov 0   ;;  %v9053_v16 = vld [vmem:[#allocation19_spill] sm:$0xff] }
 0x1ae   : > { %6287 = vset.pattern.permute.xlu0 %v6348_v38  ;;  %6288 = vset.pattern.permute.xlu1 %v6348_v38 }
 0x1af   : > { %v1495_v41 = vpop.f32.mrf.mxu0  ;;  %v1730_v55 = vpop.f32.mrf.mxu1  ;;  %2656 = vperm.xlu0 %6287, %v2618_v40   ;;  %6289 = vset.pattern.permute.xlu2 %v6348_v38  ;;  %v9056_v40 = vld [vmem:[#allocation5_spill] sm:$0xff] }
 0x1b0   : > { %v1575_v6 = vadd.f32 %v1495_v41, %v1295_v49 }
 0x1b1   : > { %v1881_v44 = vpop.f32.mrf.mxu2 }
 0x1b2   : > { %v1807_v60 = vadd.f32 %v1727_v15, %v1575_v6  ;;  %5923 = vmatmul.msk.bf16.gmra.mxu1 %vm361_vm1, %v1633_v5  ;;  %v1381_v5 = vsel %vm1326_vm5, %v1376_v43, %v1380_v11  ;;  %v6297_v43 = vld [vmem:[%s6435_s26 + $0x80] sm:$0xff]  }
 0x1b4   : > { %v1225_v52 = vpop.f32.mrf.mxu3  ;;  %v7127_v25 = vadd.f32 %v1881_v44, %v1807_v60  ;;  %v1636_v60 = vrot.slane %v6297_v43, 2  ;;  %v9058_v43 = vld [vmem:[#allocation27_spill] sm:$0xff] }
 0x1b5   : > { %v1299_v49 = vadd.f32 %v1225_v52, %v6903_v53  ;;  %v2619_v53 = vld [vmem:[%s8922_s1 + $0x8] sm:$0xff]  ;;  %v9055_v52 = vld [vmem:[#allocation6_spill] sm:$0xff] }
 0x1b6   : > { %5942 = vmatmul.msk.bf16.gmra.mxu2 %vm361_vm1, %v1635_v45  ;;  %v1382_v38 = vrot.slane %v9055_v52, 1 }
 0x1b7   : > { %v1498_v2 = vpop.f32.mrf.mxu0  ;;  %v1732_v44 = vpop.f32.mrf.mxu1  ;;  %2661 = vperm.xlu0 %6287, %v2619_v53   ;;  %v2624_v53 = vld [vmem:[%s8922_s1 + $0x30] sm:$0xff] }
 0x1b8   : > { %v1576_v15 = vadd.f32 %v1498_v2, %v1296_v56 }
 0x1b9   : > { %5887 = vmatmul.msk.bf16.gmra.mxu3 %vm361_vm1, %v9053_v16  ;;  %v1884_v41 = vpop.f32.mrf.mxu2 }
 0x1ba   : > { %v1808_v36 = vadd.f32 %v1730_v55, %v1576_v15  ;;  %5904 = vmatmul.msk.bf16.gmra.mxu0 %vm361_vm1, %v1381_v5  ;;  %v1383_v55 = vrot.slane %v9056_v40, 2 }
 0x1bc   : > { %v1228_v62 = vpop.f32.mrf.mxu3  ;;  %v7138_v59 = vadd.f32 %v1884_v41, %v1808_v36  ;;  %v1637_v41 = vsel %vm1606_vm4, %v1634_v37, %v1636_v60  ;;  %v1384_v36 = vor.u32 %v1383_v55, %v1382_v38 }
 0x1bd   : > { %v7144_v6 = vadd.f32 %v1228_v62, %v6914_v7  ;;  %v2620_v62 = vld [vmem:[%s8922_s1 + $0x10] sm:$0xff] }
 0x1be   : > { %9054 = vst [vmem:[#allocation33_spill] sm:$0xff] %v7138_v59  ;;  %2666 = vperm.xlu1 %6288, %v2620_v62   ;;  %v9060_v62 = vld [vmem:[#allocation8_spill] sm:$0xff] }
 0x1bf   : > { %v1500_v56 = vpop.f32.mrf.mxu0  ;;  %v1735_v5 = vpop.f32.mrf.mxu1  ;;  %2686 = vperm.xlu0 %6287, %v2624_v53   ;;  %v1386_v53 = vrot.slane %v9060_v62, 1 }
 0x1c0   : > { %v1577_v2 = vadd.f32 %v1500_v56, %v1297_v3 }
 0x1c1   : > { %v1886_v15 = vpop.f32.mrf.mxu2 }
 0x1c2   : > { %v1809_v16 = vadd.f32 %v1732_v44, %v1577_v2  ;;  %5924 = vmatmul.msk.bf16.gmra.mxu1 %vm361_vm1, %v1635_v45  ;;  %v1385_v45 = vsel %vm1326_vm5, %v1380_v11, %v1384_v36 }
 0x1c4   : > { %v1230_v59 = vpop.f32.mrf.mxu3  ;;  %v7151_v7 = vadd.f32 %v1886_v15, %v1809_v16  ;;  %v6298_v15 = vld [vmem:[%s6435_s26 + $0x88] sm:$0xff]  }
 0x1c5   : > { %v7160_v3 = vadd.f32 %v1230_v59, %v6923_v4  ;;  %v2621_v59 = vld [vmem:[%s8922_s1 + $0x18] sm:$0xff]  ;;  %v1638_v16 = vrot.slane %v6298_v15, 2 }
 0x1c6   : > { %9057 = vst [vmem:[#allocation28_spill] sm:$0xff] %v7151_v7  ;;  %5943 = vmatmul.msk.bf16.gmra.mxu2 %vm361_vm1, %v1637_v41  ;;  %2671 = vperm.xlu1 %6288, %v2621_v59  }
 0x1c7   : > { %v1503_v37 = vpop.f32.mrf.mxu0  ;;  %v1737_v56 = vpop.f32.mrf.mxu1 }
 0x1c8   : > { %v1578_v44 = vadd.f32 %v1503_v37, %v1298_v54  ;;  %v2627_v54 = vld [vmem:[%s8922_s1 + $0x48] sm:$0xff]  ;;  %v9061_v37 = vld [vmem:[#allocation7_spill] sm:$0xff] }
 0x1c9   : > { %5888 = vmatmul.msk.bf16.gmra.mxu3 %vm361_vm1, %v9058_v43  ;;  %v1889_v38 = vpop.f32.mrf.mxu2  ;;  %2701 = vperm.xlu0 %6287, %v2627_v54  }
 0x1ca   : > { %v1810_v55 = vadd.f32 %v1735_v5, %v1578_v44  ;;  %5905 = vmatmul.msk.bf16.gmra.mxu0 %vm361_vm1, %v1385_v45  ;;  %v1387_v45 = vrot.slane %v9061_v37, 2 }
 0x1cc   : > { %v1233_v2 = vpop.f32.mrf.mxu3  ;;  %v7167_v4 = vadd.f32 %v1889_v38, %v1810_v55 }
 0x1cd   : > { %v7176_v11 = vadd.f32 %v1233_v2, %v6934_v17  ;;  %v1639_v17 = vsel %vm1606_vm4, %v1636_v60, %v1638_v16  ;;  %v1388_v2 = vor.u32 %v1387_v45, %v1386_v53  ;;  %v9063_v60 = vld [vmem:[#allocation25_spill] sm:$0xff]  ;;  %v7203_v45 = vld [vmem:[%s6435_s26 + $0x98] sm:$0xff]  }
 0x1ce   : > { %9059 = vst [vmem:[#allocation29_spill] sm:$0xff] %v7167_v4  ;;  %v7182_v4 = vld [vmem:[%s6435_s26 + $0x90] sm:$0xff]  }
 0x1cf   : > { %v1505_v5 = vpop.f32.mrf.mxu0  ;;  %v1740_v43 = vpop.f32.mrf.mxu1  ;;  %v1176_v7 = vrot.slane %v7182_v4, 1  ;;  %v1389_v53 = vsel %vm1326_vm5, %v1384_v36, %v1388_v2  ;;  %v2628_v36 = vld [vmem:[%s8922_s1 + $0x50] sm:$0xff] }
 0x1d0   : > { %v1579_v44 = vadd.f32 %v1505_v5, %v1299_v49  ;;  %v2625_v49 = vld [vmem:[%s8922_s1 + $0x38] sm:$0xff] }
 0x1d1   : > { %v1891_v38 = vpop.f32.mrf.mxu2  ;;  %2691 = vperm.xlu1 %6288, %v2625_v49   ;;  %v1177_v15 = vsel %vm940_vm2, %v9063_v60, %v1176_v7 }
 0x1d2   : > { %v1811_v55 = vadd.f32 %v1737_v56, %v1579_v44  ;;  %5925 = vmatmul.msk.bf16.gmra.mxu1 %vm361_vm1, %v1637_v41  ;;  %v2630_v56 = vld [vmem:[%s8922_s1 + $0x60] sm:$0xff] }
 0x1d3   : > { %2716 = vperm.xlu0 %6287, %v2630_v56  }
 0x1d4   : > { %v1235_v59 = vpop.f32.mrf.mxu3  ;;  %v7187_v54 = vadd.f32 %v1891_v38, %v1811_v55 }
 0x1d5   : > { %v7196_v5 = vadd.f32 %v1235_v59, %v6943_v21  ;;  %v7211_v59 = vunpack.c.l.bf16 %v7203_v45 }
 0x1d6   : > { %9062 = vst [vmem:[#allocation30_spill] sm:$0xff] %v7187_v54  ;;  %5944 = vmatmul.msk.bf16.gmra.mxu2 %vm361_vm1, %v1639_v17  ;;  %v2631_v54 = vld [vmem:[%s8922_s1 + $0x68] sm:$0xff] }
 0x1d7   : > { %v1508_v41 = vpop.f32.mrf.mxu0  ;;  %v7206_v38 = vpop.f32.mrf.mxu1  ;;  %9065 = vst [vmem:[#allocation32_spill] sm:$0xff] %v7211_v59 }
 0x1d8   : > { %v1580_v44 = vadd.f32 %v1508_v41, %v7144_v6  ;;  %9064 = vst [vmem:[#allocation23_spill] sm:$0xff] %v7206_v38  ;;  %v2633_v6 = vld [vmem:[%s8922_s1 + $0x78] sm:$0xff]  ;;  %v7229_v41 = vrot.slane %v7182_v4, 2 }
 0x1d9   : > { %5889 = vmatmul.msk.bf16.gmra.mxu3 %vm361_vm1, %v1177_v15  ;;  %v1894_v21 = vpop.f32.mrf.mxu2  ;;  %2706 = vperm.xlu1 %6288, %v2628_v36  }
 0x1da   : > { %v1812_v55 = vadd.f32 %v1740_v43, %v1580_v44  ;;  %5906 = vmatmul.msk.bf16.gmra.mxu0 %vm361_vm1, %v1389_v53  ;;  %v7226_v43 = vpack.c.bf16 %v7211_v59, %v7211_v59  ;;  %v9067_v53 = vld [vmem:[#allocation12_spill] sm:$0xff]  ;;  %v1641_v36 = vsel %vm1606_vm4, %v1638_v16, %v7229_v41 }
 0x1db   : > { %2731 = vperm.xlu0 %6287, %v2633_v6   ;;  %v1390_v44 = vrot.slane %v9067_v53, 1 }
 0x1dc   : > { %v1238_v49 = vpop.f32.mrf.mxu3  ;;  %v7213_v56 = vadd.f32 %v1894_v21, %v1812_v55  ;;  %v9068_v21 = vld [vmem:[#allocation9_spill] sm:$0xff] }
 0x1dd   : > { %v7222_v60 = vadd.f32 %v1238_v49, %v6954_v30  ;;  %v1391_v55 = vrot.slane %v9068_v21, 2  ;;  %v1178_v49 = vrot.slane %v7226_v43, 1 }
 0x1de   : > { %9066 = vst [vmem:[#allocation34_spill] sm:$0xff] %v7213_v56 }
 0x1df   : > { %v1510_v15 = vpop.f32.mrf.mxu0  ;;  %v1745_v56 = vpop.f32.mrf.mxu1  ;;  %v1392_v6 = vor.u32 %v1391_v55, %v1390_v44 }
 0x1e0   : > { %v7234_v38 = vadd.f32 %v1510_v15, %v7160_v3  ;;  %v2636_v3 = vld [vmem:[%s8922_s1 + $0x90] sm:$0xff] }
 0x1e1   : > { %v7236_v30 = vpop.f32.mrf.mxu2  ;;  %2721 = vperm.xlu1 %6288, %v2631_v54  }
 0x1e2   : > { %9069 = vst [vmem:[#allocation35_spill] sm:$0xff] %v7234_v38  ;;  %5926 = vmatmul.msk.bf16.gmra.mxu1 %vm361_vm1, %v1639_v17  ;;  %v1393_v17 = vsel %vm1326_vm5, %v1388_v2, %v1392_v6  ;;  %v2622_v2 = vld [vmem:[%s8922_s1 + $0x20] sm:$0xff] }
 0x1e3   : > { %9070 = vst [vmem:[#allocation31_spill] sm:$0xff] %v7236_v30  ;;  %2746 = vperm.xlu0 %6287, %v2636_v3   ;;  %v1179_v30 = vsel %vm940_vm2, %v1176_v7, %v1178_v49  ;;  %2676 = vperm.xlu2 %6289, %v2622_v2   ;;  %v1996_v49 = vrot.slane %v6555_v0, 2  ;;  %v9071_v3 = vld [vmem:[#allocation10_spill] sm:$0xff] }
 0x1e4   : > { %v1240_v59 = vpop.f32.mrf.mxu3 }
 0x1e5   : > { %v7249_v15 = vadd.f32 %v1240_v59, %v6963_v33  ;;  %v8980_v33 = vshrl.u32 %v7182_v4, 16 }
 0x1e6   : > { %5945 = vmatmul.msk.bf16.gmra.mxu2 %vm361_vm1, %v1641_v36 }
 0x1e7   : > { %v1513_v16 = vpop.f32.mrf.mxu0  ;;  %v7255_v55 = vpop.f32.mrf.mxu1  ;;  %v1397_v54 = vrot.slane %v8980_v33, 1 }
 0x1e8   : > { %v1582_v44 = vadd.f32 %v1513_v16, %v7176_v11  ;;  %v2634_v11 = vld [vmem:[%s8922_s1 + $0x80] sm:$0xff]  ;;  %v1997_v16 = vrot.slane %v9071_v3, 3 }
 0x1e9   : > { %5890 = vmatmul.msk.bf16.gmra.mxu3 %vm361_vm1, %v1179_v30  ;;  %v1899_v38 = vpop.f32.mrf.mxu2  ;;  %2736 = vperm.xlu1 %6288, %v2634_v11  }
 0x1ea   : > { %v1814_v21 = vadd.f32 %v1745_v56, %v1582_v44  ;;  %5907 = vmatmul.msk.bf16.gmra.mxu0 %vm361_vm1, %v1393_v17  ;;  %v2639_v56 = vld [vmem:[%s8922_s1 + $0xa8] sm:$0xff]  ;;  %v1842_v44 = vrot.slane %v7203_v45, 2  ;;  %v1998_v11 = vor.u32 %v1997_v16, %v1996_v49  ;;  %v411_v45 = vld [vmem:[%s6435_s26 + $0xa0] sm:$0xf] }
 0x1eb   : > { %2761 = vperm.xlu0 %6287, %v2639_v56   ;;  %v452_v16 = vunpack.c.l.bf16 %v411_v45  ;;  %v2645_v45 = vld [vmem:[%s8922_s1 + $0xd8] sm:$0xff] }
 0x1ec   : > { %v1243_v7 = vpop.f32.mrf.mxu3  ;;  %v7261_v59 = vadd.f32 %v1899_v38, %v1814_v21  ;;  %v1993_v38 = vrot.slane %v6519_v48, 2  ;;  %v1994_v21 = vrot.slane %v6487_v35, 3  ;;  %v1843_v56 = vsel %vm1606_vm4, %v7229_v41, %v1842_v44 }
 0x1ed   : > { %v7273_v30 = vadd.f32 %v1243_v7, %v6974_v46  ;;  %v9072_v46 = vshll.u32 %v7182_v4, 16 }
 0x1ee   : > { %v1995_v0 = vor.u32 %v1994_v21, %v1993_v38  ;;  %v2642_v38 = vld [vmem:[%s8922_s1 + $0xc0] sm:$0xff] }
 0x1ef   : > { %v1515_v17 = vpop.f32.mrf.mxu0  ;;  %v1400_v7 = vrot.slane %v9072_v46, 2  ;;  %v1750_v48 = vpop.f32.mrf.mxu1  ;;  %v2623_v46 = vld [vmem:[%s8922_s1 + $0x28] sm:$0xff] }
 0x1f0   : > { %v7285_v2 = vadd.f32 %v1515_v17, %v7196_v5  ;;  %v2637_v5 = vld [vmem:[%s8922_s1 + $0x98] sm:$0xff]  ;;  %2681 = vperm.xlu2 %6289, %v2623_v46  }
 0x1f1   : > { %v7287_v35 = vpop.f32.mrf.mxu2  ;;  %v1401_v3 = vor.u32 %v1400_v7, %v1397_v54  ;;  %2751 = vperm.xlu1 %6288, %v2637_v5  }
 0x1f2   : > { %9073 = vst [vmem:[#allocation37_spill] sm:$0xff] %v7287_v35  ;;  %5927 = vmatmul.msk.bf16.gmra.mxu1 %vm361_vm1, %v1641_v36  ;;  %v1999_v36 = vsel %vm1992_vm6, %v1995_v0, %v1998_v11  ;;  %v1407_v0 = vshll.u32 %v7226_v43, 16 }
 0x1f3   : > { %2776 = vperm.xlu0 %6287, %v2642_v38   ;;  %v1402_v49 = vsel %vm1326_vm5, %v1392_v6, %v1401_v3  ;;  %v1642_v6 = vrot.slane %v7226_v43, 2 }
 0x1f4   : > { %v1245_v33 = vpop.f32.mrf.mxu3 }
 0x1f5   : > { %v7303_v21 = vadd.f32 %v1245_v33, %v6983_v50  ;;  %v7313_v33 = vpack.c.bf16 %v452_v16, %v452_v16  ;;  %v1409_v16 = vrot.slane %v1407_v0, 2 }
 0x1f6   : > { %5946 = vmatmul.msk.bf16.gmra.mxu2 %vm361_vm1, %v1843_v56  ;;  %v1404_v56 = vshrl.u32 %v7226_v43, 16  ;;  %v2001_v43 = vrot.slane %v6558_v1, 3 }
 0x1f7   : > { %v1518_v54 = vpop.f32.mrf.mxu0  ;;  %v7309_v7 = vpop.f32.mrf.mxu1 }
 0x1f8   : > { %v1584_v17 = vadd.f32 %v1518_v54, %v7222_v60  ;;  %v2626_v60 = vld [vmem:[%s8922_s1 + $0x40] sm:$0xff]  ;;  %v1844_v54 = vrot.slane %v7313_v33, 2 }
 0x1f9   : > { %5949 = vmatmul.msk.bf16.vlgmr.msra.gmra.mxu3 %vm361_vm1, %v1999_v36  ;;  %v1904_v35 = vpop.f32.mrf.mxu2  ;;  %2696 = vperm.xlu2 %6289, %v2626_v60  }
 0x1fa   : > { %v1816_v50 = vadd.f32 %v1750_v48, %v1584_v17  ;;  %5908 = vmatmul.msk.bf16.gmra.mxu0 %vm361_vm1, %v1402_v49  ;;  %v2640_v48 = vld [vmem:[%s8922_s1 + $0xb0] sm:$0xff]  ;;  %v1406_v49 = vrot.slane %v1404_v56, 1  ;;  %v2629_v56 = vld [vmem:[%s8922_s1 + $0x58] sm:$0xff] }
 0x1fb   : > { %2766 = vperm.xlu1 %6288, %v2640_v48   ;;  %2791 = vperm.xlu0 %6287, %v2645_v45  }
 0x1fc   : > { %v1248_v46 = vpop.f32.mrf.mxu3  ;;  %v7317_v5 = vadd.f32 %v1904_v35, %v1816_v50  ;;  %v2000_v35 = vrot.slane %v6579_v18, 2  ;;  %v1845_v18 = vsel %vm1606_vm4, %v1842_v44, %v1844_v54  ;;  %v1410_v48 = vor.u32 %v1409_v16, %v1406_v49 }
 0x1fd   : > { %v7330_v38 = vadd.f32 %v1248_v46, %v6994_v13  ;;  %v1643_v13 = vsel %vm1606_vm4, %v7229_v41, %v1642_v6  ;;  %v2648_v41 = vld [vmem:[%s8922_s1 + $0xf0] sm:$0xff] }
 0x1fe   : > { %v2002_v60 = vor.u32 %v2001_v43, %v2000_v35  ;;  %v1411_v45 = vsel %vm1326_vm5, %v1401_v3, %v1410_v48  ;;  %v2646_v3 = vld [vmem:[%s8922_s1 + $0xe0] sm:$0xff] }
 0x1ff   : > { %v1520_v36 = vpop.f32.mrf.mxu0  ;;  %v1755_v50 = vpop.f32.mrf.mxu1 }
 0x200   : > { %v7336_v17 = vadd.f32 %v1520_v36, %v7249_v15  ;;  %v2643_v15 = vld [vmem:[%s8922_s1 + $0xc8] sm:$0xff]  ;;  %v2003_v44 = vsel %vm1992_vm6, %v1998_v11, %v2002_v60  ;;  %v2632_v11 = vld [vmem:[%s8922_s1 + $0x70] sm:$0xff] }
 0x201   : > { %v7340_v46 = vpop.f32.mrf.mxu2  ;;  %2711 = vperm.xlu2 %6289, %v2629_v56   ;;  %v2960_v56 = vld [vmem:[%s8926_s5] sm:$0xf] }
 0x202   : > { %5928 = vmatmul.msk.bf16.gmra.mxu1 %vm361_vm1, %v1643_v13  ;;  %v2005_v13 = vrot.slane %v6582_v19, 3 }
 0x203   : > { %2781 = vperm.xlu1 %6288, %v2643_v15   ;;  %2806 = vperm.xlu0 %6287, %v2648_v41  }
 0x204   : > { %v1250_v1 = vpop.f32.mrf.mxu3 }
 0x205   : > { %v7354_v0 = vadd.f32 %v1250_v1, %v7003_v63 }
 0x206   : > { %5947 = vmatmul.msk.bf16.gmra.mxu2 %vm361_vm1, %v1845_v18 }
 0x207   : > { %v1523_v6 = vpop.f32.mrf.mxu0  ;;  %v7360_v43 = vpop.f32.mrf.mxu1 }
 0x208   : > { %v1586_v35 = vadd.f32 %v1523_v6, %v7273_v30  ;;  %v2651_v30 = vld [vmem:[%s8922_s1 + $0x108] sm:$0xff]  ;;  %v6301_v6 = vld [vmem:[%s6435_s26 + $0x18] sm:$0xff]  }
 0x209   : > { %5950 = vmatmul.msk.bf16.gmra.mxu3 %vm361_vm1, %v2003_v44  ;;  %v1909_v36 = vpop.f32.mrf.mxu2  ;;  %2726 = vperm.xlu2 %6289, %v2632_v11   ;;  %v6300_v44 = vld [vmem:[%s6435_s26 + $0x10] sm:$0xff]   ;;  %v2274_v19 = vrot.slane %v6301_v6, 3 }
 0x20a   : > { %v1818_v54 = vadd.f32 %v1755_v50, %v1586_v35  ;;  %5909 = vmatmul.msk.bf16.gmra.mxu0 %vm361_vm1, %v1411_v45  ;;  %v2004_v50 = vrot.slane %v6602_v27, 2  ;;  %v2273_v27 = vrot.slane %v6300_v44, 3  ;;  %v2649_v35 = vld [vmem:[%s8922_s1 + $0xf8] sm:$0xff] }
 0x20b   : > { %2796 = vperm.xlu1 %6288, %v2646_v3   ;;  %2821 = vperm.xlu0 %6287, %v2651_v30  }
 0x20c   : > { %v1253_v63 = vpop.f32.mrf.mxu3  ;;  %v7364_v49 = vadd.f32 %v1909_v36, %v1818_v54  ;;  %v2006_v41 = vor.u32 %v2005_v13, %v2004_v50  ;;  %v2275_v11 = vsel %vm2272_vm7, %v2273_v27, %v2274_v19 }
 0x20d   : > { %v1310_v16 = vadd.f32 %v1253_v63, %v7014_v31  ;;  %v3228_v31 = vsel %vm678_vm0, %v2960_v56, 0 }
 0x20e   : > { %3237 = vmatpush.bf16.msra.mxu2 %v3228_v31  ;;  %v2007_v54 = vsel %vm1992_vm6, %v2002_v60, %v2006_v41  ;;  %v2638_v60 = vld [vmem:[%s8922_s1 + $0xa0] sm:$0xff]  ;;  %v2009_v31 = vrot.slane %v6605_v28, 3 }
 0x20f   : > { %v1525_v18 = vpop.f32.mrf.mxu0  ;;  %v1760_v1 = vpop.f32.mrf.mxu1 }
 0x210   : > { %v7379_v48 = vadd.f32 %v1525_v18, %v7303_v21  ;;  %v2635_v21 = vld [vmem:[%s8922_s1 + $0x88] sm:$0xff] }
 0x211   : > { %v7384_v15 = vpop.f32.mrf.mxu2  ;;  %2741 = vperm.xlu2 %6289, %v2635_v21  }
 0x213   : > { %2811 = vperm.xlu1 %6288, %v2649_v35   ;;  %v6302_v35 = vld [vmem:[%s6435_s26 + $0x20] sm:$0xff]  }
 0x214   : > { %v1255_v45 = vpop.f32.mrf.mxu3 }
 0x215   : > { %v1311_v36 = vadd.f32 %v1255_v45, %v7023_v39 }
 0x217   : > { %v1528_v63 = vpop.f32.mrf.mxu0  ;;  %v7399_v30 = vpop.f32.mrf.mxu1 }
 0x218   : > { %v1588_v3 = vadd.f32 %v1528_v63, %v7330_v38  ;;  %v2652_v38 = vld [vmem:[%s8922_s1 + $0x110] sm:$0xff] }
 0x219   : > { %5951 = vmatmul.msk.bf16.gmra.mxu3 %vm361_vm1, %v2007_v54  ;;  %v1914_v50 = vpop.f32.mrf.mxu2  ;;  %2756 = vperm.xlu2 %6289, %v2638_v60   ;;  %v2276_v54 = vrot.slane %v6302_v35, 3 }
 0x21a   : > { %v1820_v13 = vadd.f32 %v1760_v1, %v1588_v3  ;;  %5968 = vmatmul.msk.bf16.vlgmr.msra.gmra.mxu0 %vm361_vm1, %v2275_v11  ;;  %v2008_v1 = vrot.slane %v6625_v42, 2 }
 0x21b   : > { %2826 = vperm.xlu1 %6288, %v2652_v38  }
 0x21c   : > { %v1258_v18 = vpop.f32.mrf.mxu3  ;;  %v7403_v39 = vadd.f32 %v1914_v50, %v1820_v13  ;;  %v2010_v21 = vor.u32 %v2009_v31, %v2008_v1 }
 0x21d   : > { %v1312_v56 = vadd.f32 %v1258_v18, %v7034_v12  ;;  %v2641_v12 = vld [vmem:[%s8922_s1 + $0xb8] sm:$0xff] }
 0x21e   : > { %v2011_v28 = vsel %vm1992_vm6, %v2006_v41, %v2010_v21 }
 0x21f   : > { %v1530_v44 = vpop.f32.mrf.mxu0  ;;  %v1765_v6 = vpop.f32.mrf.mxu1 }
 0x220   : > { %v7415_v27 = vadd.f32 %v1530_v44, %v7354_v0  ;;  %v2277_v0 = vsel %vm2272_vm7, %v2274_v19, %v2276_v54  ;;  %v2013_v19 = vrot.slane %v6628_v47, 3 }
 0x221   : > { %v7417_v45 = vpop.f32.mrf.mxu2  ;;  %2771 = vperm.xlu2 %6289, %v2641_v12  }
 0x224   : > { %v1260_v63 = vpop.f32.mrf.mxu3 }
 0x225   : > { %v1313_v11 = vadd.f32 %v1260_v63, %v7041_v8  ;;  %v2644_v8 = vld [vmem:[%s8922_s1 + $0xd0] sm:$0xff]  ;;  %v6303_v63 = vld [vmem:[%s6435_s26 + $0x28] sm:$0xff]  }
 0x226   : > { %v2278_v12 = vrot.slane %v6303_v63, 3 }
 0x227   : > { %v1533_v42 = vpop.f32.mrf.mxu0  ;;  %v7426_v50 = vpop.f32.mrf.mxu1 }
 0x228   : > { %v1590_v3 = vadd.f32 %v1533_v42, %v1310_v16  ;;  %v2012_v16 = vrot.slane %v6648_v58, 2  ;;  %v2647_v42 = vld [vmem:[%s8922_s1 + $0xe8] sm:$0xff] }
 0x229   : > { %5952 = vmatmul.msk.bf16.gmra.mxu3 %vm361_vm1, %v2011_v28  ;;  %v1919_v13 = vpop.f32.mrf.mxu2  ;;  %2786 = vperm.xlu2 %6289, %v2644_v8  }
 0x22a   : > { %v1822_v18 = vadd.f32 %v1765_v6, %v1590_v3  ;;  %5969 = vmatmul.msk.bf16.gmra.mxu0 %vm361_vm1, %v2277_v0  ;;  %v2014_v35 = vor.u32 %v2013_v19, %v2012_v16 }
 0x22c   : > { %v1263_v60 = vpop.f32.mrf.mxu3  ;;  %v7430_v38 = vadd.f32 %v1919_v13, %v1822_v18  ;;  %v2015_v58 = vsel %vm1992_vm6, %v2010_v21, %v2014_v35 }
 0x22d   : > { %v1314_v41 = vadd.f32 %v1263_v60, %v7054_v24 }
 0x22f   : > { %v1535_v1 = vpop.f32.mrf.mxu0  ;;  %v1770_v44 = vpop.f32.mrf.mxu1 }
 0x230   : > { %v7438_v31 = vadd.f32 %v1535_v1, %v1311_v36  ;;  %v2279_v36 = vsel %vm2272_vm7, %v2276_v54, %v2278_v12  ;;  %v9075_v54 = vld [vmem:[#allocation13_spill] sm:$0xff] }
 0x231   : > { %v7440_v6 = vpop.f32.mrf.mxu2  ;;  %2801 = vperm.xlu2 %6289, %v2647_v42   ;;  %v2017_v16 = vrot.slane %v9075_v54, 3  ;;  %v6304_v42 = vld [vmem:[%s6435_s26 + $0x30] sm:$0xff]  }
 0x234   : > { %v1265_v28 = vpop.f32.mrf.mxu3 }
 0x235   : > { %v1315_v24 = vadd.f32 %v1265_v28, %v7061_v23  ;;  %v2650_v23 = vld [vmem:[%s8922_s1 + $0x100] sm:$0xff] }
 0x237   : > { %v1538_v47 = vpop.f32.mrf.mxu0  ;;  %v7449_v3 = vpop.f32.mrf.mxu1 }
 0x238   : > { %v1592_v0 = vadd.f32 %v1538_v47, %v1312_v56  ;;  %9074 = vst [vmem:[#allocation36_spill] sm:$0xff] %v7449_v3  ;;  %v2016_v56 = vrot.slane %v6675_v22, 2 }
 0x239   : > { %5953 = vmatmul.msk.bf16.gmra.mxu3 %vm361_vm1, %v2015_v58  ;;  %v1924_v13 = vpop.f32.mrf.mxu2  ;;  %2816 = vperm.xlu2 %6289, %v2650_v23   ;;  %v2280_v58 = vrot.slane %v6304_v42, 3 }
 0x23a   : > { %v1824_v18 = vadd.f32 %v1770_v44, %v1592_v0  ;;  %5970 = vmatmul.msk.bf16.gmra.mxu0 %vm361_vm1, %v2279_v36  ;;  %v2018_v28 = vor.u32 %v2017_v16, %v2016_v56  ;;  %v2653_v36 = vld [vmem:[%s8922_s1 + $0x118] sm:$0xff] }
 0x23c   : > { %v1268_v60 = vpop.f32.mrf.mxu3  ;;  %v7453_v8 = vadd.f32 %v1924_v13, %v1824_v18  ;;  %v2019_v22 = vsel %vm1992_vm6, %v2014_v35, %v2018_v28 }
 0x23d   : > { %v1316_v21 = vadd.f32 %v1268_v60, %v6958_v57  ;;  %v9077_v57 = vld [vmem:[#allocation38_spill] sm:$0xff] }
 0x23f   : > { %v1540_v19 = vpop.f32.mrf.mxu0  ;;  %v1775_v44 = vpop.f32.mrf.mxu1 }
 0x240   : > { %v7461_v1 = vadd.f32 %v1540_v19, %v1313_v11  ;;  %v2281_v11 = vsel %vm2272_vm7, %v2278_v12, %v2280_v58  ;;  %v9080_v19 = vld [vmem:[#allocation39_spill] sm:$0xff] }
 0x241   : > { %v7463_v63 = vpop.f32.mrf.mxu2  ;;  %2831 = vperm.xlu2 %6289, %v2653_v36   ;;  %v9082_v36 = vld [vmem:[#allocation14_spill] sm:$0xff] }
 0x242   : > { %9076 = vst [vmem:[#allocation15_spill] sm:$0xff] %v7463_v63  ;;  %v6305_v63 = vld [vmem:[%s6435_s26 + $0x38] sm:$0xff]  }
 0x244   : > { %v1270_v47 = vpop.f32.mrf.mxu3 }
 0x245   : > { %v1317_v0 = vadd.f32 %v1270_v47, %v9077_v57  ;;  %v9081_v47 = vld [vmem:[#allocation16_spill] sm:$0xff]  ;;  %v2021_v57 = vrot.slane %v9082_v36, 3 }
 0x246   : > { %v2020_v35 = vrot.slane %v9081_v47, 2 }
 0x247   : > { %v1543_v13 = vpop.f32.mrf.mxu0  ;;  %v7472_v60 = vpop.f32.mrf.mxu1 }
 0x248   : > { %v1594_v18 = vadd.f32 %v1543_v13, %v1314_v41  ;;  %9078 = vst [vmem:[#allocation4_spill] sm:$0xff] %v7472_v60 }
 0x249   : > { %5954 = vmatmul.msk.bf16.gmra.mxu3 %vm361_vm1, %v2019_v22  ;;  %v1929_v23 = vpop.f32.mrf.mxu2  ;;  %v2022_v22 = vor.u32 %v2021_v57, %v2020_v35  ;;  %v9087_v57 = vld [vmem:[#allocation41_spill] sm:$0xff] }
 0x24a   : > { %v1826_v56 = vadd.f32 %v1775_v44, %v1594_v18  ;;  %5971 = vmatmul.msk.bf16.gmra.mxu0 %vm361_vm1, %v2281_v11  ;;  %v2282_v44 = vrot.slane %v6305_v63, 3  ;;  %v9085_v11 = vld [vmem:[#allocation40_spill] sm:$0xff] }
 0x24c   : > { %v1273_v54 = vpop.f32.mrf.mxu3  ;;  %v7476_v16 = vadd.f32 %v1929_v23, %v1826_v56  ;;  %v2023_v23 = vsel %vm1992_vm6, %v2018_v28, %v2022_v22 }
 0x24d   : > { %v1318_v42 = vadd.f32 %v1273_v54, %v9080_v19  ;;  %v2283_v54 = vsel %vm2272_vm7, %v2280_v58, %v2282_v44 }
 0x24e   : > { %9079 = vst [vmem:[#allocation3_spill] sm:$0xff] %v7476_v16 }
 0x24f   : > { %v1545_v12 = vpop.f32.mrf.mxu0  ;;  %v1780_v13 = vpop.f32.mrf.mxu1 }
 0x250   : > { %v7481_v41 = vadd.f32 %v1545_v12, %v1315_v24 }
 0x251   : > { %v7483_v60 = vpop.f32.mrf.mxu2 }
 0x252   : > { %9083 = vst [vmem:[#allocation19_spill] sm:$0xff] %v7481_v41  ;;  %v6306_v41 = vld [vmem:[%s6435_s26 + $0x40] sm:$0xff]  }
 0x253   : > { %9084 = vst [vmem:[#allocation6_spill] sm:$0xff] %v7483_v60 }
 0x254   : > { %v1275_v18 = vpop.f32.mrf.mxu3 }
 0x255   : > { %v1319_v3 = vadd.f32 %v1275_v18, %v9085_v11  ;;  %v9088_v18 = vld [vmem:[#allocation22_spill] sm:$0xff]  ;;  %v9089_v11 = vld [vmem:[#allocation17_spill] sm:$0xff] }
 0x256   : > { %v2024_v28 = vrot.slane %v9088_v18, 2  ;;  %v2025_v60 = vrot.slane %v9089_v11, 3 }
 0x257   : > { %v1548_v56 = vpop.f32.mrf.mxu0  ;;  %v7489_v47 = vpop.f32.mrf.mxu1 }
 0x258   : > { %v1596_v19 = vadd.f32 %v1548_v56, %v1316_v21  ;;  %9086 = vst [vmem:[#allocation5_spill] sm:$0xff] %v7489_v47 }
 0x259   : > { %5955 = vmatmul.msk.bf16.gmra.mxu3 %vm361_vm1, %v2023_v23  ;;  %v1934_v24 = vpop.f32.mrf.mxu2  ;;  %v2026_v23 = vor.u32 %v2025_v60, %v2024_v28 }
 0x25a   : > { %v1828_v36 = vadd.f32 %v1780_v13, %v1596_v19  ;;  %5972 = vmatmul.msk.bf16.gmra.mxu0 %vm361_vm1, %v2283_v54  ;;  %v2284_v13 = vrot.slane %v6306_v41, 3  ;;  %v9090_v54 = vld [vmem:[#allocation42_spill] sm:$0xff]  ;;  %v6349_v41 = vmov 0.0  }
 0x25b   : > { %362 = vst.msk [vmem:[#allocation2] sm:$0xff] %vm361_vm1, %v6349_v41 }
 0x25c   : > { %v1278_v35 = vpop.f32.mrf.mxu3  ;;  %v7493_v63 = vadd.f32 %v1934_v24, %v1828_v36  ;;  %v2027_v24 = vsel %vm1992_vm6, %v2022_v22, %v2026_v23  ;;  %v9092_v22 = vld [vmem:[#allocation43_spill] sm:$0xff]  ;;  %363 = vst.msk [vmem:[#allocation2 + $0x8] sm:$0xff] %vm361_vm1, %v6349_v41 }
 0x25d   : > { %v1320_v12 = vadd.f32 %v1278_v35, %v9087_v57  ;;  %v2285_v35 = vsel %vm2272_vm7, %v2282_v44, %v2284_v13  ;;  %v2029_v44 = vrot.slane %v9039_v61, 3  ;;  %366 = vst.msk [vmem:[#allocation2 + $0x133] sm:$0xff] %vm361_vm1, %v6349_v41 }
 0x25e   : > { %367 = vst.msk [vmem:[#allocation2 + $0x13b] sm:$0xff] %vm361_vm1, %v6349_v41 }
 0x25f   : > { %v1550_v58 = vpop.f32.mrf.mxu0  ;;  %v1785_v56 = vpop.f32.mrf.mxu1  ;;  %368 = vst.msk [vmem:[#allocation2 + $0x143] sm:$0xff] %vm361_vm1, %v6349_v41 }
 0x260   : > { %v7498_v21 = vadd.f32 %v1550_v58, %v1317_v0  ;;  %365 = vst.msk [vmem:[#allocation2 + $0x10] sm:$0x7] %vm364_vm8, %v6349_v41 }
 0x261   : > { %v7500_v47 = vpop.f32.mrf.mxu2 }
 0x263   : > { %v2907_v61 = vld [vmem:[#allocation2 + $0x8] sm:$0xff] }
 0x264   : > { %v1280_v19 = vpop.f32.mrf.mxu3 }
 0x265   : > { %v1321_v16 = vadd.f32 %v1280_v19, %v9090_v54 }
 0x267   : > { %v1553_v36 = vpop.f32.mrf.mxu0  ;;  %v7507_v0 = vpop.f32.mrf.mxu1 }
 0x268   : > { %v1598_v57 = vadd.f32 %v1553_v36, %v1318_v42  ;;  %9091 = vst [vmem:[#allocation27_spill] sm:$0xff] %v7507_v0  ;;  %v2028_v42 = vrot.slane %v9038_v26, 2  ;;  %v2906_v26 = vld [vmem:[#allocation2] sm:$0xff] }
 0x269   : > { %5956 = vmatmul.msk.bf16.gmra.mxu3 %vm361_vm1, %v2027_v24  ;;  %v1939_v18 = vpop.f32.mrf.mxu2 }
 0x26a   : > { %v1830_v11 = vadd.f32 %v1785_v56, %v1598_v57  ;;  %5973 = vmatmul.msk.bf16.gmra.mxu0 %vm361_vm1, %v2285_v35  ;;  %v2030_v24 = vor.u32 %v2029_v44, %v2028_v42  ;;  %v6307_v35 = vld [vmem:[%s6435_s26 + $0x48] sm:$0xff]  }
 0x26b   : > { %v2286_v57 = vrot.slane %v6307_v35, 3  ;;  %v2961_v42 = vld [vmem:[#allocation2 + $0x1] sm:$0xff]  ;;  %v2962_v44 = vld [vmem:[#allocation2 + $0x9] sm:$0xff] }
 0x26c   : > { %v1283_v60 = vpop.f32.mrf.mxu3  ;;  %v7510_v28 = vadd.f32 %v1939_v18, %v1830_v11  ;;  %v9095_v11 = vld [vmem:[#allocation44_spill] sm:$0xff] }
 0x26d   : > { %v1322_v58 = vadd.f32 %v1283_v60, %v9092_v22  ;;  %v2942_v22 = vpack.c.bf16 %v2907_v61, %v2906_v26  ;;  %v2287_v0 = vsel %vm2272_vm7, %v2284_v13, %v2286_v57  ;;  %v2032_v13 = vrot.slane %v9043_v9, 2 }
 0x26f   : > { %v1555_v19 = vpop.f32.mrf.mxu0  ;;  %v1790_v36 = vpop.f32.mrf.mxu1  ;;  %6005 = vmatmul.msk.bf16.vlgmr.msra.gmra.mxu2 %vm361_vm1, %v2942_v22 }
 0x270   : > { %v7518_v56 = vadd.f32 %v1555_v19, %v1319_v3  ;;  %v2031_v3 = vsel %vm1992_vm6, %v2026_v23, %v2030_v24 }
 0x271   : > { %v7521_v54 = vpop.f32.mrf.mxu2 }
 0x272   : > { %9093 = vst [vmem:[#allocation8_spill] sm:$0xff] %v7518_v56  ;;  %v2997_v56 = vpack.c.bf16 %v2962_v44, %v2961_v42 }
 0x273   : > { %9094 = vst [vmem:[#allocation7_spill] sm:$0xff] %v7521_v54 }
 0x274   : > { %v1285_v18 = vpop.f32.mrf.mxu3  ;;  %5987 = vmatmul.msk.bf16.vlgmr.msra.gmra.mxu1 %vm361_vm1, %v2997_v56 }
 0x275   : > { %v1323_v60 = vadd.f32 %v1285_v18, %v9095_v11 }
 0x277   : > { %v1558_v19 = vpop.f32.mrf.mxu0  ;;  %v7534_v23 = vpop.f32.mrf.mxu1 }
 0x278   : > { %v1600_v54 = vadd.f32 %v1558_v19, %v1320_v12  ;;  %v2033_v12 = vrot.slane %v9044_v10, 3 }
 0x279   : > { %5957 = vmatmul.msk.bf16.gmra.mxu3 %vm361_vm1, %v2031_v3  ;;  %v1944_v41 = vpop.f32.mrf.mxu2 }
 0x27a   : > { %v1832_v35 = vadd.f32 %v1790_v36, %v1600_v54  ;;  %5974 = vmatmul.msk.bf16.gmra.mxu0 %vm361_vm1, %v2287_v0  ;;  %v2034_v54 = vor.u32 %v2033_v12, %v2032_v13  ;;  %v6023_v0 = vld [vmem:[%s8926_s5 + $0x8] sm:$0xf]  ;;  %v6308_v36 = vld [vmem:[%s6435_s26 + $0x50] sm:$0xff]   ;;  %v6042_v13 = vld [vmem:[%s8926_s5 + $0xc] sm:$0xf] }
 0x27b   : > { %v2288_v3 = vrot.slane %v6308_v36, 3  ;;  %v3440_v56 = vsel %vm678_vm0, %v6023_v0, 0  ;;  %v3688_v12 = vsel %vm678_vm0, %v6042_v13, 0  ;;  %v2036_v0 = vrot.slane %v6869_v14, 2 }
 0x27c   : > { %v7531_v18 = vadd.f32 %v1944_v41, %v1832_v35  ;;  %v2144_v26 = vpop.f32.mrf.mxu3  ;;  %3449 = vmatpush.bf16.msrb.mxu3 %v3440_v56  ;;  %v2035_v9 = vsel %vm1992_vm6, %v2030_v24, %v2034_v54  ;;  %v6061_v24 = vld [vmem:[%s8926_s5 + $0x10] sm:$0xf]  ;;  %3697 = vmatpush.bf16.msrb.mxu0 %v3688_v12  ;;  %v2037_v36 = vrot.slane %v9048_v29, 3 }
 0x27f   : > { %v1560_v61 = vpop.f32.mrf.mxu0  ;;  %v1795_v10 = vpop.f32.mrf.mxu1 }
 0x280   : > { %v7538_v11 = vadd.f32 %v1560_v61, %v1321_v16  ;;  %v2289_v16 = vsel %vm2272_vm7, %v2286_v57, %v2288_v3  ;;  %v3936_v57 = vsel %vm678_vm0, %v6061_v24, 0 }
 0x281   : > { %v7540_v22 = vpop.f32.mrf.mxu2  ;;  %3945 = vmatpush.bf16.msrb.mxu1 %v3936_v57  ;;  %v9100_v57 = vld [vmem:[#allocation26_spill] sm:$0xff] }
 0x282   : > { %9096 = vst [vmem:[#allocation25_spill] sm:$0xff] %v7540_v22  ;;  %v9099_v22 = vld [vmem:[#allocation18_spill] sm:$0xff] }
 0x283   : > { %v2234_v13 = vadd.f32 %v2144_v26, %v9099_v22 }
 0x284   : > { %v2146_v19 = vpop.f32.mrf.mxu3 }
 0x287   : > { %v1563_v41 = vpop.f32.mrf.mxu0 }
 0x288   : > { %v1602_v42 = vadd.f32 %v1563_v41, %v1322_v58  ;;  %v2038_v41 = vor.u32 %v2037_v36, %v2036_v0  ;;  %v2235_v0 = vadd.f32 %v2146_v19, %v9100_v57  ;;  %v2040_v36 = vrot.slane %v9051_v32, 2 }
 0x289   : > { %5958 = vmatmul.msk.bf16.gmra.mxu3 %vm361_vm1, %v2035_v9  ;;  %v1949_v44 = vpop.f32.mrf.mxu2 }
 0x28a   : > { %v1834_v35 = vadd.f32 %v1795_v10, %v1602_v42  ;;  %5975 = vmatmul.msk.bf16.gmra.mxu0 %vm361_vm1, %v2289_v16  ;;  %v6309_v10 = vld [vmem:[%s6435_s26 + $0x58] sm:$0xff]  }
 0x28b   : > { %v2290_v16 = vrot.slane %v6309_v10, 3 }
 0x28c   : > { %v7559_v58 = vadd.f32 %v1949_v44, %v1834_v35  ;;  %v2149_v61 = vpop.f32.mrf.mxu3  ;;  %v7570_v44 = vld [vmem:[%s8924_s3] ss:$0 sm:$0xff]  ;;  %v2039_v35 = vsel %vm1992_vm6, %v2034_v54, %v2038_v41  ;;  %v2657_v54 = vpop.permute.xlu0 %2656 }
 0x28d   : > { %v2291_v14 = vsel %vm2272_vm7, %v2288_v3, %v2290_v16  ;;  %v2236_v19 = vadd.f32 %v2149_v61, %v7087_v51  ;;  %v2667_v61 = vpop.permute.xlu1 %2666 }
 0x28e   : > { %9097 = vst [vmem:[#allocation12_spill] sm:$0xff] %v7559_v58 }
 0x28f   : > { %v1565_v56 = vpop.f32.mrf.mxu0 }
 0x290   : > { %v7563_v9 = vadd.f32 %v1565_v56, %v1323_v60  ;;  %v7577_v60 = vld [vmem:[%s8925_s4] ss:$0 sm:$0xff]  ;;  %v2041_v56 = vrot.slane %v9052_v20, 3 }
 0x292   : > { %9098 = vst [vmem:[#allocation10_spill] sm:$0xff] %v7563_v9 }
 0x294   : > { %v2151_v42 = vpop.f32.mrf.mxu3  ;;  %v2662_v57 = vpop.permute.xlu0 %2661 }
 0x297   : > { %v2376_v24 = vpop.f32.mrf.mxu0 }
 0x298   : > { %v2466_v29 = vadd.f32 %v2376_v24, %v2234_v13 }
 0x299   : > { %5959 = vmatmul.msk.bf16.gmra.mxu3 %vm361_vm1, %v2039_v35 }
 0x29a   : > { %v2506_v26 = vmul.f32 %v7570_v44, %v2466_v29  ;;  %5976 = vmatmul.msk.bf16.gmra.mxu0 %vm361_vm1, %v2291_v14  ;;  %v2042_v29 = vor.u32 %v2041_v56, %v2040_v36  ;;  %v6310_v14 = vld [vmem:[%s6435_s26 + $0x60] sm:$0xff]  }
 0x29b   : > { %v2292_v9 = vrot.slane %v6310_v14, 3 }
 0x29c   : > { %v2546_v22 = vadd.f32 %v7577_v60, %v2506_v26  ;;  %v2154_v12 = vpop.f32.mrf.mxu3  ;;  %v2043_v32 = vsel %vm1992_vm6, %v2038_v41, %v2042_v29 }
 0x29e   : > { %v2582_v3 = vmax.f32 %v2546_v22, 0.0 }
 0x29f   : > { %v2378_v10 = vpop.f32.mrf.mxu0 }
 0x2a0   : > { %v2834_v13 = vmul.f32 %v2657_v54, %v2582_v3  ;;  %v2467_v24 = vadd.f32 %v2378_v10, %v2235_v0  ;;  %v2293_v54 = vsel %vm2272_vm7, %v2290_v16, %v2292_v9  ;;  %v9101_v10 = vld [vmem:[#allocation20_spill] sm:$0xff]  ;;  %v2044_v16 = vrot.slane %v9055_v52, 2 }
 0x2a1   : > { %v2237_v41 = vadd.f32 %v2151_v42, %v9101_v10 }
 0x2a2   : > { %2870 = vst.msk [vmem:[#allocation2 + $0x13] sm:$0xff] %vm361_vm1, %v2834_v13  ;;  %v2507_v35 = vmul.f32 %v7570_v44, %v2467_v24  ;;  %v2045_v24 = vrot.slane %v9056_v40, 3  ;;  %v9102_v40 = vld [vmem:[#allocation21_spill] sm:$0xff] }
 0x2a4   : > { %v2547_v26 = vadd.f32 %v7577_v60, %v2507_v35  ;;  %v2156_v58 = vpop.f32.mrf.mxu3  ;;  %v2046_v42 = vor.u32 %v2045_v24, %v2044_v16 }
 0x2a6   : > { %v2583_v22 = vmax.f32 %v2547_v26, 0.0 }
 0x2a7   : > { %v2381_v20 = vpop.f32.mrf.mxu0 }
 0x2a8   : > { %v2835_v0 = vmul.f32 %v2662_v57, %v2583_v22  ;;  %v2468_v3 = vadd.f32 %v2381_v20, %v2236_v19 }
 0x2a9   : > { %5960 = vmatmul.msk.bf16.gmra.mxu3 %vm361_vm1, %v2043_v32  ;;  %v2963_v19 = vld [vmem:[#allocation2 + $0x11] sm:$0xff] }
 0x2aa   : > { %2871 = vst.msk [vmem:[#allocation2 + $0x1b] sm:$0xff] %vm361_vm1, %v2835_v0  ;;  %v2508_v36 = vmul.f32 %v7570_v44, %v2468_v3  ;;  %5977 = vmatmul.msk.bf16.gmra.mxu0 %vm361_vm1, %v2293_v54  ;;  %v2908_v32 = vld [vmem:[#allocation2 + $0x10] sm:$0xff]  ;;  %v6311_v3 = vld [vmem:[%s6435_s26 + $0x68] sm:$0xff]  }
 0x2ac   : > { %v2548_v56 = vadd.f32 %v7577_v60, %v2508_v36  ;;  %v2159_v51 = vpop.f32.mrf.mxu3  ;;  %v2294_v36 = vrot.slane %v6311_v3, 3 }
 0x2ae   : > { %v2584_v13 = vmax.f32 %v2548_v56, 0.0 }
 0x2af   : > { %v2383_v35 = vpop.f32.mrf.mxu0 }
 0x2b0   : > { %v2836_v14 = vmul.f32 %v2667_v61, %v2584_v13  ;;  %v2469_v26 = vadd.f32 %v2383_v35, %v2237_v41  ;;  %v2238_v61 = vadd.f32 %v2154_v12, %v9102_v40  ;;  %v2047_v41 = vsel %vm1992_vm6, %v2042_v29, %v2046_v42  ;;  %v2672_v13 = vpop.permute.xlu1 %2671 }
 0x2b1   : > { %v2964_v22 = vld [vmem:[#allocation2 + $0x19] sm:$0xff] }
 0x2b2   : > { %v2909_v57 = vld [vmem:[#allocation2 + $0x18] sm:$0xff]  ;;  %2872 = vst.msk [vmem:[#allocation2 + $0x23] sm:$0xff] %vm361_vm1, %v2836_v14  ;;  %v2509_v20 = vmul.f32 %v7570_v44, %v2469_v26  ;;  %v2998_v54 = vpack.c.bf16 %v2964_v22, %v2963_v19  ;;  %v2295_v14 = vsel %vm2272_vm7, %v2292_v9, %v2294_v36  ;;  %v2677_v22 = vpop.permute.xlu2 %2676  ;;  %v2048_v9 = vrot.slane %v9060_v62, 2 }
 0x2b3   : > { %v2943_v0 = vpack.c.bf16 %v2909_v57, %v2908_v32  ;;  %v9103_v32 = vld [vmem:[#allocation24_spill] sm:$0xff] }
 0x2b4   : > { %v2549_v52 = vadd.f32 %v7577_v60, %v2509_v20  ;;  %v2161_v56 = vpop.f32.mrf.mxu3  ;;  %5988 = vmatmul.msk.bf16.gmra.mxu1 %vm361_vm1, %v2998_v54  ;;  %v2239_v29 = vadd.f32 %v2156_v58, %v9103_v32  ;;  %v2049_v20 = vrot.slane %v9061_v37, 3  ;;  %v2240_v37 = vadd.f32 %v2159_v51, %v7119_v34 }
 0x2b5   : > { %6006 = vmatmul.msk.bf16.gmra.mxu2 %vm361_vm1, %v2943_v0  ;;  %v2241_v51 = vadd.f32 %v2161_v56, %v7127_v25 }
 0x2b6   : > { %v2585_v10 = vmax.f32 %v2549_v52, 0.0  ;;  %v2050_v58 = vor.u32 %v2049_v20, %v2048_v9 }
 0x2b7   : > { %v2386_v35 = vpop.f32.mrf.mxu0 }
 0x2b8   : > { %v2837_v26 = vmul.f32 %v2672_v13, %v2585_v10  ;;  %v2470_v16 = vadd.f32 %v2386_v35, %v2238_v61 }
 0x2b9   : > { %5961 = vmatmul.msk.bf16.gmra.mxu3 %vm361_vm1, %v2047_v41  ;;  %v2965_v52 = vld [vmem:[#allocation2 + $0x21] sm:$0xff] }
 0x2ba   : > { %2873 = vst.msk [vmem:[#allocation2 + $0x2b] sm:$0xff] %vm361_vm1, %v2837_v26  ;;  %v2510_v24 = vmul.f32 %v7570_v44, %v2470_v16  ;;  %5978 = vmatmul.msk.bf16.gmra.mxu0 %vm361_vm1, %v2295_v14  ;;  %v2910_v61 = vld [vmem:[#allocation2 + $0x20] sm:$0xff]  ;;  %v6312_v14 = vld [vmem:[%s6435_s26 + $0x70] sm:$0xff]  }
 0x2bb   : > { %v2296_v26 = vrot.slane %v6312_v14, 3 }
 0x2bc   : > { %v2550_v19 = vadd.f32 %v7577_v60, %v2510_v24  ;;  %v2164_v12 = vpop.f32.mrf.mxu3 }
 0x2be   : > { %v2586_v57 = vmax.f32 %v2550_v19, 0.0  ;;  %v2051_v19 = vsel %vm1992_vm6, %v2046_v42, %v2050_v58 }
 0x2bf   : > { %v2388_v54 = vpop.f32.mrf.mxu0 }
 0x2c0   : > { %v2838_v0 = vmul.f32 %v2677_v22, %v2586_v57  ;;  %v2471_v3 = vadd.f32 %v2388_v54, %v2239_v29  ;;  %v2682_v22 = vpop.permute.xlu2 %2681  ;;  %v2297_v29 = vsel %vm2272_vm7, %v2294_v36, %v2296_v26  ;;  %v9104_v36 = vld [vmem:[#allocation9_spill] sm:$0xff] }
 0x2c1   : > { %v2966_v40 = vld [vmem:[#allocation2 + $0x29] sm:$0xff] }
 0x2c2   : > { %v2911_v10 = vld [vmem:[#allocation2 + $0x28] sm:$0xff]  ;;  %2874 = vst.msk [vmem:[#allocation2 + $0x33] sm:$0xff] %vm361_vm1, %v2838_v0  ;;  %v2511_v41 = vmul.f32 %v7570_v44, %v2471_v3  ;;  %v2999_v13 = vpack.c.bf16 %v2966_v40, %v2965_v52  ;;  %v2052_v0 = vrot.slane %v9067_v53, 2  ;;  %v2053_v3 = vrot.slane %v9104_v36, 3  ;;  %v2687_v52 = vpop.permute.xlu0 %2686 }
 0x2c3   : > { %v2944_v35 = vpack.c.bf16 %v2911_v10, %v2910_v61 }
 0x2c4   : > { %v2551_v62 = vadd.f32 %v7577_v60, %v2511_v41  ;;  %v2166_v16 = vpop.f32.mrf.mxu3  ;;  %5989 = vmatmul.msk.bf16.gmra.mxu1 %vm361_vm1, %v2999_v13  ;;  %v2054_v56 = vor.u32 %v2053_v3, %v2052_v0 }
 0x2c5   : > { %6007 = vmatmul.msk.bf16.gmra.mxu2 %vm361_vm1, %v2944_v35 }
 0x2c6   : > { %v2587_v24 = vmax.f32 %v2551_v62, 0.0 }
 0x2c7   : > { %v2391_v32 = vpop.f32.mrf.mxu0 }
 0x2c8   : > { %v2839_v57 = vmul.f32 %v2682_v22, %v2587_v24  ;;  %v2472_v9 = vadd.f32 %v2391_v32, %v2240_v37  ;;  %v6313_v24 = vld [vmem:[%s6435_s26 + $0x78] sm:$0xff]   ;;  %v9105_v32 = vld [vmem:[#allocation33_spill] sm:$0xff] }
 0x2c9   : > { %5962 = vmatmul.msk.bf16.gmra.mxu3 %vm361_vm1, %v2051_v19  ;;  %v2967_v41 = vld [vmem:[#allocation2 + $0x31] sm:$0xff]  ;;  %v2298_v19 = vrot.slane %v6313_v24, 3 }
 0x2ca   : > { %2875 = vst.msk [vmem:[#allocation2 + $0x3b] sm:$0xff] %vm361_vm1, %v2839_v57  ;;  %v2512_v20 = vmul.f32 %v7570_v44, %v2472_v9  ;;  %5979 = vmatmul.msk.bf16.gmra.mxu0 %vm361_vm1, %v2297_v29  ;;  %v2912_v35 = vld [vmem:[#allocation2 + $0x30] sm:$0xff]  ;;  %v2242_v29 = vadd.f32 %v2164_v12, %v9105_v32  ;;  %v2055_v9 = vsel %vm1992_vm6, %v2050_v58, %v2054_v56 }
 0x2cc   : > { %v2552_v54 = vadd.f32 %v7577_v60, %v2512_v20  ;;  %v2169_v34 = vpop.f32.mrf.mxu3  ;;  %v2692_v20 = vpop.permute.xlu1 %2691 }
 0x2ce   : > { %v2588_v42 = vmax.f32 %v2552_v54, 0.0 }
 0x2cf   : > { %v2393_v40 = vpop.f32.mrf.mxu0 }
 0x2d0   : > { %v2840_v61 = vmul.f32 %v2687_v52, %v2588_v42  ;;  %v2473_v10 = vadd.f32 %v2393_v40, %v2241_v51  ;;  %v2299_v51 = vsel %vm2272_vm7, %v2296_v26, %v2298_v19  ;;  %v9106_v52 = vld [vmem:[#allocation28_spill] sm:$0xff] }
 0x2d1   : > { %v2968_v13 = vld [vmem:[#allocation2 + $0x39] sm:$0xff]  ;;  %v2243_v58 = vadd.f32 %v2166_v16, %v9106_v52 }
 0x2d2   : > { %v2913_v14 = vld [vmem:[#allocation2 + $0x38] sm:$0xff]  ;;  %2876 = vst.msk [vmem:[#allocation2 + $0x43] sm:$0xff] %vm361_vm1, %v2840_v61  ;;  %v2513_v62 = vmul.f32 %v7570_v44, %v2473_v10  ;;  %v3000_v37 = vpack.c.bf16 %v2968_v13, %v2967_v41  ;;  %v9107_v61 = vshrl.u32 %v7182_v4, 16  ;;  %v9108_v10 = vshll.u32 %v7182_v4, 16  ;;  %v2697_v13 = vpop.permute.xlu2 %2696 }
 0x2d3   : > { %v2945_v25 = vpack.c.bf16 %v2913_v14, %v2912_v35 }
 0x2d4   : > { %v2553_v53 = vadd.f32 %v7577_v60, %v2513_v62  ;;  %v2171_v22 = vpop.f32.mrf.mxu3  ;;  %5990 = vmatmul.msk.bf16.gmra.mxu1 %vm361_vm1, %v3000_v37  ;;  %v2056_v26 = vrot.slane %v9107_v61, 2  ;;  %v2057_v41 = vrot.slane %v9108_v10, 3  ;;  %v7672_v10 = vld [vmem:[%s6435_s26 + $0x98] sm:$0xff]  }
 0x2d5   : > { %6008 = vmatmul.msk.bf16.gmra.mxu2 %vm361_vm1, %v2945_v25 }
 0x2d6   : > { %v2589_v57 = vmax.f32 %v2553_v53, 0.0 }
 0x2d7   : > { %v2396_v54 = vpop.f32.mrf.mxu0 }
 0x2d8   : > { %v2841_v42 = vmul.f32 %v2692_v20, %v2589_v57  ;;  %v2474_v0 = vadd.f32 %v2396_v54, %v2242_v29  ;;  %v2058_v57 = vor.u32 %v2057_v41, %v2056_v26 }
 0x2d9   : > { %5963 = vmatmul.msk.bf16.gmra.mxu3 %vm361_vm1, %v2055_v9  ;;  %v2969_v37 = vld [vmem:[#allocation2 + $0x41] sm:$0xff] }
 0x2da   : > { %2877 = vst.msk [vmem:[#allocation2 + $0x4b] sm:$0xff] %vm361_vm1, %v2841_v42  ;;  %v2514_v36 = vmul.f32 %v7570_v44, %v2474_v0  ;;  %5980 = vmatmul.msk.bf16.gmra.mxu0 %vm361_vm1, %v2299_v51  ;;  %v2914_v24 = vld [vmem:[#allocation2 + $0x40] sm:$0xff]  ;;  %v9109_v51 = vld [vmem:[#allocation29_spill] sm:$0xff] }
 0x2db   : > { %v6314_v9 = vld [vmem:[%s6435_s26 + $0x80] sm:$0xff]   ;;  %v2244_v42 = vadd.f32 %v2169_v34, %v9109_v51  ;;  %v2061_v34 = vshrl.u32 %v7672_v10, 16 }
 0x2dc   : > { %v2554_v3 = vadd.f32 %v7577_v60, %v2514_v36  ;;  %v7649_v12 = vpop.f32.mrf.mxu3  ;;  %v2300_v20 = vrot.slane %v6314_v9, 3  ;;  %v2059_v36 = vsel %vm1992_vm6, %v2054_v56, %v2058_v57  ;;  %v2064_v56 = vshll.u32 %v7672_v10, 16 }
 0x2de   : > { %v2590_v40 = vmax.f32 %v2554_v3, 0.0  ;;  %v2702_v3 = vpop.permute.xlu0 %2701 }
 0x2df   : > { %v2398_v35 = vpop.f32.mrf.mxu0 }
 0x2e0   : > { %v2842_v14 = vmul.f32 %v2697_v13, %v2590_v40  ;;  %v2475_v62 = vadd.f32 %v2398_v35, %v2243_v58  ;;  %v2301_v58 = vsel %vm2272_vm7, %v2298_v19, %v2300_v20  ;;  %v9110_v19 = vld [vmem:[#allocation30_spill] sm:$0xff] }
 0x2e1   : > { %v2970_v25 = vld [vmem:[#allocation2 + $0x49] sm:$0xff]  ;;  %v2245_v35 = vadd.f32 %v2171_v22, %v9110_v19 }
 0x2e2   : > { %v2915_v53 = vld [vmem:[#allocation2 + $0x48] sm:$0xff]  ;;  %2878 = vst.msk [vmem:[#allocation2 + $0x53] sm:$0xff] %vm361_vm1, %v2842_v14  ;;  %v2515_v16 = vmul.f32 %v7570_v44, %v2475_v62  ;;  %v3001_v32 = vpack.c.bf16 %v2970_v25, %v2969_v37  ;;  %v2063_v62 = vrot.slane %v2061_v34, 2  ;;  %v2066_v37 = vrot.slane %v2064_v56, 3  ;;  %v2707_v25 = vpop.permute.xlu1 %2706  ;;  %v2712_v56 = vpop.permute.xlu2 %2711 }
 0x2e3   : > { %v2946_v29 = vpack.c.bf16 %v2915_v53, %v2914_v24  ;;  %v6316_v22 = vld [vmem:[%s6435_s26 + $0x88] sm:$0xff]  }
 0x2e4   : > { %v2555_v4 = vadd.f32 %v7577_v60, %v2515_v16  ;;  %v7660_v54 = vpop.f32.mrf.mxu3  ;;  %5991 = vmatmul.msk.bf16.gmra.mxu1 %vm361_vm1, %v3001_v32 }
 0x2e5   : > { %6009 = vmatmul.msk.bf16.gmra.mxu2 %vm361_vm1, %v2946_v29 }
 0x2e6   : > { %v2591_v0 = vmax.f32 %v2555_v4, 0.0 }
 0x2e7   : > { %v2401_v52 = vpop.f32.mrf.mxu0 }
 0x2e8   : > { %v2843_v40 = vmul.f32 %v2702_v3, %v2591_v0  ;;  %v2476_v61 = vadd.f32 %v2401_v52, %v2244_v42  ;;  %v2302_v3 = vrot.slane %v6316_v22, 3  ;;  %v2717_v22 = vpop.permute.xlu0 %2716 }
 0x2e9   : > { %5964 = vmatmul.msk.bf16.gmra.mxu3 %vm361_vm1, %v2059_v36  ;;  %v2971_v32 = vld [vmem:[#allocation2 + $0x51] sm:$0xff]  ;;  %v2067_v36 = vor.u32 %v2066_v37, %v2063_v62 }
 0x2ea   : > { %2879 = vst.msk [vmem:[#allocation2 + $0x5b] sm:$0xff] %vm361_vm1, %v2843_v40  ;;  %v2516_v26 = vmul.f32 %v7570_v44, %v2476_v61  ;;  %5981 = vmatmul.msk.bf16.gmra.mxu0 %vm361_vm1, %v2301_v58  ;;  %v2916_v9 = vld [vmem:[#allocation2 + $0x50] sm:$0xff]  ;;  %v2303_v19 = vsel %vm2272_vm7, %v2300_v20, %v2302_v3  ;;  %v9114_v20 = vld [vmem:[#allocation31_spill] sm:$0xff] }
 0x2eb   : > { %v9111_v40 = vld [vmem:[#allocation34_spill] sm:$0xff]  ;;  %v2068_v34 = vsel %vm1992_vm6, %v2058_v57, %v2067_v36 }
 0x2ec   : > { %v2556_v41 = vadd.f32 %v7577_v60, %v2516_v26  ;;  %v7677_v13 = vpop.f32.mrf.mxu3  ;;  %v2246_v61 = vadd.f32 %v7649_v12, %v9111_v40  ;;  %v2070_v12 = vshrl.u32 %v7313_v33, 16 }
 0x2ee   : > { %v2592_v14 = vmax.f32 %v2556_v41, 0.0 }
 0x2ef   : > { %v2403_v24 = vpop.f32.mrf.mxu0 }
 0x2f0   : > { %v2844_v53 = vmul.f32 %v2707_v25, %v2592_v14  ;;  %v2477_v16 = vadd.f32 %v2403_v24, %v2245_v35  ;;  %v9112_v35 = vld [vmem:[#allocation35_spill] sm:$0xff]  ;;  %v7694_v24 = vpop.f32.mrf.mxu1 }
 0x2f1   : > { %v2972_v29 = vld [vmem:[#allocation2 + $0x59] sm:$0xff] }
 0x2f2   : > { %v2917_v4 = vld [vmem:[#allocation2 + $0x58] sm:$0xff]  ;;  %2880 = vst.msk [vmem:[#allocation2 + $0x63] sm:$0xff] %vm361_vm1, %v2844_v53  ;;  %v2517_v51 = vmul.f32 %v7570_v44, %v2477_v16  ;;  %v3002_v42 = vpack.c.bf16 %v2972_v29, %v2971_v32  ;;  %v7696_v53 = vpop.f32.mrf.mxu2  ;;  %v2073_v16 = vshll.u32 %v7313_v33, 16 }
 0x2f3   : > { %v2947_v0 = vpack.c.bf16 %v2917_v4, %v2916_v9  ;;  %v9113_v14 = vld [vmem:[#allocation23_spill] sm:$0xff]  ;;  %v2072_v4 = vrot.slane %v2070_v12, 2  ;;  %v6317_v12 = vld [vmem:[%s6435_s26 + $0x90] sm:$0xff]  }
 0x2f4   : > { %v2557_v52 = vadd.f32 %v7577_v60, %v2517_v51  ;;  %v7684_v58 = vpop.f32.mrf.mxu3  ;;  %5992 = vmatmul.msk.bf16.gmra.mxu1 %vm361_vm1, %v3002_v42  ;;  %v1813_v62 = vadd.f32 %v9113_v14, %v9112_v35  ;;  %v2075_v51 = vrot.slane %v2073_v16, 3  ;;  %v2304_v16 = vrot.slane %v6317_v12, 3 }
 0x2f5   : > { %6010 = vmatmul.msk.bf16.gmra.mxu2 %vm361_vm1, %v2947_v0 }
 0x2f6   : > { %v2593_v26 = vmax.f32 %v2557_v52, 0.0  ;;  %v1967_v32 = vadd.f32 %v9114_v20, %v1813_v62 }
 0x2f7   : > { %v2406_v41 = vpop.f32.mrf.mxu0 }
 0x2f8   : > { %v2845_v37 = vmul.f32 %v2712_v56, %v2593_v26  ;;  %v2478_v25 = vadd.f32 %v2406_v41, %v2246_v61  ;;  %v2247_v42 = vadd.f32 %v7660_v54, %v1967_v32  ;;  %v3083_v35 = vpop.f32.mrf.mxu1  ;;  %v2248_v32 = vadd.f32 %v7677_v13, %v7261_v59  ;;  %v9115_v59 = vld [vmem:[#allocation37_spill] sm:$0xff] }
 0x2f9   : > { %5965 = vmatmul.msk.bf16.gmra.mxu3 %vm361_vm1, %v2068_v34  ;;  %v2973_v26 = vld [vmem:[#allocation2 + $0x61] sm:$0xff] }
 0x2fa   : > { %2881 = vst.msk [vmem:[#allocation2 + $0x6b] sm:$0xff] %vm361_vm1, %v2845_v37  ;;  %v2518_v57 = vmul.f32 %v7570_v44, %v2478_v25  ;;  %5982 = vmatmul.msk.bf16.gmra.mxu0 %vm361_vm1, %v2303_v19  ;;  %v2918_v56 = vld [vmem:[#allocation2 + $0x60] sm:$0xff]  ;;  %v2076_v19 = vor.u32 %v2075_v51, %v2072_v4  ;;  %v3239_v14 = vpop.f32.mrf.mxu2  ;;  %v2722_v51 = vpop.permute.xlu1 %2721 }
 0x2fb   : > { %v7711_v54 = vadd.f32 %v3239_v14, %v3083_v35 }
 0x2fc   : > { %v2558_v29 = vadd.f32 %v7577_v60, %v2518_v57  ;;  %v7706_v9 = vpop.f32.mrf.mxu3  ;;  %v2077_v4 = vsel %vm1992_vm6, %v2067_v36, %v2076_v19 }
 0x2fe   : > { %v2594_v0 = vmax.f32 %v2558_v29, 0.0 }
 0x2ff   : > { %v2408_v52 = vpop.f32.mrf.mxu0 }
 0x300   : > { %v2846_v40 = vmul.f32 %v2717_v22, %v2594_v0  ;;  %v2479_v61 = vadd.f32 %v2408_v52, %v2247_v42  ;;  %v2305_v0 = vsel %vm2272_vm7, %v2302_v3, %v2304_v16  ;;  %v1815_v22 = vadd.f32 %v7255_v55, %v7285_v2 }
 0x301   : > { %v2974_v34 = vld [vmem:[#allocation2 + $0x69] sm:$0xff] }
 0x302   : > { %v2919_v41 = vld [vmem:[#allocation2 + $0x68] sm:$0xff]  ;;  %2882 = vst.msk [vmem:[#allocation2 + $0x73] sm:$0xff] %vm361_vm1, %v2846_v40  ;;  %v2519_v62 = vmul.f32 %v7570_v44, %v2479_v61  ;;  %v3003_v37 = vpack.c.bf16 %v2974_v34, %v2973_v26  ;;  %v1969_v13 = vadd.f32 %v9115_v59, %v1815_v22  ;;  %v2732_v22 = vpop.permute.xlu0 %2731 }
 0x303   : > { %v2948_v25 = vpack.c.bf16 %v2919_v41, %v2918_v56  ;;  %v2727_v56 = vpop.permute.xlu2 %2726 }
 0x304   : > { %v2559_v57 = vadd.f32 %v7577_v60, %v2519_v62  ;;  %v2186_v20 = vpop.f32.mrf.mxu3  ;;  %5993 = vmatmul.msk.bf16.gmra.mxu1 %vm361_vm1, %v3003_v37  ;;  %v2249_v3 = vadd.f32 %v7684_v58, %v1969_v13 }
 0x305   : > { %6011 = vmatmul.msk.bf16.gmra.mxu2 %vm361_vm1, %v2948_v25 }
 0x306   : > { %v2595_v29 = vmax.f32 %v2559_v57, 0.0  ;;  %v3329_v57 = vld [vmem:[#allocation2 + $0x2] sm:$0xff] }
 0x307   : > { %v2411_v42 = vpop.f32.mrf.mxu0 }
 0x308   : > { %v2847_v52 = vmul.f32 %v2722_v51, %v2595_v29  ;;  %v2480_v40 = vadd.f32 %v2411_v42, %v2248_v32  ;;  %v3330_v32 = vld [vmem:[#allocation2 + $0xa] sm:$0xff]  ;;  %v2306_v29 = vrot.slane %v7672_v10, 3  ;;  %v2250_v42 = vadd.f32 %v7706_v9, %v7317_v5 }
 0x309   : > { %5966 = vmatmul.msk.bf16.gmra.mxu3 %vm361_vm1, %v2077_v4  ;;  %v2975_v19 = vld [vmem:[#allocation2 + $0x71] sm:$0xff]  ;;  %v3365_v51 = vpack.c.bf16 %v3330_v32, %v3329_v57 }
 0x30a   : > { %2883 = vst.msk [vmem:[#allocation2 + $0x7b] sm:$0xff] %vm361_vm1, %v2847_v52  ;;  %v2520_v61 = vmul.f32 %v7570_v44, %v2480_v40  ;;  %5983 = vmatmul.msk.bf16.gmra.mxu0 %vm361_vm1, %v2305_v0  ;;  %v2920_v14 = vld [vmem:[#allocation2 + $0x70] sm:$0xff]  ;;  %v2307_v40 = vsel %vm2272_vm7, %v2304_v16, %v2306_v29 }
 0x30b   : > { %v3331_v32 = vld [vmem:[#allocation2 + $0x12] sm:$0xff] }
 0x30c   : > { %v2560_v36 = vadd.f32 %v7577_v60, %v2520_v61  ;;  %v2189_v26 = vpop.f32.mrf.mxu3  ;;  %v1817_v61 = vadd.f32 %v7309_v7, %v7336_v17 }
 0x30e   : > { %v2596_v34 = vmax.f32 %v2560_v36, 0.0  ;;  %v1971_v5 = vadd.f32 %v7340_v46, %v1817_v61  ;;  %v2308_v46 = vrot.slane %v7313_v33, 3  ;;  %v1819_v33 = vadd.f32 %v7360_v43, %v7379_v48 }
 0x30f   : > { %v2413_v55 = vpop.f32.mrf.mxu0 }
 0x310   : > { %v2848_v2 = vmul.f32 %v2727_v56, %v2596_v34  ;;  %v2481_v41 = vadd.f32 %v2413_v55, %v2249_v3  ;;  %v2251_v3 = vadd.f32 %v2186_v20, %v1971_v5  ;;  %v2737_v34 = vpop.permute.xlu1 %2736 }
 0x311   : > { %v2976_v35 = vld [vmem:[#allocation2 + $0x79] sm:$0xff] }
 0x312   : > { %v2921_v62 = vld [vmem:[#allocation2 + $0x78] sm:$0xff]  ;;  %2884 = vst.msk [vmem:[#allocation2 + $0x83] sm:$0xff] %vm361_vm1, %v2848_v2  ;;  %v2521_v37 = vmul.f32 %v7570_v44, %v2481_v41  ;;  %v3004_v25 = vpack.c.bf16 %v2976_v35, %v2975_v19 }
 0x313   : > { %v2949_v12 = vpack.c.bf16 %v2921_v62, %v2920_v14 }
 0x314   : > { %v2561_v58 = vadd.f32 %v7577_v60, %v2521_v37  ;;  %v2191_v4 = vpop.f32.mrf.mxu3  ;;  %5994 = vmatmul.msk.bf16.gmra.mxu1 %vm361_vm1, %v3004_v25  ;;  %v3332_v25 = vld [vmem:[#allocation2 + $0x1a] sm:$0xff] }
 0x315   : > { %6012 = vmatmul.msk.bf16.gmra.mxu2 %vm361_vm1, %v2949_v12  ;;  %v2252_v12 = vadd.f32 %v2189_v26, %v7364_v49  ;;  %v1973_v26 = vadd.f32 %v7384_v15, %v1819_v33 }
 0x316   : > { %v2597_v0 = vmax.f32 %v2561_v58, 0.0  ;;  %v2742_v58 = vpop.permute.xlu2 %2741 }
 0x317   : > { %v2416_v52 = vpop.f32.mrf.mxu0  ;;  %v2253_v43 = vadd.f32 %v2191_v4, %v1973_v26 }
 0x318   : > { %v2849_v10 = vmul.f32 %v2732_v22, %v2597_v0  ;;  %v2482_v59 = vadd.f32 %v2416_v52, %v2250_v42  ;;  %v3366_v42 = vpack.c.bf16 %v3332_v25, %v3331_v32  ;;  %v2309_v0 = vsel %vm2272_vm7, %v2306_v29, %v2308_v46 }
 0x319   : > { %6024 = vmatmul.msk.bf16.vlgmr.msrb.gmra.mxu3 %vm361_vm1, %v3365_v51  ;;  %v2977_v55 = vld [vmem:[#allocation2 + $0x81] sm:$0xff] }
 0x31a   : > { %2885 = vst.msk [vmem:[#allocation2 + $0x8b] sm:$0xff] %vm361_vm1, %v2849_v10  ;;  %v2522_v13 = vmul.f32 %v7570_v44, %v2482_v59  ;;  %5984 = vmatmul.msk.bf16.gmra.mxu0 %vm361_vm1, %v2307_v40  ;;  %v2922_v41 = vld [vmem:[#allocation2 + $0x80] sm:$0xff]  ;;  %v7759_v40 = vpop.f32.mrf.mxu1  ;;  %v2747_v10 = vpop.permute.xlu0 %2746 }
 0x31b   : > { %v7769_v59 = vpop.f32.mrf.mxu2 }
 0x31c   : > { %v2562_v9 = vadd.f32 %v7577_v60, %v2522_v13  ;;  %v2194_v36 = vpop.f32.mrf.mxu3 }
 0x31e   : > { %v2598_v16 = vmax.f32 %v2562_v9, 0.0 }
 0x31f   : > { %v2418_v56 = vpop.f32.mrf.mxu0 }
 0x320   : > { %v2850_v7 = vmul.f32 %v2737_v34, %v2598_v16  ;;  %v2483_v17 = vadd.f32 %v2418_v56, %v2251_v3 }
 0x321   : > { %v2978_v2 = vld [vmem:[#allocation2 + $0x89] sm:$0xff] }
 0x322   : > { %v2923_v19 = vld [vmem:[#allocation2 + $0x88] sm:$0xff]  ;;  %2886 = vst.msk [vmem:[#allocation2 + $0x93] sm:$0xff] %vm361_vm1, %v2850_v7  ;;  %v2523_v35 = vmul.f32 %v7570_v44, %v2483_v17  ;;  %v3005_v14 = vpack.c.bf16 %v2978_v2, %v2977_v55 }
 0x323   : > { %v2950_v62 = vpack.c.bf16 %v2923_v19, %v2922_v41  ;;  %v3334_v41 = vld [vmem:[#allocation2 + $0x2a] sm:$0xff]  ;;  %v2752_v19 = vpop.permute.xlu1 %2751 }
 0x324   : > { %v2563_v37 = vadd.f32 %v7577_v60, %v2523_v35  ;;  %v7751_v20 = vpop.f32.mrf.mxu3  ;;  %5995 = vmatmul.msk.bf16.gmra.mxu1 %vm361_vm1, %v3005_v14  ;;  %v2254_v35 = vadd.f32 %v2194_v36, %v7403_v39  ;;  %v6080_v39 = vld [vmem:[%s8926_s5 + $0x14] sm:$0xf] }
 0x325   : > { %6013 = vmatmul.msk.bf16.gmra.mxu2 %vm361_vm1, %v2950_v62  ;;  %v3333_v62 = vld [vmem:[#allocation2 + $0x22] sm:$0xff]  ;;  %v4184_v36 = vsel %vm678_vm0, %v6080_v39, 0 }
 0x326   : > { %v2599_v57 = vmax.f32 %v2563_v37, 0.0  ;;  %v3367_v25 = vpack.c.bf16 %v3334_v41, %v3333_v62  ;;  %4193 = vmatpush.bf16.msrb.mxu2 %v4184_v36 }
 0x327   : > { %v2421_v51 = vpop.f32.mrf.mxu0 }
 0x328   : > { %v2851_v22 = vmul.f32 %v2742_v58, %v2599_v57  ;;  %v2484_v52 = vadd.f32 %v2421_v51, %v2252_v12  ;;  %v1821_v12 = vadd.f32 %v7399_v30, %v7415_v27 }
 0x329   : > { %6025 = vmatmul.msk.bf16.gmra.mxu3 %vm361_vm1, %v3366_v42  ;;  %v2979_v3 = vld [vmem:[#allocation2 + $0x91] sm:$0xff] }
 0x32a   : > { %2887 = vst.msk [vmem:[#allocation2 + $0x9b] sm:$0xff] %vm361_vm1, %v2851_v22  ;;  %v2524_v49 = vmul.f32 %v7570_v44, %v2484_v52  ;;  %5985 = vmatmul.msk.bf16.gmra.mxu0 %vm361_vm1, %v2309_v0  ;;  %v2924_v56 = vld [vmem:[#allocation2 + $0x90] sm:$0xff]  ;;  %v1975_v30 = vadd.f32 %v7417_v45, %v1821_v12  ;;  %v2757_v22 = vpop.permute.xlu2 %2756 }
 0x32c   : > { %v2564_v61 = vadd.f32 %v7577_v60, %v2524_v49  ;;  %v7767_v29 = vpop.f32.mrf.mxu3  ;;  %v2255_v52 = vadd.f32 %v7751_v20, %v1975_v30 }
 0x32e   : > { %v2600_v48 = vmax.f32 %v2564_v61, 0.0 }
 0x32f   : > { %v2423_v13 = vpop.f32.mrf.mxu0 }
 0x330   : > { %v2852_v5 = vmul.f32 %v2747_v10, %v2600_v48  ;;  %v2485_v9 = vadd.f32 %v2423_v13, %v2253_v43 }
 0x331   : > { %v3088_v16 = vpop.f32.mrf.mxu1  ;;  %v2980_v34 = vld [vmem:[#allocation2 + $0x99] sm:$0xff] }
 0x332   : > { %v2925_v7 = vld [vmem:[#allocation2 + $0x98] sm:$0xff]  ;;  %2888 = vst.msk [vmem:[#allocation2 + $0xa3] sm:$0xff] %vm361_vm1, %v2852_v5  ;;  %v2525_v15 = vmul.f32 %v7570_v44, %v2485_v9  ;;  %v3006_v17 = vpack.c.bf16 %v2980_v34, %v2979_v3 }
 0x333   : > { %v2951_v55 = vpack.c.bf16 %v2925_v7, %v2924_v56  ;;  %v3336_v7 = vld [vmem:[#allocation2 + $0x3a] sm:$0xff] }
 0x334   : > { %v2565_v2 = vadd.f32 %v7577_v60, %v2525_v15  ;;  %v7774_v4 = vpop.f32.mrf.mxu3  ;;  %5996 = vmatmul.msk.bf16.gmra.mxu1 %vm361_vm1, %v3006_v17  ;;  %v2762_v15 = vpop.permute.xlu0 %2761  ;;  %v2256_v17 = vadd.f32 %v7767_v29, %v7430_v38 }
 0x335   : > { %6014 = vmatmul.msk.bf16.gmra.mxu2 %vm361_vm1, %v2951_v55 }
 0x336   : > { %v2601_v14 = vmax.f32 %v2565_v2, 0.0  ;;  %v3335_v2 = vld [vmem:[#allocation2 + $0x32] sm:$0xff] }
 0x337   : > { %v2426_v46 = vpop.f32.mrf.mxu0 }
 0x338   : > { %v3244_v37 = vpop.f32.mrf.mxu2  ;;  %v2853_v57 = vmul.f32 %v2752_v19, %v2601_v14  ;;  %v2486_v32 = vadd.f32 %v2426_v46, %v2254_v35  ;;  %v3368_v35 = vpack.c.bf16 %v3336_v7, %v3335_v2  ;;  %v1823_v14 = vadd.f32 %v7426_v50, %v7438_v31  ;;  %v2767_v50 = vpop.permute.xlu1 %2766 }
 0x339   : > { %v7781_v58 = vadd.f32 %v3244_v37, %v3088_v16  ;;  %6026 = vmatmul.msk.bf16.gmra.mxu3 %vm361_vm1, %v3367_v25  ;;  %v3090_v51 = vpop.f32.mrf.mxu1  ;;  %v2981_v48 = vld [vmem:[#allocation2 + $0xa1] sm:$0xff] }
 0x33a   : > { %2889 = vst.msk [vmem:[#allocation2 + $0xab] sm:$0xff] %vm361_vm1, %v2853_v57  ;;  %v2526_v0 = vmul.f32 %v7570_v44, %v2486_v32  ;;  %6043 = vmatmul.msk.bf16.vlgmr.msrb.gmra.mxu0 %vm361_vm1, %v3366_v42  ;;  %v2926_v9 = vld [vmem:[#allocation2 + $0xa0] sm:$0xff]  ;;  %v1977_v38 = vadd.f32 %v7440_v6, %v1823_v14 }
 0x33c   : > { %v2566_v27 = vadd.f32 %v7577_v60, %v2526_v0  ;;  %v7793_v33 = vpop.f32.mrf.mxu3  ;;  %v2257_v31 = vadd.f32 %v7774_v4, %v1977_v38 }
 0x33e   : > { %v2602_v49 = vmax.f32 %v2566_v27, 0.0 }
 0x33f   : > { %v2428_v26 = vpop.f32.mrf.mxu0 }
 0x340   : > { %v3246_v61 = vpop.f32.mrf.mxu2  ;;  %v2854_v42 = vmul.f32 %v2757_v22, %v2602_v49  ;;  %v2487_v10 = vadd.f32 %v2428_v26, %v2255_v52 }
 0x341   : > { %v7796_v43 = vadd.f32 %v3246_v61, %v3090_v51  ;;  %v3093_v13 = vpop.f32.mrf.mxu1  ;;  %v2982_v5 = vld [vmem:[#allocation2 + $0xa9] sm:$0xff] }
 0x342   : > { %v2927_v45 = vld [vmem:[#allocation2 + $0xa8] sm:$0xff]  ;;  %2890 = vst.msk [vmem:[#allocation2 + $0xb3] sm:$0xff] %vm361_vm1, %v2854_v42  ;;  %v2527_v3 = vmul.f32 %v7570_v44, %v2487_v10  ;;  %v3007_v16 = vpack.c.bf16 %v2982_v5, %v2981_v48  ;;  %v2258_v5 = vadd.f32 %v7793_v33, %v7453_v8  ;;  %v9117_v8 = vld [vmem:[#allocation15_spill] sm:$0xff] }
 0x343   : > { %v2952_v34 = vpack.c.bf16 %v2927_v45, %v2926_v9  ;;  %v3338_v48 = vld [vmem:[#allocation2 + $0x4a] sm:$0xff]  ;;  %v3337_v45 = vld [vmem:[#allocation2 + $0x42] sm:$0xff] }
 0x344   : > { %v2567_v20 = vadd.f32 %v7577_v60, %v2527_v3  ;;  %v7801_v56 = vpop.f32.mrf.mxu3  ;;  %5997 = vmatmul.msk.bf16.gmra.mxu1 %vm361_vm1, %v3007_v16 }
 0x345   : > { %6015 = vmatmul.msk.bf16.gmra.mxu2 %vm361_vm1, %v2952_v34  ;;  %v3369_v34 = vpack.c.bf16 %v3338_v48, %v3337_v45 }
 0x346   : > { %v2603_v55 = vmax.f32 %v2567_v20, 0.0  ;;  %v9116_v20 = vld [vmem:[#allocation36_spill] sm:$0xff] }
 0x347   : > { %v2431_v41 = vpop.f32.mrf.mxu0  ;;  %v1825_v7 = vadd.f32 %v9116_v20, %v7461_v1  ;;  %v2777_v1 = vpop.permute.xlu0 %2776 }
 0x348   : > { %v3249_v19 = vpop.f32.mrf.mxu2  ;;  %v2855_v62 = vmul.f32 %v2762_v15, %v2603_v55  ;;  %v2488_v46 = vadd.f32 %v2431_v41, %v2256_v17 }
 0x349   : > { %v7809_v37 = vadd.f32 %v3249_v19, %v3093_v13  ;;  %6027 = vmatmul.msk.bf16.gmra.mxu3 %vm361_vm1, %v3368_v35  ;;  %v3095_v12 = vpop.f32.mrf.mxu1  ;;  %v2983_v22 = vld [vmem:[#allocation2 + $0xb1] sm:$0xff]  ;;  %v2772_v13 = vpop.permute.xlu2 %2771  ;;  %v1979_v33 = vadd.f32 %v9117_v8, %v1825_v7 }
 0x34a   : > { %2891 = vst.msk [vmem:[#allocation2 + $0xbb] sm:$0xff] %vm361_vm1, %v2855_v62  ;;  %v2528_v57 = vmul.f32 %v7570_v44, %v2488_v46  ;;  %6044 = vmatmul.msk.bf16.gmra.mxu0 %vm361_vm1, %v3367_v25  ;;  %v2928_v25 = vld [vmem:[#allocation2 + $0xb0] sm:$0xff] }
 0x34b   : > { %v2259_v62 = vadd.f32 %v7801_v56, %v1979_v33 }
 0x34c   : > { %v2568_v29 = vadd.f32 %v7577_v60, %v2528_v57  ;;  %v7817_v32 = vpop.f32.mrf.mxu3 }
 0x34e   : > { %v2604_v51 = vmax.f32 %v2568_v29, 0.0 }
 0x34f   : > { %v2433_v0 = vpop.f32.mrf.mxu0 }
 0x350   : > { %v3251_v39 = vpop.f32.mrf.mxu2  ;;  %v2856_v36 = vmul.f32 %v2767_v50, %v2604_v51  ;;  %v2489_v30 = vadd.f32 %v2433_v0, %v2257_v31 }
 0x351   : > { %v7820_v27 = vadd.f32 %v3251_v39, %v3095_v12  ;;  %v3098_v52 = vpop.f32.mrf.mxu1  ;;  %v2984_v49 = vld [vmem:[#allocation2 + $0xb9] sm:$0xff]  ;;  %v2787_v8 = vpop.permute.xlu2 %2786 }
 0x352   : > { %v2929_v26 = vld [vmem:[#allocation2 + $0xb8] sm:$0xff]  ;;  %2892 = vst.msk [vmem:[#allocation2 + $0xc3] sm:$0xff] %vm361_vm1, %v2856_v36  ;;  %v2529_v6 = vmul.f32 %v7570_v44, %v2489_v30  ;;  %v3008_v61 = vpack.c.bf16 %v2984_v49, %v2983_v22 }
 0x353   : > { %v2953_v42 = vpack.c.bf16 %v2929_v26, %v2928_v25  ;;  %v3340_v49 = vld [vmem:[#allocation2 + $0x5a] sm:$0xff]  ;;  %v2782_v25 = vpop.permute.xlu1 %2781 }
 0x354   : > { %v2569_v4 = vadd.f32 %v7577_v60, %v2529_v6  ;;  %v7825_v10 = vpop.f32.mrf.mxu3  ;;  %5998 = vmatmul.msk.bf16.gmra.mxu1 %vm361_vm1, %v3008_v61  ;;  %v9118_v26 = vld [vmem:[#allocation3_spill] sm:$0xff] }
 0x355   : > { %6016 = vmatmul.msk.bf16.gmra.mxu2 %vm361_vm1, %v2953_v42  ;;  %v2260_v6 = vadd.f32 %v7817_v32, %v9118_v26  ;;  %v3339_v42 = vld [vmem:[#allocation2 + $0x52] sm:$0xff] }
 0x356   : > { %v2605_v9 = vmax.f32 %v2569_v4, 0.0  ;;  %v9121_v32 = vld [vmem:[#allocation6_spill] sm:$0xff] }
 0x357   : > { %v2436_v3 = vpop.f32.mrf.mxu0 }
 0x358   : > { %v3254_v16 = vpop.f32.mrf.mxu2  ;;  %v2857_v15 = vmul.f32 %v2772_v13, %v2605_v9  ;;  %v2490_v17 = vadd.f32 %v2436_v3, %v2258_v5  ;;  %v3370_v13 = vpack.c.bf16 %v3340_v49, %v3339_v42  ;;  %v9119_v5 = vld [vmem:[#allocation19_spill] sm:$0xff]  ;;  %v9120_v9 = vld [vmem:[#allocation4_spill] sm:$0xff]  ;;  %v9122_v42 = vld [vmem:[#allocation5_spill] sm:$0xff] }
 0x359   : > { %v7833_v55 = vadd.f32 %v3254_v16, %v3098_v52  ;;  %6028 = vmatmul.msk.bf16.gmra.mxu3 %vm361_vm1, %v3369_v34  ;;  %v3100_v2 = vpop.f32.mrf.mxu1  ;;  %v2985_v31 = vld [vmem:[#allocation2 + $0xc1] sm:$0xff]  ;;  %v1827_v45 = vadd.f32 %v9120_v9, %v9119_v5 }
 0x35a   : > { %2893 = vst.msk [vmem:[#allocation2 + $0xcb] sm:$0xff] %vm361_vm1, %v2857_v15  ;;  %v2530_v41 = vmul.f32 %v7570_v44, %v2490_v17  ;;  %6045 = vmatmul.msk.bf16.gmra.mxu0 %vm361_vm1, %v3368_v35  ;;  %v2930_v35 = vld [vmem:[#allocation2 + $0xc0] sm:$0xff] }
 0x35b   : > { %v1981_v17 = vadd.f32 %v9121_v32, %v1827_v45 }
 0x35c   : > { %v2570_v19 = vadd.f32 %v7577_v60, %v2530_v41  ;;  %v7841_v14 = vpop.f32.mrf.mxu3 }
 0x35d   : > { %v2261_v33 = vadd.f32 %v7825_v10, %v1981_v17 }
 0x35e   : > { %v2606_v46 = vmax.f32 %v2570_v19, 0.0 }
 0x35f   : > { %v2438_v12 = vpop.f32.mrf.mxu0 }
 0x360   : > { %v3256_v57 = vpop.f32.mrf.mxu2  ;;  %v2858_v38 = vmul.f32 %v2777_v1, %v2606_v46  ;;  %v2491_v29 = vadd.f32 %v2438_v12, %v2259_v62 }
 0x361   : > { %v7844_v50 = vadd.f32 %v3256_v57, %v3100_v2  ;;  %v3103_v51 = vpop.f32.mrf.mxu1  ;;  %v2986_v0 = vld [vmem:[#allocation2 + $0xc9] sm:$0xff] }
 0x362   : > { %v2931_v39 = vld [vmem:[#allocation2 + $0xc8] sm:$0xff]  ;;  %2894 = vst.msk [vmem:[#allocation2 + $0xd3] sm:$0xff] %vm361_vm1, %v2858_v38  ;;  %v2531_v36 = vmul.f32 %v7570_v44, %v2491_v29  ;;  %v3009_v30 = vpack.c.bf16 %v2986_v0, %v2985_v31 }
 0x363   : > { %v2954_v22 = vpack.c.bf16 %v2931_v39, %v2930_v35  ;;  %v7880_v35 = vld [vmem:[%s8925_s4] ss:$0 sm:$0xff] }
 0x364   : > { %v2571_v56 = vadd.f32 %v7577_v60, %v2531_v36  ;;  %v7849_v52 = vpop.f32.mrf.mxu3  ;;  %5999 = vmatmul.msk.bf16.gmra.mxu1 %vm361_vm1, %v3009_v30  ;;  %v3342_v30 = vld [vmem:[#allocation2 + $0x6a] sm:$0xff] }
 0x365   : > { %6017 = vmatmul.msk.bf16.gmra.mxu2 %vm361_vm1, %v2954_v22  ;;  %v2792_v22 = vpop.permute.xlu0 %2791 }
 0x366   : > { %v2607_v61 = vmax.f32 %v2571_v56, 0.0  ;;  %v2262_v56 = vadd.f32 %v7841_v14, %v7493_v63 }
 0x367   : > { %v2441_v4 = vpop.f32.mrf.mxu0 }
 0x368   : > { %v3259_v48 = vpop.f32.mrf.mxu2  ;;  %v2859_v3 = vmul.f32 %v2782_v25, %v2607_v61  ;;  %v2492_v16 = vadd.f32 %v2441_v4, %v2260_v6  ;;  %v3341_v25 = vld [vmem:[#allocation2 + $0x62] sm:$0xff]  ;;  %v1829_v4 = vadd.f32 %v9122_v42, %v7498_v21  ;;  %v2797_v21 = vpop.permute.xlu1 %2796 }
 0x369   : > { %v7857_v20 = vadd.f32 %v3259_v48, %v3103_v51  ;;  %6029 = vmatmul.msk.bf16.gmra.mxu3 %vm361_vm1, %v3370_v13  ;;  %v3105_v7 = vpop.f32.mrf.mxu1  ;;  %v2987_v38 = vld [vmem:[#allocation2 + $0xd1] sm:$0xff]  ;;  %v3371_v61 = vpack.c.bf16 %v3342_v30, %v3341_v25 }
 0x36a   : > { %2895 = vst.msk [vmem:[#allocation2 + $0xdb] sm:$0xff] %vm361_vm1, %v2859_v3  ;;  %v2532_v15 = vmul.f32 %v7570_v44, %v2492_v16  ;;  %6046 = vmatmul.msk.bf16.gmra.mxu0 %vm361_vm1, %v3369_v34  ;;  %v2932_v34 = vld [vmem:[#allocation2 + $0xd0] sm:$0xff]  ;;  %v1983_v63 = vadd.f32 %v7500_v47, %v1829_v4 }
 0x36c   : > { %v2572_v2 = vadd.f32 %v7577_v60, %v2532_v15  ;;  %v7865_v41 = vpop.f32.mrf.mxu3  ;;  %v7874_v60 = vld [vmem:[%s8924_s3] ss:$0 sm:$0xff] }
 0x36e   : > { %v2608_v19 = vmax.f32 %v2572_v2, 0.0 }
 0x36f   : > { %v2443_v1 = vpop.f32.mrf.mxu0 }
 0x370   : > { %v3261_v62 = vpop.f32.mrf.mxu2  ;;  %v2860_v46 = vmul.f32 %v2787_v8, %v2608_v19  ;;  %v2493_v12 = vadd.f32 %v2443_v1, %v2261_v33 }
 0x371   : > { %v7868_v57 = vadd.f32 %v3261_v62, %v3105_v7  ;;  %v3108_v44 = vpop.f32.mrf.mxu1  ;;  %v2988_v29 = vld [vmem:[#allocation2 + $0xd9] sm:$0xff]  ;;  %v2263_v7 = vadd.f32 %v7849_v52, %v1983_v63 }
 0x372   : > { %v2933_v31 = vld [vmem:[#allocation2 + $0xd8] sm:$0xff]  ;;  %2896 = vst.msk [vmem:[#allocation2 + $0xe3] sm:$0xff] %vm361_vm1, %v2860_v46  ;;  %v2533_v10 = vmul.f32 %v7874_v60, %v2493_v12  ;;  %v3010_v51 = vpack.c.bf16 %v2988_v29, %v2987_v38 }
 0x373   : > { %v2955_v0 = vpack.c.bf16 %v2933_v31, %v2932_v34  ;;  %v3344_v29 = vld [vmem:[#allocation2 + $0x7a] sm:$0xff]  ;;  %v2802_v34 = vpop.permute.xlu2 %2801  ;;  %v2264_v31 = vadd.f32 %v7865_v41, %v7510_v28 }
 0x374   : > { %v2573_v39 = vadd.f32 %v7880_v35, %v2533_v10  ;;  %v7883_v36 = vpop.f32.mrf.mxu3  ;;  %6000 = vmatmul.msk.bf16.gmra.mxu1 %vm361_vm1, %v3010_v51  ;;  %v3343_v51 = vld [vmem:[#allocation2 + $0x72] sm:$0xff] }
 0x375   : > { %6018 = vmatmul.msk.bf16.gmra.mxu2 %vm361_vm1, %v2955_v0  ;;  %v3372_v30 = vpack.c.bf16 %v3344_v29, %v3343_v51  ;;  %v9125_v28 = vld [vmem:[#allocation7_spill] sm:$0xff]  ;;  %v3345_v29 = vld [vmem:[#allocation2 + $0x82] sm:$0xff]  ;;  %v1833_v51 = vadd.f32 %v7534_v23, %v7538_v11 }
 0x376   : > { %v2609_v49 = vmax.f32 %v2573_v39, 0.0  ;;  %v9126_v23 = vld [vmem:[#allocation25_spill] sm:$0xff] }
 0x377   : > { %v2446_v26 = vpop.f32.mrf.mxu0  ;;  %v1987_v11 = vadd.f32 %v9126_v23, %v1833_v51 }
 0x378   : > { %v3264_v6 = vpop.f32.mrf.mxu2  ;;  %v2861_v48 = vmul.f32 %v2792_v22, %v2609_v49  ;;  %v2494_v5 = vadd.f32 %v2446_v26, %v2262_v56  ;;  %v9123_v22 = vld [vmem:[#allocation8_spill] sm:$0xff]  ;;  %v9124_v56 = vld [vmem:[#allocation27_spill] sm:$0xff] }
 0x379   : > { %v7891_v9 = vadd.f32 %v3264_v6, %v3108_v44  ;;  %6030 = vmatmul.msk.bf16.gmra.mxu3 %vm361_vm1, %v3371_v61  ;;  %v3110_v45 = vpop.f32.mrf.mxu1  ;;  %v2989_v19 = vld [vmem:[#allocation2 + $0xe1] sm:$0xff]  ;;  %v1831_v49 = vadd.f32 %v9124_v56, %v9123_v22 }
 0x37a   : > { %2897 = vst.msk [vmem:[#allocation2 + $0xeb] sm:$0xff] %vm361_vm1, %v2861_v48  ;;  %v2534_v3 = vmul.f32 %v7874_v60, %v2494_v5  ;;  %6047 = vmatmul.msk.bf16.gmra.mxu0 %vm361_vm1, %v3370_v13  ;;  %v2934_v13 = vld [vmem:[#allocation2 + $0xe0] sm:$0xff] }
 0x37b   : > { %v1985_v41 = vadd.f32 %v9125_v28, %v1831_v49 }
 0x37c   : > { %v2574_v14 = vadd.f32 %v7880_v35, %v2534_v3  ;;  %v7899_v16 = vpop.f32.mrf.mxu3 }
 0x37d   : > { %v2265_v3 = vadd.f32 %v7883_v36, %v1985_v41 }
 0x37e   : > { %v2610_v15 = vmax.f32 %v2574_v14, 0.0 }
 0x37f   : > { %v2448_v32 = vpop.f32.mrf.mxu0 }
 0x380   : > { %v3266_v17 = vpop.f32.mrf.mxu2  ;;  %v2862_v2 = vmul.f32 %v2797_v21, %v2610_v15  ;;  %v2495_v8 = vadd.f32 %v2448_v32, %v2263_v7 }
 0x381   : > { %v7902_v33 = vadd.f32 %v3266_v17, %v3110_v45  ;;  %v3113_v1 = vpop.f32.mrf.mxu1  ;;  %v2990_v62 = vld [vmem:[#allocation2 + $0xe9] sm:$0xff]  ;;  %v2807_v45 = vpop.permute.xlu0 %2806 }
 0x382   : > { %v2935_v46 = vld [vmem:[#allocation2 + $0xe8] sm:$0xff]  ;;  %2898 = vst.msk [vmem:[#allocation2 + $0xf3] sm:$0xff] %vm361_vm1, %v2862_v2  ;;  %v2535_v47 = vmul.f32 %v7874_v60, %v2495_v8  ;;  %v3011_v12 = vpack.c.bf16 %v2990_v62, %v2989_v19 }
 0x383   : > { %v2956_v38 = vpack.c.bf16 %v2935_v46, %v2934_v13 }
 0x384   : > { %v2575_v52 = vadd.f32 %v7880_v35, %v2535_v47  ;;  %v7907_v44 = vpop.f32.mrf.mxu3  ;;  %6001 = vmatmul.msk.bf16.gmra.mxu1 %vm361_vm1, %v3011_v12  ;;  %v3346_v47 = vld [vmem:[#allocation2 + $0x8a] sm:$0xff]  ;;  %v2812_v12 = vpop.permute.xlu1 %2811 }
 0x385   : > { %6019 = vmatmul.msk.bf16.gmra.mxu2 %vm361_vm1, %v2956_v38  ;;  %v2266_v38 = vadd.f32 %v7899_v16, %v7531_v18  ;;  %v6099_v18 = vld [vmem:[%s8926_s5 + $0x18] sm:$0xf]  ;;  %v2267_v28 = vadd.f32 %v7907_v44, %v1987_v11 }
 0x386   : > { %v2611_v10 = vmax.f32 %v2575_v52, 0.0  ;;  %v4432_v16 = vsel %vm678_vm0, %v6099_v18, 0 }
 0x387   : > { %v2451_v0 = vpop.f32.mrf.mxu0  ;;  %4441 = vmatpush.bf16.msra.mxu3 %v4432_v16 }
 0x388   : > { %v3269_v39 = vpop.f32.mrf.mxu2  ;;  %v2863_v25 = vmul.f32 %v2802_v34, %v2611_v10  ;;  %v2496_v26 = vadd.f32 %v2451_v0, %v2264_v31  ;;  %v3373_v10 = vpack.c.bf16 %v3346_v47, %v3345_v29  ;;  %v9127_v47 = vld [vmem:[#allocation12_spill] sm:$0xff] }
 0x389   : > { %v7915_v6 = vadd.f32 %v3269_v39, %v3113_v1  ;;  %6031 = vmatmul.msk.bf16.gmra.mxu3 %vm361_vm1, %v3372_v30  ;;  %v3115_v42 = vpop.f32.mrf.mxu1  ;;  %v2991_v17 = vld [vmem:[#allocation2 + $0xf1] sm:$0xff] }
 0x38a   : > { %2899 = vst.msk [vmem:[#allocation2 + $0xfb] sm:$0xff] %vm361_vm1, %v2863_v25  ;;  %v2536_v4 = vmul.f32 %v7874_v60, %v2496_v26  ;;  %6048 = vmatmul.msk.bf16.gmra.mxu0 %vm361_vm1, %v3371_v61  ;;  %v2936_v61 = vld [vmem:[#allocation2 + $0xf0] sm:$0xff] }
 0x38c   : > { %v2576_v48 = vadd.f32 %v7880_v35, %v2536_v4  ;;  %v7923_v5 = vpop.f32.mrf.mxu3  ;;  %v2817_v4 = vpop.permute.xlu2 %2816 }
 0x38e   : > { %v2612_v63 = vmax.f32 %v2576_v48, 0.0 }
 0x38f   : > { %v2453_v14 = vpop.f32.mrf.mxu0 }
 0x390   : > { %v3271_v21 = vpop.f32.mrf.mxu2  ;;  %v2864_v7 = vmul.f32 %v2807_v45, %v2612_v63  ;;  %v2497_v15 = vadd.f32 %v2453_v14, %v2265_v3 }
 0x391   : > { %v7926_v32 = vadd.f32 %v3271_v21, %v3115_v42  ;;  %v3118_v2 = vpop.f32.mrf.mxu1  ;;  %v2992_v8 = vld [vmem:[#allocation2 + $0xf9] sm:$0xff] }
 0x392   : > { %v2937_v19 = vld [vmem:[#allocation2 + $0xf8] sm:$0xff]  ;;  %2900 = vst.msk [vmem:[#allocation2 + $0x103] sm:$0xff] %vm361_vm1, %v2864_v7  ;;  %v2537_v1 = vmul.f32 %v7874_v60, %v2497_v15  ;;  %v3012_v62 = vpack.c.bf16 %v2992_v8, %v2991_v17 }
 0x393   : > { %v2957_v13 = vpack.c.bf16 %v2937_v19, %v2936_v61 }
 0x394   : > { %v2577_v36 = vadd.f32 %v7880_v35, %v2537_v1  ;;  %v7931_v46 = vpop.f32.mrf.mxu3  ;;  %6002 = vmatmul.msk.bf16.gmra.mxu1 %vm361_vm1, %v3012_v62  ;;  %v3348_v62 = vld [vmem:[#allocation2 + $0x9a] sm:$0xff] }
 0x395   : > { %6020 = vmatmul.msk.bf16.gmra.mxu2 %vm361_vm1, %v2957_v13  ;;  %v6137_v13 = vld [vmem:[%s8926_s5 + $0x20] sm:$0xf] }
 0x396   : > { %v2613_v52 = vmax.f32 %v2577_v36, 0.0  ;;  %v2822_v36 = vpop.permute.xlu0 %2821  ;;  %v4928_v29 = vsel %vm678_vm0, %v6137_v13, 0 }
 0x397   : > { %v2456_v34 = vpop.f32.mrf.mxu0  ;;  %4937 = vmatpush.bf16.msra.mxu1 %v4928_v29 }
 0x398   : > { %v3274_v31 = vpop.f32.mrf.mxu2  ;;  %v2865_v0 = vmul.f32 %v2812_v12, %v2613_v52  ;;  %v2498_v39 = vadd.f32 %v2456_v34, %v2266_v38  ;;  %v2268_v12 = vadd.f32 %v7923_v5, %v9127_v47  ;;  %v3347_v52 = vld [vmem:[#allocation2 + $0x92] sm:$0xff] }
 0x399   : > { %v7939_v22 = vadd.f32 %v3274_v31, %v3118_v2  ;;  %6032 = vmatmul.msk.bf16.gmra.mxu3 %vm361_vm1, %v3373_v10  ;;  %v3120_v56 = vpop.f32.mrf.mxu1  ;;  %v2993_v14 = vld [vmem:[#allocation2 + $0x101] sm:$0xff]  ;;  %v3374_v51 = vpack.c.bf16 %v3348_v62, %v3347_v52 }
 0x39a   : > { %2901 = vst.msk [vmem:[#allocation2 + $0x10b] sm:$0xff] %vm361_vm1, %v2865_v0  ;;  %v2538_v49 = vmul.f32 %v7874_v60, %v2498_v39  ;;  %6049 = vmatmul.msk.bf16.gmra.mxu0 %vm361_vm1, %v3372_v30  ;;  %v2938_v21 = vld [vmem:[#allocation2 + $0x100] sm:$0xff]  ;;  %v9128_v0 = vld [vmem:[#allocation10_spill] sm:$0xff] }
 0x39b   : > { %v1835_v39 = vadd.f32 %v7694_v24, %v9128_v0  ;;  %v3826_v0 = vld [vmem:[#allocation2 + $0x1b] sm:$0xff] }
 0x39c   : > { %v2578_v25 = vadd.f32 %v7880_v35, %v2538_v49  ;;  %v3451_v26 = vpop.f32.mrf.mxu3 }
 0x39d   : > { %v7952_v42 = vadd.f32 %v3451_v26, %v7711_v54  ;;  %v6118_v54 = vld [vmem:[%s8926_s5 + $0x1c] sm:$0xf]  ;;  %v1989_v23 = vadd.f32 %v7696_v53, %v1835_v39  ;;  %v2827_v26 = vpop.permute.xlu1 %2826 }
 0x39e   : > { %v2614_v41 = vmax.f32 %v2578_v25, 0.0  ;;  %v4680_v61 = vsel %vm678_vm0, %v6118_v54, 0 }
 0x39f   : > { %v2458_v30 = vpop.f32.mrf.mxu0  ;;  %4689 = vmatpush.bf16.msra.mxu0 %v4680_v61 }
 0x3a0   : > { %v3276_v48 = vpop.f32.mrf.mxu2  ;;  %v2866_v45 = vmul.f32 %v2817_v4, %v2614_v41  ;;  %v2499_v3 = vadd.f32 %v2458_v30, %v2267_v28  ;;  %v2269_v4 = vadd.f32 %v7931_v46, %v1989_v23 }
 0x3a1   : > { %v7955_v63 = vadd.f32 %v3276_v48, %v3120_v56  ;;  %v3123_v7 = vpop.f32.mrf.mxu1  ;;  %v2994_v15 = vld [vmem:[#allocation2 + $0x109] sm:$0xff] }
 0x3a2   : > { %v2939_v17 = vld [vmem:[#allocation2 + $0x108] sm:$0xff]  ;;  %2902 = vst.msk [vmem:[#allocation2 + $0x113] sm:$0xff] %vm361_vm1, %v2866_v45  ;;  %v2539_v44 = vmul.f32 %v7874_v60, %v2499_v3  ;;  %v3013_v2 = vpack.c.bf16 %v2994_v15, %v2993_v14 }
 0x3a3   : > { %v2958_v8 = vpack.c.bf16 %v2939_v17, %v2938_v21 }
 0x3a4   : > { %v2579_v19 = vadd.f32 %v7880_v35, %v2539_v44  ;;  %v7964_v1 = vpop.f32.mrf.mxu3  ;;  %6003 = vmatmul.msk.bf16.gmra.mxu1 %vm361_vm1, %v3013_v2  ;;  %v3350_v44 = vld [vmem:[#allocation2 + $0xaa] sm:$0xff] }
 0x3a5   : > { %6021 = vmatmul.msk.bf16.gmra.mxu2 %vm361_vm1, %v2958_v8  ;;  %v2832_v8 = vpop.permute.xlu2 %2831 }
 0x3a6   : > { %v2615_v38 = vmax.f32 %v2579_v19, 0.0  ;;  %v3349_v19 = vld [vmem:[#allocation2 + $0xa2] sm:$0xff] }
 0x3a7   : > { %v2461_v34 = vpop.f32.mrf.mxu0 }
 0x3a8   : > { %v3279_v31 = vpop.f32.mrf.mxu2  ;;  %v2867_v56 = vmul.f32 %v2822_v36, %v2615_v38  ;;  %v2500_v49 = vadd.f32 %v2461_v34, %v2268_v12  ;;  %v3375_v36 = vpack.c.bf16 %v3350_v44, %v3349_v19  ;;  %v3353_v44 = vld [vmem:[#allocation2 + $0xc2] sm:$0xff] }
 0x3a9   : > { %v7976_v18 = vadd.f32 %v3279_v31, %v3123_v7  ;;  %6033 = vmatmul.msk.bf16.gmra.mxu3 %vm361_vm1, %v3374_v51  ;;  %v3125_v16 = vpop.f32.mrf.mxu1  ;;  %v2995_v14 = vld [vmem:[#allocation2 + $0x111] sm:$0xff] }
 0x3aa   : > { %2903 = vst.msk [vmem:[#allocation2 + $0x11b] sm:$0xff] %vm361_vm1, %v2867_v56  ;;  %v2540_v5 = vmul.f32 %v7874_v60, %v2500_v49  ;;  %6050 = vmatmul.msk.bf16.gmra.mxu0 %vm361_vm1, %v3373_v10  ;;  %v2940_v7 = vld [vmem:[#allocation2 + $0x110] sm:$0xff] }
 0x3ac   : > { %v2580_v11 = vadd.f32 %v7880_v35, %v2540_v5  ;;  %v3456_v25 = vpop.f32.mrf.mxu3  ;;  %v4073_v5 = vld [vmem:[#allocation2 + $0x14] sm:$0xff] }
 0x3ad   : > { %v3543_v24 = vadd.f32 %v3456_v25, %v7781_v58 }
 0x3ae   : > { %v2616_v28 = vmax.f32 %v2580_v11, 0.0 }
 0x3af   : > { %v2463_v41 = vpop.f32.mrf.mxu0 }
 0x3b0   : > { %v3281_v30 = vpop.f32.mrf.mxu2  ;;  %v2868_v48 = vmul.f32 %v2827_v26, %v2616_v28  ;;  %v2501_v45 = vadd.f32 %v2463_v41, %v2269_v4 }
 0x3b1   : > { %v7986_v3 = vadd.f32 %v3281_v30, %v3125_v16  ;;  %v3128_v21 = vpop.f32.mrf.mxu1  ;;  %v2996_v10 = vld [vmem:[#allocation2 + $0x119] sm:$0xff] }
 0x3b2   : > { %v2941_v53 = vld [vmem:[#allocation2 + $0x118] sm:$0xff]  ;;  %2904 = vst.msk [vmem:[#allocation2 + $0x123] sm:$0xff] %vm361_vm1, %v2868_v48  ;;  %v2541_v15 = vmul.f32 %v7874_v60, %v2501_v45  ;;  %v3014_v58 = vpack.c.bf16 %v2996_v10, %v2995_v14 }
 0x3b3   : > { %v2959_v17 = vpack.c.bf16 %v2941_v53, %v2940_v7  ;;  %v3825_v16 = vld [vmem:[#allocation2 + $0x13] sm:$0xff] }
 0x3b4   : > { %v2581_v46 = vadd.f32 %v7880_v35, %v2541_v15  ;;  %v3458_v54 = vpop.f32.mrf.mxu3  ;;  %6004 = vmatmul.msk.bf16.gmra.mxu1 %vm361_vm1, %v3014_v58  ;;  %v3827_v15 = vld [vmem:[#allocation2 + $0x23] sm:$0xff] }
 0x3b5   : > { %6022 = vmatmul.msk.bf16.gmra.mxu2 %vm361_vm1, %v2959_v17  ;;  %v3544_v2 = vadd.f32 %v3458_v54, %v7796_v43  ;;  %v3242_v43 = vadd.f32 %v7769_v59, %v7759_v40  ;;  %v3352_v40 = vld [vmem:[#allocation2 + $0xba] sm:$0xff] }
 0x3b6   : > { %v2617_v61 = vmax.f32 %v2581_v46, 0.0 }
 0x3b7   : > { %v3699_v13 = vpop.f32.mrf.mxu0  ;;  %v3542_v29 = vadd.f32 %v7964_v1, %v3242_v43 }
 0x3b8   : > { %v3284_v62 = vpop.f32.mrf.mxu2  ;;  %v2869_v47 = vmul.f32 %v2832_v8, %v2617_v61  ;;  %v7997_v12 = vadd.f32 %v3699_v13, %v7952_v42  ;;  %v4074_v42 = vld [vmem:[#allocation2 + $0x1c] sm:$0xff] }
 0x3b9   : > { %v7994_v60 = vadd.f32 %v3284_v62, %v3128_v21  ;;  %6034 = vmatmul.msk.bf16.gmra.mxu3 %vm361_vm1, %v3375_v36  ;;  %v3130_v35 = vpop.f32.mrf.mxu1  ;;  %v4109_v23 = vpack.c.bf16 %v4074_v42, %v4073_v5  ;;  %v3828_v21 = vld [vmem:[#allocation2 + $0x2b] sm:$0xff] }
 0x3ba   : > { %2905 = vst.msk [vmem:[#allocation2 + $0x12b] sm:$0xff] %vm361_vm1, %v2869_v47  ;;  %6051 = vmatmul.msk.bf16.gmra.mxu0 %vm361_vm1, %v3374_v51  ;;  %v3861_v51 = vpack.c.bf16 %v3826_v0, %v3825_v16  ;;  %v3862_v58 = vpack.c.bf16 %v3828_v21, %v3827_v15  ;;  %v3829_v0 = vld [vmem:[#allocation2 + $0x33] sm:$0xff] }
 0x3bc   : > { %v3461_v38 = vpop.f32.mrf.mxu3 }
 0x3bd   : > { %v3545_v52 = vadd.f32 %v3461_v38, %v7809_v37  ;;  %v3351_v37 = vld [vmem:[#allocation2 + $0xb2] sm:$0xff]  ;;  %v3830_v38 = vld [vmem:[#allocation2 + $0x3b] sm:$0xff] }
 0x3be   : > { %v3376_v26 = vpack.c.bf16 %v3352_v40, %v3351_v37  ;;  %v3863_v42 = vpack.c.bf16 %v3830_v38, %v3829_v0 }
 0x3bf   : > { %v3701_v31 = vpop.f32.mrf.mxu0 }
 0x3c0   : > { %v3286_v34 = vpop.f32.mrf.mxu2  ;;  %v8008_v56 = vadd.f32 %v3701_v31, %v3542_v29 }
 0x3c1   : > { %v8006_v39 = vadd.f32 %v3286_v34, %v3130_v35  ;;  %v3133_v49 = vpop.f32.mrf.mxu1 }
 0x3c4   : > { %v3463_v11 = vpop.f32.mrf.mxu3  ;;  %6062 = vmatmul.msk.bf16.vlgmr.msrb.gmra.mxu1 %vm361_vm1, %v3861_v51  ;;  %v3355_v51 = vld [vmem:[#allocation2 + $0xd2] sm:$0xff] }
 0x3c5   : > { %6081 = vmatmul.msk.bf16.vlgmr.msrb.gmra.mxu2 %vm361_vm1, %v4109_v23  ;;  %v3546_v59 = vadd.f32 %v3463_v11, %v7820_v27  ;;  %v4076_v27 = vld [vmem:[#allocation2 + $0x2c] sm:$0xff] }
 0x3c7   : > { %v3704_v25 = vpop.f32.mrf.mxu0 }
 0x3c8   : > { %v3289_v1 = vpop.f32.mrf.mxu2  ;;  %v8015_v28 = vadd.f32 %v3704_v25, %v3543_v24  ;;  %v4075_v24 = vld [vmem:[#allocation2 + $0x24] sm:$0xff] }
 0x3c9   : > { %v8013_v4 = vadd.f32 %v3289_v1, %v3133_v49  ;;  %6035 = vmatmul.msk.bf16.gmra.mxu3 %vm361_vm1, %v3376_v26  ;;  %v3135_v41 = vpop.f32.mrf.mxu1  ;;  %v8024_v17 = vpack.c.bf16 %v4076_v27, %v4075_v24 }
 0x3ca   : > { %6052 = vmatmul.msk.bf16.gmra.mxu0 %vm361_vm1, %v3375_v36 }
 0x3cc   : > { %v3466_v30 = vpop.f32.mrf.mxu3 }
 0x3cd   : > { %v3547_v48 = vadd.f32 %v3466_v30, %v7833_v55  ;;  %v3354_v55 = vld [vmem:[#allocation2 + $0xca] sm:$0xff] }
 0x3cf   : > { %v3706_v14 = vpop.f32.mrf.mxu0 }
 0x3d0   : > { %v3291_v45 = vpop.f32.mrf.mxu2  ;;  %v8022_v7 = vadd.f32 %v3706_v14, %v3544_v2  ;;  %v3377_v2 = vpack.c.bf16 %v3354_v55, %v3353_v44  ;;  %v3357_v55 = vld [vmem:[#allocation2 + $0xe2] sm:$0xff] }
 0x3d1   : > { %v8020_v10 = vadd.f32 %v3291_v45, %v3135_v41  ;;  %v3138_v53 = vpop.f32.mrf.mxu1  ;;  %v3832_v45 = vld [vmem:[#allocation2 + $0x4b] sm:$0xff] }
 0x3d4   : > { %v3468_v46 = vpop.f32.mrf.mxu3  ;;  %6063 = vmatmul.msk.bf16.gmra.mxu1 %vm361_vm1, %v3862_v58 }
 0x3d5   : > { %6082 = vmatmul.msk.bf16.gmra.mxu2 %vm361_vm1, %v8024_v17  ;;  %v3548_v54 = vadd.f32 %v3468_v46, %v7844_v50  ;;  %v4078_v50 = vld [vmem:[#allocation2 + $0x3c] sm:$0xff] }
 0x3d7   : > { %v3709_v61 = vpop.f32.mrf.mxu0 }
 0x3d8   : > { %v3294_v8 = vpop.f32.mrf.mxu2  ;;  %v8032_v62 = vadd.f32 %v3709_v61, %v3545_v52  ;;  %v4077_v52 = vld [vmem:[#allocation2 + $0x34] sm:$0xff] }
 0x3d9   : > { %v8030_v19 = vadd.f32 %v3294_v8, %v3138_v53  ;;  %6036 = vmatmul.msk.bf16.gmra.mxu3 %vm361_vm1, %v3377_v2  ;;  %v3140_v13 = vpop.f32.mrf.mxu1  ;;  %v8041_v49 = vpack.c.bf16 %v4078_v50, %v4077_v52  ;;  %v3831_v53 = vld [vmem:[#allocation2 + $0x43] sm:$0xff]  ;;  %v3834_v50 = vld [vmem:[#allocation2 + $0x5b] sm:$0xff] }
 0x3da   : > { %6053 = vmatmul.msk.bf16.gmra.mxu0 %vm361_vm1, %v3376_v26  ;;  %v3864_v15 = vpack.c.bf16 %v3832_v45, %v3831_v53 }
 0x3dc   : > { %v3471_v36 = vpop.f32.mrf.mxu3 }
 0x3dd   : > { %v3549_v47 = vadd.f32 %v3471_v36, %v7857_v20  ;;  %v3356_v20 = vld [vmem:[#allocation2 + $0xda] sm:$0xff] }
 0x3de   : > { %v3378_v40 = vpack.c.bf16 %v3356_v20, %v3355_v51 }
 0x3df   : > { %v3711_v43 = vpop.f32.mrf.mxu0 }
 0x3e0   : > { %v3296_v35 = vpop.f32.mrf.mxu2  ;;  %v8039_v34 = vadd.f32 %v3711_v43, %v3546_v59 }
 0x3e1   : > { %v8037_v29 = vadd.f32 %v3296_v35, %v3140_v13  ;;  %v3143_v31 = vpop.f32.mrf.mxu1 }
 0x3e4   : > { %v3473_v16 = vpop.f32.mrf.mxu3  ;;  %6064 = vmatmul.msk.bf16.gmra.mxu1 %vm361_vm1, %v3863_v42  ;;  %v3833_v42 = vld [vmem:[#allocation2 + $0x53] sm:$0xff] }
 0x3e5   : > { %6083 = vmatmul.msk.bf16.gmra.mxu2 %vm361_vm1, %v8041_v49  ;;  %v3550_v5 = vadd.f32 %v3473_v16, %v7868_v57  ;;  %v4080_v57 = vld [vmem:[#allocation2 + $0x4c] sm:$0xff]  ;;  %v3865_v16 = vpack.c.bf16 %v3834_v50, %v3833_v42 }
 0x3e7   : > { %v3714_v11 = vpop.f32.mrf.mxu0 }
 0x3e8   : > { %v3299_v23 = vpop.f32.mrf.mxu2  ;;  %v8049_v37 = vadd.f32 %v3714_v11, %v3547_v48  ;;  %v4079_v48 = vld [vmem:[#allocation2 + $0x44] sm:$0xff]  ;;  %v3359_v11 = vld [vmem:[#allocation2 + $0xf2] sm:$0xff] }
 0x3e9   : > { %v8047_v59 = vadd.f32 %v3299_v23, %v3143_v31  ;;  %6037 = vmatmul.msk.bf16.gmra.mxu3 %vm361_vm1, %v3378_v40  ;;  %v3145_v1 = vpop.f32.mrf.mxu1  ;;  %v8058_v24 = vpack.c.bf16 %v4080_v57, %v4079_v48  ;;  %v3836_v48 = vld [vmem:[#allocation2 + $0x6b] sm:$0xff] }
 0x3ea   : > { %6054 = vmatmul.msk.bf16.gmra.mxu0 %vm361_vm1, %v3377_v2 }
 0x3ec   : > { %v3476_v25 = vpop.f32.mrf.mxu3 }
 0x3ed   : > { %v3551_v26 = vadd.f32 %v3476_v25, %v7891_v9  ;;  %v3358_v9 = vld [vmem:[#allocation2 + $0xea] sm:$0xff] }
 0x3ef   : > { %v3716_v30 = vpop.f32.mrf.mxu0 }
 0x3f0   : > { %v3301_v41 = vpop.f32.mrf.mxu2  ;;  %v8056_v21 = vadd.f32 %v3716_v30, %v3548_v54  ;;  %v3379_v54 = vpack.c.bf16 %v3358_v9, %v3357_v55  ;;  %v3835_v55 = vld [vmem:[#allocation2 + $0x63] sm:$0xff] }
 0x3f1   : > { %v8054_v14 = vadd.f32 %v3301_v41, %v3145_v1  ;;  %v3148_v27 = vpop.f32.mrf.mxu1 }
 0x3f4   : > { %v3478_v58 = vpop.f32.mrf.mxu3  ;;  %6065 = vmatmul.msk.bf16.gmra.mxu1 %vm361_vm1, %v3864_v15 }
 0x3f5   : > { %6084 = vmatmul.msk.bf16.gmra.mxu2 %vm361_vm1, %v8058_v24  ;;  %v3552_v46 = vadd.f32 %v3478_v58, %v7902_v33  ;;  %v4082_v33 = vld [vmem:[#allocation2 + $0x5c] sm:$0xff] }
 0x3f7   : > { %v3719_v8 = vpop.f32.mrf.mxu0 }
 0x3f8   : > { %v3304_v44 = vpop.f32.mrf.mxu2  ;;  %v8066_v2 = vadd.f32 %v3719_v8, %v3549_v47  ;;  %v4081_v47 = vld [vmem:[#allocation2 + $0x54] sm:$0xff] }
 0x3f9   : > { %v8064_v61 = vadd.f32 %v3304_v44, %v3148_v27  ;;  %6038 = vmatmul.msk.bf16.gmra.mxu3 %vm361_vm1, %v3379_v54  ;;  %v3150_v13 = vpop.f32.mrf.mxu1  ;;  %v8075_v20 = vpack.c.bf16 %v4082_v33, %v4081_v47  ;;  %v3866_v44 = vpack.c.bf16 %v3836_v48, %v3835_v55  ;;  %v3363_v48 = vld [vmem:[#allocation2 + $0x112] sm:$0xff] }
 0x3fa   : > { %6055 = vmatmul.msk.bf16.gmra.mxu0 %vm361_vm1, %v3378_v40 }
 0x3fc   : > { %v3481_v36 = vpop.f32.mrf.mxu3 }
 0x3fd   : > { %v3553_v35 = vadd.f32 %v3481_v36, %v7915_v6  ;;  %v3360_v6 = vld [vmem:[#allocation2 + $0xfa] sm:$0xff]  ;;  %v3361_v36 = vld [vmem:[#allocation2 + $0x102] sm:$0xff] }
 0x3ff   : > { %v3721_v38 = vpop.f32.mrf.mxu0 }
 0x400   : > { %v3306_v43 = vpop.f32.mrf.mxu2  ;;  %v8073_v0 = vadd.f32 %v3721_v38, %v3550_v5  ;;  %v3380_v5 = vpack.c.bf16 %v3360_v6, %v3359_v11  ;;  %v3838_v6 = vld [vmem:[#allocation2 + $0x7b] sm:$0xff] }
 0x401   : > { %v8071_v31 = vadd.f32 %v3306_v43, %v3150_v13  ;;  %v3153_v52 = vpop.f32.mrf.mxu1 }
 0x404   : > { %v3483_v51 = vpop.f32.mrf.mxu3  ;;  %6066 = vmatmul.msk.bf16.gmra.mxu1 %vm361_vm1, %v3865_v16 }
 0x405   : > { %6085 = vmatmul.msk.bf16.gmra.mxu2 %vm361_vm1, %v8075_v20  ;;  %v3554_v23 = vadd.f32 %v3483_v51, %v7926_v32  ;;  %v4084_v32 = vld [vmem:[#allocation2 + $0x6c] sm:$0xff] }
 0x407   : > { %v3724_v1 = vpop.f32.mrf.mxu0 }
 0x408   : > { %v3309_v40 = vpop.f32.mrf.mxu2  ;;  %v8083_v41 = vadd.f32 %v3724_v1, %v3551_v26  ;;  %v4083_v26 = vld [vmem:[#allocation2 + $0x64] sm:$0xff] }
 0x409   : > { %v8081_v25 = vadd.f32 %v3309_v40, %v3153_v52  ;;  %6039 = vmatmul.msk.bf16.gmra.mxu3 %vm361_vm1, %v3380_v5  ;;  %v3155_v30 = vpop.f32.mrf.mxu1  ;;  %v8092_v8 = vpack.c.bf16 %v4084_v32, %v4083_v26 }
 0x40a   : > { %6056 = vmatmul.msk.bf16.gmra.mxu0 %vm361_vm1, %v3379_v54 }
 0x40c   : > { %v3486_v45 = vpop.f32.mrf.mxu3 }
 0x40d   : > { %v3555_v57 = vadd.f32 %v3486_v45, %v7939_v22  ;;  %v3362_v22 = vld [vmem:[#allocation2 + $0x10a] sm:$0xff] }
 0x40f   : > { %v3726_v53 = vpop.f32.mrf.mxu0 }
 0x410   : > { %v3311_v27 = vpop.f32.mrf.mxu2  ;;  %v8090_v58 = vadd.f32 %v3726_v53, %v3552_v46  ;;  %v3381_v46 = vpack.c.bf16 %v3362_v22, %v3361_v36 }
 0x411   : > { %v8088_v15 = vadd.f32 %v3311_v27, %v3155_v30  ;;  %v3158_v9 = vpop.f32.mrf.mxu1  ;;  %v3837_v30 = vld [vmem:[#allocation2 + $0x73] sm:$0xff] }
 0x412   : > { %v3867_v45 = vpack.c.bf16 %v3838_v6, %v3837_v30 }
 0x414   : > { %v3488_v13 = vpop.f32.mrf.mxu3  ;;  %6067 = vmatmul.msk.bf16.gmra.mxu1 %vm361_vm1, %v3866_v44 }
 0x415   : > { %6086 = vmatmul.msk.bf16.gmra.mxu2 %vm361_vm1, %v8092_v8  ;;  %v3556_v54 = vadd.f32 %v3488_v13, %v7955_v63  ;;  %v4086_v63 = vld [vmem:[#allocation2 + $0x7c] sm:$0xff] }
 0x417   : > { %v3729_v38 = vpop.f32.mrf.mxu0 }
 0x418   : > { %v3314_v43 = vpop.f32.mrf.mxu2  ;;  %v8100_v33 = vadd.f32 %v3729_v38, %v3553_v35  ;;  %v4085_v35 = vld [vmem:[#allocation2 + $0x74] sm:$0xff]  ;;  %v3840_v38 = vld [vmem:[#allocation2 + $0x8b] sm:$0xff] }
 0x419   : > { %v8098_v50 = vadd.f32 %v3314_v43, %v3158_v9  ;;  %6040 = vmatmul.msk.bf16.gmra.mxu3 %vm361_vm1, %v3381_v46  ;;  %v3160_v52 = vpop.f32.mrf.mxu1  ;;  %v8109_v27 = vpack.c.bf16 %v4086_v63, %v4085_v35 }
 0x41a   : > { %6057 = vmatmul.msk.bf16.gmra.mxu0 %vm361_vm1, %v3380_v5 }
 0x41c   : > { %v3491_v42 = vpop.f32.mrf.mxu3 }
 0x41d   : > { %v3557_v47 = vadd.f32 %v3491_v42, %v7976_v18  ;;  %v3364_v18 = vld [vmem:[#allocation2 + $0x11a] sm:$0xff] }
 0x41f   : > { %v3731_v51 = vpop.f32.mrf.mxu0 }
 0x420   : > { %v3316_v16 = vpop.f32.mrf.mxu2  ;;  %v8107_v40 = vadd.f32 %v3731_v51, %v3554_v23  ;;  %v3382_v23 = vpack.c.bf16 %v3364_v18, %v3363_v48  ;;  %v3839_v51 = vld [vmem:[#allocation2 + $0x83] sm:$0xff] }
 0x421   : > { %v8105_v11 = vadd.f32 %v3316_v16, %v3160_v52  ;;  %v3163_v1 = vpop.f32.mrf.mxu1  ;;  %v3868_v6 = vpack.c.bf16 %v3840_v38, %v3839_v51 }
 0x424   : > { %v3493_v53 = vpop.f32.mrf.mxu3  ;;  %6068 = vmatmul.msk.bf16.gmra.mxu1 %vm361_vm1, %v3867_v45 }
 0x425   : > { %6087 = vmatmul.msk.bf16.gmra.mxu2 %vm361_vm1, %v8109_v27  ;;  %v3558_v5 = vadd.f32 %v3493_v53, %v7986_v3  ;;  %v4088_v3 = vld [vmem:[#allocation2 + $0x8c] sm:$0xff] }
 0x427   : > { %v3734_v9 = vpop.f32.mrf.mxu0 }
 0x428   : > { %v3319_v32 = vpop.f32.mrf.mxu2  ;;  %v8117_v26 = vadd.f32 %v3734_v9, %v3555_v57  ;;  %v4087_v57 = vld [vmem:[#allocation2 + $0x84] sm:$0xff]  ;;  %v3842_v9 = vld [vmem:[#allocation2 + $0x9b] sm:$0xff] }
 0x429   : > { %v8115_v55 = vadd.f32 %v3319_v32, %v3163_v1  ;;  %6041 = vmatmul.msk.bf16.gmra.mxu3 %vm361_vm1, %v3382_v23  ;;  %v3165_v44 = vpop.f32.mrf.mxu1  ;;  %v8126_v63 = vpack.c.bf16 %v4088_v3, %v4087_v57  ;;  %v3611_v57 = vld [vmem:[#allocation2 + $0x122] sm:$0xff] }
 0x42a   : > { %6058 = vmatmul.msk.bf16.gmra.mxu0 %vm361_vm1, %v3381_v46 }
 0x42c   : > { %v3496_v13 = vpop.f32.mrf.mxu3 }
 0x42d   : > { %v3559_v22 = vadd.f32 %v3496_v13, %v7994_v60 }
 0x42f   : > { %v3736_v43 = vpop.f32.mrf.mxu0 }
 0x430   : > { %v3321_v36 = vpop.f32.mrf.mxu2  ;;  %v8124_v42 = vadd.f32 %v3736_v43, %v3556_v54  ;;  %v4089_v43 = vld [vmem:[#allocation2 + $0x94] sm:$0xff] }
 0x431   : > { %v8122_v52 = vadd.f32 %v3321_v36, %v3165_v44  ;;  %v3168_v16 = vpop.f32.mrf.mxu1  ;;  %v4090_v44 = vld [vmem:[#allocation2 + $0x9c] sm:$0xff] }
 0x432   : > { %v8145_v3 = vpack.c.bf16 %v4090_v44, %v4089_v43 }
 0x434   : > { %v3498_v1 = vpop.f32.mrf.mxu3  ;;  %6069 = vmatmul.msk.bf16.gmra.mxu1 %vm361_vm1, %v3868_v6 }
 0x435   : > { %6088 = vmatmul.msk.bf16.gmra.mxu2 %vm361_vm1, %v8126_v63  ;;  %v3560_v60 = vadd.f32 %v3498_v1, %v8006_v39 }
 0x437   : > { %v3739_v30 = vpop.f32.mrf.mxu0 }
 0x438   : > { %v3324_v46 = vpop.f32.mrf.mxu2  ;;  %v8134_v54 = vadd.f32 %v3739_v30, %v3557_v47  ;;  %v3841_v47 = vld [vmem:[#allocation2 + $0x93] sm:$0xff] }
 0x439   : > { %v8132_v35 = vadd.f32 %v3324_v46, %v3168_v16  ;;  %6100 = vmatmul.msk.bf16.vlgmr.msra.gmra.mxu3 %vm361_vm1, %v8024_v17  ;;  %v3170_v45 = vpop.f32.mrf.mxu1  ;;  %v3869_v17 = vpack.c.bf16 %v3842_v9, %v3841_v47  ;;  %v3612_v16 = vld [vmem:[#allocation2 + $0x12a] sm:$0xff] }
 0x43a   : > { %6059 = vmatmul.msk.bf16.gmra.mxu0 %vm361_vm1, %v3382_v23  ;;  %v4092_v9 = vld [vmem:[#allocation2 + $0xac] sm:$0xff]  ;;  %v3843_v47 = vld [vmem:[#allocation2 + $0xa3] sm:$0xff] }
 0x43c   : > { %v3501_v53 = vpop.f32.mrf.mxu3 }
 0x43d   : > { %v3561_v18 = vadd.f32 %v3501_v53, %v8013_v4 }
 0x43f   : > { %v3741_v32 = vpop.f32.mrf.mxu0 }
 0x440   : > { %v3326_v48 = vpop.f32.mrf.mxu2  ;;  %v8142_v13 = vadd.f32 %v3741_v32, %v3558_v5  ;;  %v3844_v32 = vld [vmem:[#allocation2 + $0xab] sm:$0xff] }
 0x441   : > { %v8140_v39 = vadd.f32 %v3326_v48, %v3170_v45  ;;  %v3947_v36 = vpop.f32.mrf.mxu1 }
 0x442   : > { %v4037_v38 = vadd.f32 %v3947_v36, %v7997_v12  ;;  %v3630_v12 = vpack.c.bf16 %v3612_v16, %v3611_v57  ;;  %v4570_v16 = vld [vmem:[#allocation2 + $0x2d] sm:$0xff]  ;;  %v4569_v57 = vld [vmem:[#allocation2 + $0x25] sm:$0xff] }
 0x444   : > { %v3503_v23 = vpop.f32.mrf.mxu3  ;;  %6070 = vmatmul.msk.bf16.gmra.mxu1 %vm361_vm1, %v3869_v17 }
 0x445   : > { %6089 = vmatmul.msk.bf16.gmra.mxu2 %vm361_vm1, %v8145_v3  ;;  %v3562_v4 = vadd.f32 %v3503_v23, %v8020_v10 }
 0x447   : > { %v3744_v51 = vpop.f32.mrf.mxu0 }
 0x448   : > { %v4195_v5 = vpop.f32.mrf.mxu2  ;;  %v8151_v6 = vadd.f32 %v3744_v51, %v3559_v22 }
 0x449   : > { %v8153_v1 = vadd.f32 %v4195_v5, %v4037_v38  ;;  %6101 = vmatmul.msk.bf16.gmra.mxu3 %vm361_vm1, %v8041_v49  ;;  %v3949_v46 = vpop.f32.mrf.mxu1  ;;  %v5382_v49 = vld [vmem:[%s8929_s8] sm:$0xf] }
 0x44a   : > { %v4038_v30 = vadd.f32 %v3949_v46, %v8008_v56  ;;  %6060 = vmatmul.msk.bf16.gmra.mxu0 %vm361_vm1, %v3630_v12  ;;  %v4091_v56 = vld [vmem:[#allocation2 + $0xa4] sm:$0xff]  ;;  %v5612_v43 = vsel %vm678_vm0, %v5382_v49, 0  ;;  %v4094_v49 = vld [vmem:[#allocation2 + $0xbc] sm:$0xff] }
 0x44b   : > { %v8169_v17 = vpack.c.bf16 %v4092_v9, %v4091_v56  ;;  %5621 = vmatpush.bf16.msra.mxu2 %v5612_v43  ;;  %v3846_v9 = vld [vmem:[#allocation2 + $0xbb] sm:$0xff]  ;;  %v3845_v56 = vld [vmem:[#allocation2 + $0xb3] sm:$0xff] }
 0x44c   : > { %v3506_v45 = vpop.f32.mrf.mxu3  ;;  %v4093_v43 = vld [vmem:[#allocation2 + $0xb4] sm:$0xff] }
 0x44d   : > { %v3563_v10 = vadd.f32 %v3506_v45, %v8030_v19  ;;  %v3870_v19 = vpack.c.bf16 %v3844_v32, %v3843_v47 }
 0x44f   : > { %v3746_v53 = vpop.f32.mrf.mxu0 }
 0x450   : > { %v4197_v48 = vpop.f32.mrf.mxu2  ;;  %v8160_v22 = vadd.f32 %v3746_v53, %v3560_v60 }
 0x451   : > { %v8162_v44 = vadd.f32 %v4197_v48, %v4038_v30  ;;  %v3952_v36 = vpop.f32.mrf.mxu1 }
 0x452   : > { %v4039_v38 = vadd.f32 %v3952_v36, %v8015_v28  ;;  %v4605_v28 = vpack.c.bf16 %v4570_v16, %v4569_v57 }
 0x454   : > { %v3508_v23 = vpop.f32.mrf.mxu3  ;;  %6071 = vmatmul.msk.bf16.gmra.mxu1 %vm361_vm1, %v3870_v19 }
 0x455   : > { %6090 = vmatmul.msk.bf16.gmra.mxu2 %vm361_vm1, %v8169_v17  ;;  %v3564_v60 = vadd.f32 %v3508_v23, %v8037_v29 }
 0x457   : > { %v3749_v51 = vpop.f32.mrf.mxu0 }
 0x458   : > { %v4200_v5 = vpop.f32.mrf.mxu2  ;;  %v8175_v12 = vadd.f32 %v3749_v51, %v3561_v18  ;;  %v4571_v51 = vld [vmem:[#allocation2 + $0x35] sm:$0xff] }
 0x459   : > { %v8177_v46 = vadd.f32 %v4200_v5, %v4039_v38  ;;  %6102 = vmatmul.msk.bf16.gmra.mxu3 %vm361_vm1, %v8058_v24  ;;  %v3954_v30 = vpop.f32.mrf.mxu1  ;;  %v3871_v38 = vpack.c.bf16 %v3846_v9, %v3845_v56  ;;  %v4096_v9 = vld [vmem:[#allocation2 + $0xcc] sm:$0xff]  ;;  %v3847_v56 = vld [vmem:[#allocation2 + $0xc3] sm:$0xff] }
 0x45a   : > { %v4040_v45 = vadd.f32 %v3954_v30, %v8022_v7  ;;  %6119 = vmatmul.msk.bf16.vlgmr.msra.gmra.mxu0 %vm361_vm1, %v4605_v28  ;;  %v8189_v7 = vpack.c.bf16 %v4094_v49, %v4093_v43  ;;  %v4095_v43 = vld [vmem:[#allocation2 + $0xc4] sm:$0xff] }
 0x45c   : > { %v3511_v53 = vpop.f32.mrf.mxu3 }
 0x45d   : > { %v3565_v29 = vadd.f32 %v3511_v53, %v8047_v59 }
 0x45f   : > { %v3751_v48 = vpop.f32.mrf.mxu0 }
 0x460   : > { %v4202_v32 = vpop.f32.mrf.mxu2  ;;  %v8184_v18 = vadd.f32 %v3751_v48, %v3562_v4  ;;  %v4572_v4 = vld [vmem:[#allocation2 + $0x3d] sm:$0xff] }
 0x461   : > { %v8186_v36 = vadd.f32 %v4202_v32, %v4040_v45  ;;  %v3957_v47 = vpop.f32.mrf.mxu1  ;;  %v3848_v32 = vld [vmem:[#allocation2 + $0xcb] sm:$0xff] }
 0x462   : > { %v4041_v24 = vadd.f32 %v3957_v47, %v8032_v62  ;;  %v4606_v62 = vpack.c.bf16 %v4572_v4, %v4571_v51 }
 0x464   : > { %v3513_v19 = vpop.f32.mrf.mxu3  ;;  %6072 = vmatmul.msk.bf16.gmra.mxu1 %vm361_vm1, %v3871_v38 }
 0x465   : > { %6091 = vmatmul.msk.bf16.gmra.mxu2 %vm361_vm1, %v8189_v7  ;;  %v3566_v59 = vadd.f32 %v3513_v19, %v8054_v14 }
 0x467   : > { %v3754_v23 = vpop.f32.mrf.mxu0 }
 0x468   : > { %v4205_v16 = vpop.f32.mrf.mxu2  ;;  %v8195_v5 = vadd.f32 %v3754_v23, %v3563_v10  ;;  %v4573_v23 = vld [vmem:[#allocation2 + $0x45] sm:$0xff] }
 0x469   : > { %v8197_v57 = vadd.f32 %v4205_v16, %v4041_v24  ;;  %6103 = vmatmul.msk.bf16.gmra.mxu3 %vm361_vm1, %v8075_v20  ;;  %v3959_v28 = vpop.f32.mrf.mxu1  ;;  %v3872_v24 = vpack.c.bf16 %v3848_v32, %v3847_v56  ;;  %v4098_v32 = vld [vmem:[#allocation2 + $0xdc] sm:$0xff]  ;;  %v3849_v56 = vld [vmem:[#allocation2 + $0xd3] sm:$0xff] }
 0x46a   : > { %v4042_v30 = vadd.f32 %v3959_v28, %v8039_v34  ;;  %6120 = vmatmul.msk.bf16.gmra.mxu0 %vm361_vm1, %v4606_v62  ;;  %v8209_v34 = vpack.c.bf16 %v4096_v9, %v4095_v43  ;;  %v4097_v43 = vld [vmem:[#allocation2 + $0xd4] sm:$0xff] }
 0x46c   : > { %v3516_v45 = vpop.f32.mrf.mxu3 }
 0x46d   : > { %v3567_v14 = vadd.f32 %v3516_v45, %v8064_v61 }
 0x46f   : > { %v3756_v53 = vpop.f32.mrf.mxu0 }
 0x470   : > { %v4207_v48 = vpop.f32.mrf.mxu2  ;;  %v8204_v10 = vadd.f32 %v3756_v53, %v3564_v60  ;;  %v4574_v60 = vld [vmem:[#allocation2 + $0x4d] sm:$0xff] }
 0x471   : > { %v8206_v49 = vadd.f32 %v4207_v48, %v4042_v30  ;;  %v3962_v47 = vpop.f32.mrf.mxu1  ;;  %v3850_v48 = vld [vmem:[#allocation2 + $0xdb] sm:$0xff] }
 0x472   : > { %v4043_v20 = vadd.f32 %v3962_v47, %v8049_v37  ;;  %v4607_v37 = vpack.c.bf16 %v4574_v60, %v4573_v23 }
 0x474   : > { %v3518_v38 = vpop.f32.mrf.mxu3  ;;  %6073 = vmatmul.msk.bf16.gmra.mxu1 %vm361_vm1, %v3872_v24 }
 0x475   : > { %6092 = vmatmul.msk.bf16.gmra.mxu2 %vm361_vm1, %v8209_v34  ;;  %v3568_v61 = vadd.f32 %v3518_v38, %v8071_v31 }
 0x477   : > { %v3759_v19 = vpop.f32.mrf.mxu0 }
 0x478   : > { %v4210_v4 = vpop.f32.mrf.mxu2  ;;  %v8215_v16 = vadd.f32 %v3759_v19, %v3565_v29  ;;  %v4575_v19 = vld [vmem:[#allocation2 + $0x55] sm:$0xff] }
 0x479   : > { %v8217_v51 = vadd.f32 %v4210_v4, %v4043_v20  ;;  %6104 = vmatmul.msk.bf16.gmra.mxu3 %vm361_vm1, %v8092_v8  ;;  %v3964_v62 = vpop.f32.mrf.mxu1  ;;  %v3873_v20 = vpack.c.bf16 %v3850_v48, %v3849_v56  ;;  %v4100_v48 = vld [vmem:[#allocation2 + $0xec] sm:$0xff]  ;;  %v3851_v56 = vld [vmem:[#allocation2 + $0xe3] sm:$0xff] }
 0x47a   : > { %v4044_v28 = vadd.f32 %v3964_v62, %v8056_v21  ;;  %6121 = vmatmul.msk.bf16.gmra.mxu0 %vm361_vm1, %v4607_v37  ;;  %v8229_v21 = vpack.c.bf16 %v4098_v32, %v4097_v43  ;;  %v4099_v43 = vld [vmem:[#allocation2 + $0xe4] sm:$0xff] }
 0x47c   : > { %v3521_v30 = vpop.f32.mrf.mxu3 }
 0x47d   : > { %v3569_v31 = vadd.f32 %v3521_v30, %v8081_v25 }
 0x47f   : > { %v3761_v45 = vpop.f32.mrf.mxu0 }
 0x480   : > { %v4212_v53 = vpop.f32.mrf.mxu2  ;;  %v8224_v29 = vadd.f32 %v3761_v45, %v3566_v59  ;;  %v4576_v59 = vld [vmem:[#allocation2 + $0x5d] sm:$0xff] }
 0x481   : > { %v8226_v9 = vadd.f32 %v4212_v53, %v4044_v28  ;;  %v3967_v47 = vpop.f32.mrf.mxu1  ;;  %v3852_v53 = vld [vmem:[#allocation2 + $0xeb] sm:$0xff] }
 0x482   : > { %v4045_v8 = vadd.f32 %v3967_v47, %v8066_v2  ;;  %v4608_v2 = vpack.c.bf16 %v4576_v59, %v4575_v19 }
 0x484   : > { %v3523_v24 = vpop.f32.mrf.mxu3  ;;  %6074 = vmatmul.msk.bf16.gmra.mxu1 %vm361_vm1, %v3873_v20 }
 0x485   : > { %6093 = vmatmul.msk.bf16.gmra.mxu2 %vm361_vm1, %v8229_v21  ;;  %v3570_v25 = vadd.f32 %v3523_v24, %v8088_v15 }
 0x487   : > { %v3764_v38 = vpop.f32.mrf.mxu0 }
 0x488   : > { %v4215_v60 = vpop.f32.mrf.mxu2  ;;  %v8235_v4 = vadd.f32 %v3764_v38, %v3567_v14  ;;  %v4577_v38 = vld [vmem:[#allocation2 + $0x65] sm:$0xff] }
 0x489   : > { %v8237_v23 = vadd.f32 %v4215_v60, %v4045_v8  ;;  %6105 = vmatmul.msk.bf16.gmra.mxu3 %vm361_vm1, %v8109_v27  ;;  %v3969_v37 = vpop.f32.mrf.mxu1  ;;  %v3874_v8 = vpack.c.bf16 %v3852_v53, %v3851_v56  ;;  %v4102_v53 = vld [vmem:[#allocation2 + $0xfc] sm:$0xff]  ;;  %v3853_v56 = vld [vmem:[#allocation2 + $0xf3] sm:$0xff] }
 0x48a   : > { %v4046_v62 = vadd.f32 %v3969_v37, %v8073_v0  ;;  %6122 = vmatmul.msk.bf16.gmra.mxu0 %vm361_vm1, %v4608_v2  ;;  %v8249_v0 = vpack.c.bf16 %v4100_v48, %v4099_v43  ;;  %v4101_v43 = vld [vmem:[#allocation2 + $0xf4] sm:$0xff] }
 0x48c   : > { %v3526_v28 = vpop.f32.mrf.mxu3 }
 0x48d   : > { %v3571_v15 = vadd.f32 %v3526_v28, %v8098_v50 }
 0x48f   : > { %v3766_v30 = vpop.f32.mrf.mxu0 }
 0x490   : > { %v4217_v45 = vpop.f32.mrf.mxu2  ;;  %v8244_v14 = vadd.f32 %v3766_v30, %v3568_v61  ;;  %v4578_v61 = vld [vmem:[#allocation2 + $0x6d] sm:$0xff] }
 0x491   : > { %v8246_v32 = vadd.f32 %v4217_v45, %v4046_v62  ;;  %v3972_v47 = vpop.f32.mrf.mxu1  ;;  %v3854_v45 = vld [vmem:[#allocation2 + $0xfb] sm:$0xff] }
 0x492   : > { %v4047_v27 = vadd.f32 %v3972_v47, %v8083_v41  ;;  %v4609_v41 = vpack.c.bf16 %v4578_v61, %v4577_v38 }
 0x494   : > { %v3528_v20 = vpop.f32.mrf.mxu3  ;;  %6075 = vmatmul.msk.bf16.gmra.mxu1 %vm361_vm1, %v3874_v8 }
 0x495   : > { %6094 = vmatmul.msk.bf16.gmra.mxu2 %vm361_vm1, %v8249_v0  ;;  %v3572_v50 = vadd.f32 %v3528_v20, %v8105_v11 }
 0x497   : > { %v3769_v24 = vpop.f32.mrf.mxu0 }
 0x498   : > { %v4220_v59 = vpop.f32.mrf.mxu2  ;;  %v8255_v60 = vadd.f32 %v3769_v24, %v3569_v31  ;;  %v4579_v24 = vld [vmem:[#allocation2 + $0x75] sm:$0xff] }
 0x499   : > { %v8257_v19 = vadd.f32 %v4220_v59, %v4047_v27  ;;  %6106 = vmatmul.msk.bf16.gmra.mxu3 %vm361_vm1, %v8126_v63  ;;  %v3974_v2 = vpop.f32.mrf.mxu1  ;;  %v3875_v27 = vpack.c.bf16 %v3854_v45, %v3853_v56  ;;  %v4103_v56 = vld [vmem:[#allocation2 + $0x104] sm:$0xff] }
 0x49a   : > { %v4048_v37 = vadd.f32 %v3974_v2, %v8090_v58  ;;  %6123 = vmatmul.msk.bf16.gmra.mxu0 %vm361_vm1, %v4609_v41  ;;  %v8269_v58 = vpack.c.bf16 %v4102_v53, %v4101_v43 }
 0x49c   : > { %v3531_v62 = vpop.f32.mrf.mxu3 }
 0x49d   : > { %v3573_v11 = vadd.f32 %v3531_v62, %v8115_v55 }
 0x49f   : > { %v3771_v28 = vpop.f32.mrf.mxu0 }
 0x4a0   : > { %v4222_v30 = vpop.f32.mrf.mxu2  ;;  %v8264_v31 = vadd.f32 %v3771_v28, %v3570_v25  ;;  %v4580_v25 = vld [vmem:[#allocation2 + $0x7d] sm:$0xff] }
 0x4a1   : > { %v8266_v48 = vadd.f32 %v4222_v30, %v4048_v37  ;;  %v3977_v47 = vpop.f32.mrf.mxu1  ;;  %v4104_v30 = vld [vmem:[#allocation2 + $0x10c] sm:$0xff] }
 0x4a2   : > { %v4049_v63 = vadd.f32 %v3977_v47, %v8100_v33  ;;  %v4610_v33 = vpack.c.bf16 %v4580_v25, %v4579_v24  ;;  %v3855_v47 = vld [vmem:[#allocation2 + $0x103] sm:$0xff] }
 0x4a3   : > { %v4581_v25 = vld [vmem:[#allocation2 + $0x85] sm:$0xff] }
 0x4a4   : > { %v3533_v8 = vpop.f32.mrf.mxu3  ;;  %6076 = vmatmul.msk.bf16.gmra.mxu1 %vm361_vm1, %v3875_v27  ;;  %v4582_v27 = vld [vmem:[#allocation2 + $0x8d] sm:$0xff] }
 0x4a5   : > { %6095 = vmatmul.msk.bf16.gmra.mxu2 %vm361_vm1, %v8269_v58  ;;  %v3574_v55 = vadd.f32 %v3533_v8, %v8122_v52 }
 0x4a7   : > { %v3774_v20 = vpop.f32.mrf.mxu0 }
 0x4a8   : > { %v4225_v61 = vpop.f32.mrf.mxu2  ;;  %v8275_v59 = vadd.f32 %v3774_v20, %v3571_v15  ;;  %v3856_v15 = vld [vmem:[#allocation2 + $0x10b] sm:$0xff] }
 0x4a9   : > { %v8277_v38 = vadd.f32 %v4225_v61, %v4049_v63  ;;  %6107 = vmatmul.msk.bf16.gmra.mxu3 %vm361_vm1, %v8145_v3  ;;  %v3979_v41 = vpop.f32.mrf.mxu1  ;;  %v3876_v43 = vpack.c.bf16 %v3856_v15, %v3855_v47  ;;  %v4106_v15 = vld [vmem:[#allocation2 + $0x11c] sm:$0xff]  ;;  %v3857_v47 = vld [vmem:[#allocation2 + $0x113] sm:$0xff] }
 0x4aa   : > { %v8282_v2 = vadd.f32 %v3979_v41, %v8107_v40  ;;  %6124 = vmatmul.msk.bf16.gmra.mxu0 %vm361_vm1, %v4610_v33  ;;  %v8291_v40 = vpack.c.bf16 %v4104_v30, %v4103_v56  ;;  %v4105_v56 = vld [vmem:[#allocation2 + $0x114] sm:$0xff] }
 0x4ac   : > { %v3536_v37 = vpop.f32.mrf.mxu3 }
 0x4ad   : > { %v3575_v52 = vadd.f32 %v3536_v37, %v8132_v35 }
 0x4af   : > { %v3776_v62 = vpop.f32.mrf.mxu0 }
 0x4b0   : > { %v8286_v28 = vpop.f32.mrf.mxu2  ;;  %v8288_v45 = vadd.f32 %v3776_v62, %v3572_v50 }
 0x4b1   : > { %v3982_v53 = vpop.f32.mrf.mxu1 }
 0x4b2   : > { %v4051_v3 = vadd.f32 %v3982_v53, %v8117_v26  ;;  %v4611_v26 = vpack.c.bf16 %v4582_v27, %v4581_v25 }
 0x4b4   : > { %v3538_v63 = vpop.f32.mrf.mxu3  ;;  %6077 = vmatmul.msk.bf16.gmra.mxu1 %vm361_vm1, %v3876_v43 }
 0x4b5   : > { %6096 = vmatmul.msk.bf16.gmra.mxu2 %vm361_vm1, %v8291_v40  ;;  %v3576_v35 = vadd.f32 %v3538_v63, %v8140_v39  ;;  %v4584_v63 = vld [vmem:[#allocation2 + $0x9d] sm:$0xff] }
 0x4b7   : > { %v3779_v8 = vpop.f32.mrf.mxu0 }
 0x4b8   : > { %v4230_v50 = vpop.f32.mrf.mxu2  ;;  %v8297_v20 = vadd.f32 %v3779_v8, %v3573_v11  ;;  %v3858_v11 = vld [vmem:[#allocation2 + $0x11b] sm:$0xff] }
 0x4b9   : > { %v8299_v61 = vadd.f32 %v4230_v50, %v4051_v3  ;;  %6108 = vmatmul.msk.bf16.gmra.mxu3 %vm361_vm1, %v8169_v17  ;;  %v3984_v24 = vpop.f32.mrf.mxu1  ;;  %v3877_v3 = vpack.c.bf16 %v3858_v11, %v3857_v47  ;;  %v4583_v8 = vld [vmem:[#allocation2 + $0x95] sm:$0xff] }
 0x4ba   : > { %v8304_v33 = vadd.f32 %v3984_v24, %v8124_v42  ;;  %6125 = vmatmul.msk.bf16.gmra.mxu0 %vm361_vm1, %v4611_v26  ;;  %v8313_v42 = vpack.c.bf16 %v4106_v15, %v4105_v56  ;;  %v4107_v15 = vld [vmem:[#allocation2 + $0x124] sm:$0xff] }
 0x4bc   : > { %v4443_v41 = vpop.f32.mrf.mxu3 }
 0x4bd   : > { %v4533_v39 = vadd.f32 %v4443_v41, %v8153_v1 }
 0x4bf   : > { %v3781_v37 = vpop.f32.mrf.mxu0 }
 0x4c0   : > { %v8308_v62 = vpop.f32.mrf.mxu2  ;;  %v8310_v30 = vadd.f32 %v3781_v37, %v3574_v55 }
 0x4c1   : > { %v3987_v53 = vpop.f32.mrf.mxu1 }
 0x4c2   : > { %v4053_v17 = vadd.f32 %v3987_v53, %v8134_v54  ;;  %v4612_v54 = vpack.c.bf16 %v4584_v63, %v4583_v8  ;;  %v4108_v53 = vld [vmem:[#allocation2 + $0x12c] sm:$0xff] }
 0x4c3   : > { %v4586_v63 = vld [vmem:[#allocation2 + $0xad] sm:$0xff] }
 0x4c4   : > { %v4445_v43 = vpop.f32.mrf.mxu3  ;;  %6078 = vmatmul.msk.bf16.gmra.mxu1 %vm361_vm1, %v3877_v3 }
 0x4c5   : > { %6097 = vmatmul.msk.bf16.gmra.mxu2 %vm361_vm1, %v8313_v42  ;;  %v4534_v1 = vadd.f32 %v4445_v43, %v8162_v44 }
 0x4c7   : > { %v3784_v27 = vpop.f32.mrf.mxu0 }
 0x4c8   : > { %v4235_v55 = vpop.f32.mrf.mxu2  ;;  %v8319_v50 = vadd.f32 %v3784_v27, %v3575_v52  ;;  %v3860_v52 = vld [vmem:[#allocation2 + $0x12b] sm:$0xff] }
 0x4c9   : > { %v8321_v25 = vadd.f32 %v4235_v55, %v4053_v17  ;;  %6109 = vmatmul.msk.bf16.gmra.mxu3 %vm361_vm1, %v8189_v7  ;;  %v3989_v26 = vpop.f32.mrf.mxu1  ;;  %v3859_v17 = vld [vmem:[#allocation2 + $0x123] sm:$0xff] }
 0x4ca   : > { %v8326_v24 = vadd.f32 %v3989_v26, %v8142_v13  ;;  %6126 = vmatmul.msk.bf16.gmra.mxu0 %vm361_vm1, %v4612_v54  ;;  %v3878_v3 = vpack.c.bf16 %v3860_v52, %v3859_v17  ;;  %v8335_v13 = vpack.c.bf16 %v4108_v53, %v4107_v15  ;;  %v4818_v53 = vld [vmem:[#allocation2 + $0x2e] sm:$0xff]  ;;  %v4817_v17 = vld [vmem:[#allocation2 + $0x26] sm:$0xff] }
 0x4cc   : > { %v4448_v41 = vpop.f32.mrf.mxu3 }
 0x4cd   : > { %v4535_v44 = vadd.f32 %v4448_v41, %v8177_v46 }
 0x4cf   : > { %v3786_v37 = vpop.f32.mrf.mxu0 }
 0x4d0   : > { %v8330_v11 = vpop.f32.mrf.mxu2  ;;  %v8332_v47 = vadd.f32 %v3786_v37, %v3576_v35  ;;  %v4585_v35 = vld [vmem:[#allocation2 + $0xa5] sm:$0xff] }
 0x4d1   : > { %v3992_v56 = vpop.f32.mrf.mxu1 }
 0x4d2   : > { %v4055_v7 = vadd.f32 %v3992_v56, %v8151_v6  ;;  %v4613_v6 = vpack.c.bf16 %v4586_v63, %v4585_v35 }
 0x4d4   : > { %v4450_v43 = vpop.f32.mrf.mxu3  ;;  %6079 = vmatmul.msk.bf16.gmra.mxu1 %vm361_vm1, %v3878_v3 }
 0x4d5   : > { %6098 = vmatmul.msk.bf16.gmra.mxu2 %vm361_vm1, %v8335_v13  ;;  %v4536_v46 = vadd.f32 %v4450_v43, %v8186_v36  ;;  %v4588_v43 = vld [vmem:[#allocation2 + $0xbd] sm:$0xff] }
 0x4d7   : > { %v4691_v55 = vpop.f32.mrf.mxu0 }
 0x4d8   : > { %v4240_v27 = vpop.f32.mrf.mxu2  ;;  %v8343_v54 = vadd.f32 %v4691_v55, %v4533_v39 }
 0x4d9   : > { %v8341_v8 = vadd.f32 %v4240_v27, %v4055_v7  ;;  %6110 = vmatmul.msk.bf16.gmra.mxu3 %vm361_vm1, %v8209_v34  ;;  %v3994_v26 = vpop.f32.mrf.mxu1  ;;  %v4853_v34 = vpack.c.bf16 %v4818_v53, %v4817_v17  ;;  %v4820_v53 = vld [vmem:[#allocation2 + $0x3e] sm:$0xff]  ;;  %v4819_v17 = vld [vmem:[#allocation2 + $0x36] sm:$0xff] }
 0x4da   : > { %v8348_v41 = vadd.f32 %v3994_v26, %v8160_v22  ;;  %6127 = vmatmul.msk.bf16.gmra.mxu0 %vm361_vm1, %v4613_v6 }
 0x4dc   : > { %v4453_v37 = vpop.f32.mrf.mxu3 }
 0x4dd   : > { %v4537_v36 = vadd.f32 %v4453_v37, %v8197_v57  ;;  %v4587_v57 = vld [vmem:[#allocation2 + $0xb5] sm:$0xff] }
 0x4df   : > { %v4693_v15 = vpop.f32.mrf.mxu0 }
 0x4e0   : > { %v8352_v52 = vpop.f32.mrf.mxu2  ;;  %v8354_v56 = vadd.f32 %v4693_v15, %v4534_v1  ;;  %v4614_v1 = vpack.c.bf16 %v4588_v43, %v4587_v57 }
 0x4e1   : > { %v3997_v39 = vpop.f32.mrf.mxu1 }
 0x4e2   : > { %v4057_v7 = vadd.f32 %v3997_v39, %v8175_v12 }
 0x4e4   : > { %v4455_v3 = vpop.f32.mrf.mxu3  ;;  %6138 = vmatmul.msk.bf16.vlgmr.msra.gmra.mxu1 %vm361_vm1, %v4853_v34 }
 0x4e5   : > { %v4538_v22 = vadd.f32 %v4455_v3, %v8206_v49  ;;  %v4590_v3 = vld [vmem:[#allocation2 + $0xcd] sm:$0xff] }
 0x4e7   : > { %v4696_v27 = vpop.f32.mrf.mxu0 }
 0x4e8   : > { %v4245_v63 = vpop.f32.mrf.mxu2  ;;  %v8361_v35 = vadd.f32 %v4696_v27, %v4535_v44 }
 0x4e9   : > { %v8359_v55 = vadd.f32 %v4245_v63, %v4057_v7  ;;  %6111 = vmatmul.msk.bf16.gmra.mxu3 %vm361_vm1, %v8229_v21  ;;  %v3999_v6 = vpop.f32.mrf.mxu1  ;;  %v4854_v21 = vpack.c.bf16 %v4820_v53, %v4819_v17  ;;  %v4822_v53 = vld [vmem:[#allocation2 + $0x4e] sm:$0xff]  ;;  %v4821_v17 = vld [vmem:[#allocation2 + $0x46] sm:$0xff] }
 0x4ea   : > { %v8366_v12 = vadd.f32 %v3999_v6, %v8184_v18  ;;  %6128 = vmatmul.msk.bf16.gmra.mxu0 %vm361_vm1, %v4614_v1 }
 0x4ec   : > { %v4458_v26 = vpop.f32.mrf.mxu3 }
 0x4ed   : > { %v4539_v49 = vadd.f32 %v4458_v26, %v8217_v51  ;;  %v4589_v51 = vld [vmem:[#allocation2 + $0xc5] sm:$0xff] }
 0x4ef   : > { %v4698_v15 = vpop.f32.mrf.mxu0 }
 0x4f0   : > { %v8370_v37 = vpop.f32.mrf.mxu2  ;;  %v8372_v39 = vadd.f32 %v4698_v15, %v4536_v46  ;;  %v4615_v46 = vpack.c.bf16 %v4590_v3, %v4589_v51 }
 0x4f1   : > { %v4002_v44 = vpop.f32.mrf.mxu1 }
 0x4f2   : > { %v4059_v7 = vadd.f32 %v4002_v44, %v8195_v5 }
 0x4f4   : > { %v4460_v34 = vpop.f32.mrf.mxu3  ;;  %6139 = vmatmul.msk.bf16.gmra.mxu1 %vm361_vm1, %v4854_v21 }
 0x4f5   : > { %v4540_v18 = vadd.f32 %v4460_v34, %v8226_v9  ;;  %v4592_v34 = vld [vmem:[#allocation2 + $0xdd] sm:$0xff] }
 0x4f7   : > { %v4701_v63 = vpop.f32.mrf.mxu0 }
 0x4f8   : > { %v4250_v43 = vpop.f32.mrf.mxu2  ;;  %v8379_v57 = vadd.f32 %v4701_v63, %v4537_v36 }
 0x4f9   : > { %v8377_v27 = vadd.f32 %v4250_v43, %v4059_v7  ;;  %6112 = vmatmul.msk.bf16.gmra.mxu3 %vm361_vm1, %v8249_v0  ;;  %v4004_v1 = vpop.f32.mrf.mxu1  ;;  %v4855_v0 = vpack.c.bf16 %v4822_v53, %v4821_v17  ;;  %v4824_v53 = vld [vmem:[#allocation2 + $0x5e] sm:$0xff]  ;;  %v4823_v17 = vld [vmem:[#allocation2 + $0x56] sm:$0xff] }
 0x4fa   : > { %v8384_v5 = vadd.f32 %v4004_v1, %v8204_v10  ;;  %6129 = vmatmul.msk.bf16.gmra.mxu0 %vm361_vm1, %v4615_v46 }
 0x4fc   : > { %v4463_v6 = vpop.f32.mrf.mxu3 }
 0x4fd   : > { %v4541_v9 = vadd.f32 %v4463_v6, %v8237_v23  ;;  %v4591_v23 = vld [vmem:[#allocation2 + $0xd5] sm:$0xff] }
 0x4ff   : > { %v4703_v15 = vpop.f32.mrf.mxu0 }
 0x500   : > { %v8388_v26 = vpop.f32.mrf.mxu2  ;;  %v8390_v44 = vadd.f32 %v4703_v15, %v4538_v22  ;;  %v4616_v22 = vpack.c.bf16 %v4592_v34, %v4591_v23 }
 0x501   : > { %v4007_v36 = vpop.f32.mrf.mxu1 }
 0x502   : > { %v4061_v7 = vadd.f32 %v4007_v36, %v8215_v16 }
 0x504   : > { %v4465_v21 = vpop.f32.mrf.mxu3  ;;  %6140 = vmatmul.msk.bf16.gmra.mxu1 %vm361_vm1, %v4855_v0 }
 0x505   : > { %v4542_v10 = vadd.f32 %v4465_v21, %v8246_v32  ;;  %v4594_v21 = vld [vmem:[#allocation2 + $0xed] sm:$0xff] }
 0x507   : > { %v4706_v43 = vpop.f32.mrf.mxu0 }
 0x508   : > { %v4255_v3 = vpop.f32.mrf.mxu2  ;;  %v8397_v51 = vadd.f32 %v4706_v43, %v4539_v49 }
 0x509   : > { %v8395_v63 = vadd.f32 %v4255_v3, %v4061_v7  ;;  %6113 = vmatmul.msk.bf16.gmra.mxu3 %vm361_vm1, %v8269_v58  ;;  %v4009_v46 = vpop.f32.mrf.mxu1  ;;  %v4856_v58 = vpack.c.bf16 %v4824_v53, %v4823_v17 }
 0x50a   : > { %v8402_v16 = vadd.f32 %v4009_v46, %v8224_v29  ;;  %6130 = vmatmul.msk.bf16.gmra.mxu0 %vm361_vm1, %v4616_v22 }
 0x50c   : > { %v4468_v1 = vpop.f32.mrf.mxu3 }
 0x50d   : > { %v4543_v32 = vadd.f32 %v4468_v1, %v8257_v19  ;;  %v4593_v19 = vld [vmem:[#allocation2 + $0xe5] sm:$0xff]  ;;  %v4826_v1 = vld [vmem:[#allocation2 + $0x6e] sm:$0xff] }
 0x50f   : > { %v4708_v15 = vpop.f32.mrf.mxu0 }
 0x510   : > { %v8406_v6 = vpop.f32.mrf.mxu2  ;;  %v8408_v36 = vadd.f32 %v4708_v15, %v4540_v18  ;;  %v4617_v18 = vpack.c.bf16 %v4594_v21, %v4593_v19 }
 0x511   : > { %v4012_v49 = vpop.f32.mrf.mxu1 }
 0x512   : > { %v4063_v7 = vadd.f32 %v4012_v49, %v8235_v4  ;;  %v4825_v49 = vld [vmem:[#allocation2 + $0x66] sm:$0xff] }
 0x513   : > { %v4857_v17 = vpack.c.bf16 %v4826_v1, %v4825_v49  ;;  %v4827_v1 = vld [vmem:[#allocation2 + $0x76] sm:$0xff] }
 0x514   : > { %v4470_v0 = vpop.f32.mrf.mxu3  ;;  %6141 = vmatmul.msk.bf16.gmra.mxu1 %vm361_vm1, %v4856_v58 }
 0x515   : > { %v4544_v29 = vadd.f32 %v4470_v0, %v8266_v48 }
 0x517   : > { %v4711_v3 = vpop.f32.mrf.mxu0 }
 0x518   : > { %v4260_v34 = vpop.f32.mrf.mxu2  ;;  %v8415_v23 = vadd.f32 %v4711_v3, %v4541_v9 }
 0x519   : > { %v8413_v43 = vadd.f32 %v4260_v34, %v4063_v7  ;;  %6114 = vmatmul.msk.bf16.gmra.mxu3 %vm361_vm1, %v8291_v40  ;;  %v4014_v22 = vpop.f32.mrf.mxu1  ;;  %v4596_v40 = vld [vmem:[#allocation2 + $0xfd] sm:$0xff] }
 0x51a   : > { %v8420_v4 = vadd.f32 %v4014_v22, %v8244_v14  ;;  %6131 = vmatmul.msk.bf16.gmra.mxu0 %vm361_vm1, %v4617_v18  ;;  %v4595_v14 = vld [vmem:[#allocation2 + $0xf5] sm:$0xff]  ;;  %v4828_v18 = vld [vmem:[#allocation2 + $0x7e] sm:$0xff] }
 0x51b   : > { %v4618_v34 = vpack.c.bf16 %v4596_v40, %v4595_v14  ;;  %v4829_v14 = vld [vmem:[#allocation2 + $0x86] sm:$0xff] }
 0x51f   : > { %v4713_v48 = vpop.f32.mrf.mxu0 }
 0x520   : > { %v8423_v46 = vpop.f32.mrf.mxu2  ;;  %v8425_v15 = vadd.f32 %v4713_v48, %v4542_v10 }
 0x521   : > { %v4017_v53 = vpop.f32.mrf.mxu1 }
 0x522   : > { %v4065_v9 = vadd.f32 %v4017_v53, %v8255_v60  ;;  %v4858_v53 = vpack.c.bf16 %v4828_v18, %v4827_v1  ;;  %v4356_v18 = vld [vmem:[#allocation2 + $0x13c] sm:$0xff] }
 0x524   : > { %6142 = vmatmul.msk.bf16.gmra.mxu1 %vm361_vm1, %v4857_v17 }
 0x527   : > { %v4716_v58 = vpop.f32.mrf.mxu0 }
 0x528   : > { %v4265_v7 = vpop.f32.mrf.mxu2  ;;  %v8431_v21 = vadd.f32 %v4716_v58, %v4543_v32 }
 0x529   : > { %v8429_v0 = vadd.f32 %v4265_v7, %v4065_v9  ;;  %6115 = vmatmul.msk.bf16.gmra.mxu3 %vm361_vm1, %v8313_v42  ;;  %v4019_v10 = vpop.f32.mrf.mxu1  ;;  %v4598_v42 = vld [vmem:[#allocation2 + $0x10d] sm:$0xff]  ;;  %v4597_v9 = vld [vmem:[#allocation2 + $0x105] sm:$0xff] }
 0x52a   : > { %v8436_v3 = vadd.f32 %v4019_v10, %v8264_v31  ;;  %6132 = vmatmul.msk.bf16.gmra.mxu0 %vm361_vm1, %v4618_v34  ;;  %v4619_v17 = vpack.c.bf16 %v4598_v42, %v4597_v9  ;;  %v4832_v9 = vld [vmem:[#allocation2 + $0x9e] sm:$0xff] }
 0x52f   : > { %v4718_v19 = vpop.f32.mrf.mxu0 }
 0x530   : > { %v8439_v60 = vpop.f32.mrf.mxu2  ;;  %v8441_v22 = vadd.f32 %v4718_v19, %v4544_v29  ;;  %v4355_v19 = vld [vmem:[#allocation2 + $0x134] sm:$0xff] }
 0x531   : > { %v4022_v48 = vpop.f32.mrf.mxu1 }
 0x532   : > { %v4067_v32 = vadd.f32 %v4022_v48, %v8275_v59  ;;  %v4830_v59 = vld [vmem:[#allocation2 + $0x8e] sm:$0xff]  ;;  %v4374_v48 = vpack.c.bf16 %v4356_v18, %v4355_v19 }
 0x533   : > { %v4859_v10 = vpack.c.bf16 %v4830_v59, %v4829_v14  ;;  %v4601_v14 = vld [vmem:[#allocation2 + $0x125] sm:$0xff] }
 0x534   : > { %6143 = vmatmul.msk.bf16.gmra.mxu1 %vm361_vm1, %v4858_v53 }
 0x538   : > { %v4270_v49 = vpop.f32.mrf.mxu2 }
 0x539   : > { %v8445_v31 = vadd.f32 %v4270_v49, %v4067_v32  ;;  %6116 = vmatmul.msk.bf16.gmra.mxu3 %vm361_vm1, %v8335_v13  ;;  %v4024_v40 = vpop.f32.mrf.mxu1  ;;  %v4600_v13 = vld [vmem:[#allocation2 + $0x11d] sm:$0xff]  ;;  %v4599_v32 = vld [vmem:[#allocation2 + $0x115] sm:$0xff] }
 0x53a   : > { %v8450_v29 = vadd.f32 %v4024_v40, %v8288_v45  ;;  %6133 = vmatmul.msk.bf16.gmra.mxu0 %vm361_vm1, %v4619_v17  ;;  %v4620_v53 = vpack.c.bf16 %v4600_v13, %v4599_v32  ;;  %v4831_v40 = vld [vmem:[#allocation2 + $0x96] sm:$0xff]  ;;  %v4834_v13 = vld [vmem:[#allocation2 + $0xae] sm:$0xff]  ;;  %v4833_v32 = vld [vmem:[#allocation2 + $0xa6] sm:$0xff] }
 0x540   : > { %v8453_v7 = vpop.f32.mrf.mxu2 }
 0x541   : > { %v4027_v58 = vpop.f32.mrf.mxu1 }
 0x542   : > { %v4069_v34 = vadd.f32 %v4027_v58, %v8297_v20  ;;  %v4860_v58 = vpack.c.bf16 %v4832_v9, %v4831_v40  ;;  %v4603_v9 = vld [vmem:[#allocation2 + $0x135] sm:$0xff]  ;;  %v8485_v40 = vld [vmem:[%s8928_s7] ss:$0 sm:$0xff] }
 0x544   : > { %6144 = vmatmul.msk.bf16.gmra.mxu1 %vm361_vm1, %v4859_v10 }
 0x548   : > { %v4275_v1 = vpop.f32.mrf.mxu2 }
 0x549   : > { %v8457_v45 = vadd.f32 %v4275_v1, %v4069_v34  ;;  %6117 = vmatmul.msk.bf16.gmra.mxu3 %vm361_vm1, %v4374_v48  ;;  %v4029_v42 = vpop.f32.mrf.mxu1  ;;  %v4602_v34 = vld [vmem:[#allocation2 + $0x12d] sm:$0xff] }
 0x54a   : > { %v8461_v49 = vadd.f32 %v4029_v42, %v8310_v30  ;;  %6134 = vmatmul.msk.bf16.gmra.mxu0 %vm361_vm1, %v4620_v53  ;;  %v4621_v18 = vpack.c.bf16 %v4602_v34, %v4601_v14  ;;  %v4861_v42 = vpack.c.bf16 %v4834_v13, %v4833_v32 }
 0x54b   : > { %9129 = vst [vmem:[#allocation13_spill] sm:$0xff] %v8457_v45 }
 0x54c   : > { %9130 = vst [vmem:[#allocation38_spill] sm:$0xff] %v8461_v49 }
 0x550   : > { %v8464_v20 = vpop.f32.mrf.mxu2 }
 0x551   : > { %9131 = vst [vmem:[#allocation39_spill] sm:$0xff] %v8464_v20  ;;  %v4032_v17 = vpop.f32.mrf.mxu1  ;;  %v6321_v20 = vld [vmem:[%s6435_s26 + $0x10] sm:$0xff]  }
 0x552   : > { %v4071_v59 = vadd.f32 %v4032_v17, %v8319_v50  ;;  %v8477_v50 = vld [vmem:[%s8927_s6] ss:$0 sm:$0xff] }
 0x553   : > { %v4604_v17 = vld [vmem:[#allocation2 + $0x13d] sm:$0xff] }
 0x554   : > { %6145 = vmatmul.msk.bf16.gmra.mxu1 %vm361_vm1, %v4860_v58 }
 0x558   : > { %v4280_v10 = vpop.f32.mrf.mxu2 }
 0x559   : > { %v8468_v19 = vadd.f32 %v4280_v10, %v4071_v59  ;;  %v4034_v30 = vpop.f32.mrf.mxu1  ;;  %v4622_v59 = vpack.c.bf16 %v4604_v17, %v4603_v9  ;;  %v4835_v17 = vld [vmem:[#allocation2 + $0xb6] sm:$0xff] }
 0x55a   : > { %v8471_v48 = vadd.f32 %v4034_v30, %v8332_v47  ;;  %6135 = vmatmul.msk.bf16.gmra.mxu0 %vm361_vm1, %v4621_v18  ;;  %v4836_v30 = vld [vmem:[#allocation2 + $0xbe] sm:$0xff] }
 0x55b   : > { %9132 = vst [vmem:[#allocation16_spill] sm:$0xff] %v8468_v19 }
 0x55c   : > { %9133 = vst [vmem:[#allocation14_spill] sm:$0xff] %v8471_v48 }
 0x561   : > { %v4939_v1 = vpop.f32.mrf.mxu1 }
 0x562   : > { %v5029_v53 = vadd.f32 %v4939_v1, %v8343_v54  ;;  %v6320_v1 = vld [vmem:[%s6435_s26 + $0x8] sm:$0xff]  }
 0x563   : > { %v6179_v32 = vunpack.c.l.bf16 %v6320_v1 }
 0x564   : > { %6146 = vmatmul.msk.bf16.gmra.mxu1 %vm361_vm1, %v4861_v42  ;;  %v5069_v47 = vmul.f32 %v8477_v50, %v5029_v53  ;;  %v6180_v42 = vunpack.c.h.bf16 %v6320_v1 }
 0x566   : > { %v5109_v58 = vadd.f32 %v8485_v40, %v5069_v47 }
 0x568   : > { %v5145_v10 = vmax.f32 %v5109_v58, 0.0 }
 0x569   : > { %v4941_v14 = vpop.f32.mrf.mxu1 }
 0x56a   : > { %v5030_v34 = vadd.f32 %v4941_v14, %v8354_v56  ;;  %6136 = vmatmul.msk.bf16.gmra.mxu0 %vm361_vm1, %v4622_v59  ;;  %v5218_v53 = vrot.slane %v5145_v10, 5  ;;  %v4862_v56 = vpack.c.bf16 %v4836_v30, %v4835_v17  ;;  %v4838_v17 = vld [vmem:[#allocation2 + $0xce] sm:$0xff] }
 0x56c   : > { %v5070_v54 = vmul.f32 %v8477_v50, %v5030_v34  ;;  %v5326_v14 = vadd.f32 %v6179_v32, %v5218_v53  ;;  %v6184_v32 = vunpack.c.h.bf16 %v6321_v20 }
 0x56e   : > { %v5110_v18 = vadd.f32 %v8485_v40, %v5070_v54 }
 0x570   : > { %v5146_v13 = vmax.f32 %v5110_v18, 0.0 }
 0x571   : > { %v4944_v9 = vpop.f32.mrf.mxu1 }
 0x572   : > { %v5219_v47 = vrot.slane %v5146_v13, 5  ;;  %v5031_v48 = vadd.f32 %v4944_v9, %v8361_v35 }
 0x574   : > { %v5220_v59 = vsel %vm5217_vm9, %v5218_v53, %v5219_v47  ;;  %v5071_v58 = vmul.f32 %v8477_v50, %v5031_v48  ;;  %6147 = vmatmul.msk.bf16.gmra.mxu1 %vm361_vm1, %v4862_v56  ;;  %v6183_v56 = vunpack.c.l.bf16 %v6321_v20 }
 0x575   : > { %v5327_v34 = vadd.f32 %v6180_v42, %v5220_v59  ;;  %v4837_v42 = vld [vmem:[#allocation2 + $0xc6] sm:$0xff] }
 0x576   : > { %v5111_v54 = vadd.f32 %v8485_v40, %v5071_v58 }
 0x577   : > { %v5363_v10 = vpack.c.bf16 %v5327_v34, %v5326_v14  ;;  %v4863_v14 = vpack.c.bf16 %v4838_v17, %v4837_v42 }
 0x578   : > { %v5147_v18 = vmax.f32 %v5111_v54, 0.0 }
 0x579   : > { %v4946_v1 = vpop.f32.mrf.mxu1 }
 0x57a   : > { %v5221_v19 = vrot.slane %v5147_v18, 5  ;;  %v5032_v13 = vadd.f32 %v4946_v1, %v8372_v39  ;;  %v5388_v18 = vshrl.u32 %v5363_v10, 16  ;;  %v5391_v1 = vshll.u32 %v5363_v10, 16  ;;  %v8511_v10 = vpop.f32.mrf.mxu3 }
 0x57c   : > { %v5222_v35 = vsel %vm5217_vm9, %v5219_v47, %v5221_v19  ;;  %v5072_v30 = vmul.f32 %v8477_v50, %v5032_v13  ;;  %v5390_v49 = vrot.slane %v5388_v18, 1 }
 0x57d   : > { %v5328_v47 = vadd.f32 %v6183_v56, %v5222_v35 }
 0x57e   : > { %v5112_v9 = vadd.f32 %v8485_v40, %v5072_v30 }
 0x580   : > { %v5148_v48 = vmax.f32 %v5112_v9, 0.0 }
 0x581   : > { %v4949_v53 = vpop.f32.mrf.mxu1 }
 0x582   : > { %v5223_v59 = vrot.slane %v5148_v48, 5  ;;  %v5033_v58 = vadd.f32 %v4949_v53, %v8379_v57  ;;  %v5393_v48 = vrot.slane %v5391_v1, 2  ;;  %v4839_v1 = vld [vmem:[#allocation2 + $0xd6] sm:$0xff] }
 0x584   : > { %v5224_v34 = vsel %vm5217_vm9, %v5221_v19, %v5223_v59  ;;  %v5073_v39 = vmul.f32 %v8477_v50, %v5033_v58  ;;  %6148 = vmatmul.msk.bf16.gmra.mxu1 %vm361_vm1, %v4863_v14 }
 0x585   : > { %v5329_v54 = vadd.f32 %v6184_v32, %v5224_v34  ;;  %v5394_v32 = vor.u32 %v5393_v48, %v5390_v49  ;;  %v8514_v34 = vpop.f32.mrf.mxu0 }
 0x586   : > { %v5113_v13 = vadd.f32 %v8485_v40, %v5073_v39 }
 0x587   : > { %v5364_v30 = vpack.c.bf16 %v5329_v54, %v5328_v47  ;;  %v4840_v47 = vld [vmem:[#allocation2 + $0xde] sm:$0xff] }
 0x588   : > { %v5149_v20 = vmax.f32 %v5113_v13, 0.0  ;;  %v4864_v49 = vpack.c.bf16 %v4840_v47, %v4839_v1 }
 0x589   : > { %v4951_v9 = vpop.f32.mrf.mxu1  ;;  %v5396_v45 = vshrl.u32 %v5364_v30, 16  ;;  %v5399_v57 = vshll.u32 %v5364_v30, 16 }
 0x58a   : > { %v5225_v17 = vrot.slane %v5149_v20, 5  ;;  %v5034_v19 = vadd.f32 %v4951_v9, %v8390_v44  ;;  %v6322_v44 = vld [vmem:[%s6435_s26 + $0x18] sm:$0xff]  }
 0x58b   : > { %v5398_v53 = vrot.slane %v5396_v45, 1  ;;  %v5401_v42 = vrot.slane %v5399_v57, 2  ;;  %v6187_v45 = vunpack.c.l.bf16 %v6322_v44  ;;  %v6188_v18 = vunpack.c.h.bf16 %v6322_v44 }
 0x58c   : > { %v5226_v35 = vsel %vm5217_vm9, %v5223_v59, %v5225_v17  ;;  %v5074_v56 = vmul.f32 %v8477_v50, %v5034_v19 }
 0x58d   : > { %v5402_v58 = vor.u32 %v5401_v42, %v5398_v53  ;;  %v5330_v48 = vadd.f32 %v6187_v45, %v5226_v35  ;;  %v8524_v53 = vpop.f32.mrf.mxu3 }
 0x58e   : > { %v5114_v14 = vadd.f32 %v8485_v40, %v5074_v56 }
 0x58f   : > { %v5403_v39 = vsel %vm1326_vm5, %v5394_v32, %v5402_v58  ;;  %v8526_v32 = vpop.f32.mrf.mxu0 }
 0x590   : > { %v5150_v54 = vmax.f32 %v5114_v14, 0.0  ;;  %6156 = vmatmul.msk.bf16.vlgmr.msra.gmra.mxu2 %vm361_vm1, %v5403_v39 }
 0x591   : > { %v4954_v59 = vpop.f32.mrf.mxu1 }
 0x592   : > { %v5227_v13 = vrot.slane %v5150_v54, 5  ;;  %v5035_v30 = vadd.f32 %v4954_v59, %v8397_v51 }
 0x594   : > { %v5228_v20 = vsel %vm5217_vm9, %v5225_v17, %v5227_v13  ;;  %v5075_v9 = vmul.f32 %v8477_v50, %v5035_v30  ;;  %6149 = vmatmul.msk.bf16.gmra.mxu1 %vm361_vm1, %v4864_v49  ;;  %v4842_v30 = vld [vmem:[#allocation2 + $0xee] sm:$0xff] }
 0x595   : > { %v5331_v57 = vadd.f32 %v6188_v18, %v5228_v20  ;;  %v8534_v20 = vpop.f32.mrf.mxu3 }
 0x596   : > { %v5115_v19 = vadd.f32 %v8485_v40, %v5075_v9  ;;  %v6323_v9 = vld [vmem:[%s6435_s26 + $0x20] sm:$0xff]  }
 0x597   : > { %v5365_v42 = vpack.c.bf16 %v5331_v57, %v5330_v48  ;;  %v6191_v48 = vunpack.c.l.bf16 %v6323_v9 }
 0x598   : > { %v5151_v56 = vmax.f32 %v5115_v19, 0.0  ;;  %v4841_v19 = vld [vmem:[#allocation2 + $0xe6] sm:$0xff] }
 0x599   : > { %v4956_v14 = vpop.f32.mrf.mxu1  ;;  %v5405_v51 = vshrl.u32 %v5365_v42, 16  ;;  %v5408_v39 = vshll.u32 %v5365_v42, 16 }
 0x59a   : > { %v5229_v47 = vrot.slane %v5151_v56, 5  ;;  %v5036_v17 = vadd.f32 %v4956_v14, %v8408_v36  ;;  %v6192_v36 = vunpack.c.h.bf16 %v6323_v9  ;;  %v4865_v56 = vpack.c.bf16 %v4842_v30, %v4841_v19  ;;  %v8538_v14 = vpop.f32.mrf.mxu0 }
 0x59b   : > { %v5407_v54 = vrot.slane %v5405_v51, 1  ;;  %v5410_v44 = vrot.slane %v5408_v39, 2 }
 0x59c   : > { %v5230_v35 = vsel %vm5217_vm9, %v5227_v13, %v5229_v47  ;;  %v5076_v45 = vmul.f32 %v8477_v50, %v5036_v17 }
 0x59d   : > { %v5411_v18 = vor.u32 %v5410_v44, %v5407_v54  ;;  %v5332_v39 = vadd.f32 %v6191_v48, %v5230_v35  ;;  %v8545_v9 = vpop.f32.mrf.mxu3 }
 0x59e   : > { %v5116_v59 = vadd.f32 %v8485_v40, %v5076_v45 }
 0x59f   : > { %v5412_v1 = vsel %vm1326_vm5, %v5402_v58, %v5411_v18 }
 0x5a0   : > { %v5152_v49 = vmax.f32 %v5116_v59, 0.0  ;;  %6157 = vmatmul.msk.bf16.gmra.mxu2 %vm361_vm1, %v5412_v1 }
 0x5a1   : > { %v4959_v57 = vpop.f32.mrf.mxu1 }
 0x5a2   : > { %v5231_v42 = vrot.slane %v5152_v49, 5  ;;  %v5037_v13 = vadd.f32 %v4959_v57, %v8415_v23  ;;  %v8549_v48 = vpop.f32.mrf.mxu0 }
 0x5a4   : > { %v5232_v51 = vsel %vm5217_vm9, %v5229_v47, %v5231_v42  ;;  %v5077_v58 = vmul.f32 %v8477_v50, %v5037_v13  ;;  %6150 = vmatmul.msk.bf16.gmra.mxu1 %vm361_vm1, %v4865_v56 }
 0x5a5   : > { %v5333_v17 = vadd.f32 %v6192_v36, %v5232_v51  ;;  %v4844_v51 = vld [vmem:[#allocation2 + $0xfe] sm:$0xff] }
 0x5a6   : > { %v5117_v54 = vadd.f32 %v8485_v40, %v5077_v58 }
 0x5a7   : > { %v5366_v44 = vpack.c.bf16 %v5333_v17, %v5332_v39 }
 0x5a8   : > { %v5153_v45 = vmax.f32 %v5117_v54, 0.0 }
 0x5a9   : > { %v4961_v59 = vpop.f32.mrf.mxu1  ;;  %v5414_v1 = vshrl.u32 %v5366_v44, 16  ;;  %v5417_v49 = vshll.u32 %v5366_v44, 16  ;;  %v4843_v44 = vld [vmem:[#allocation2 + $0xf6] sm:$0xff] }
 0x5aa   : > { %v5233_v23 = vrot.slane %v5153_v45, 5  ;;  %v5038_v30 = vadd.f32 %v4961_v59, %v8425_v15  ;;  %v6324_v15 = vld [vmem:[%s6435_s26 + $0x28] sm:$0xff]   ;;  %v4866_v59 = vpack.c.bf16 %v4844_v51, %v4843_v44 }
 0x5ab   : > { %v5416_v47 = vrot.slane %v5414_v1, 1  ;;  %v5419_v57 = vrot.slane %v5417_v49, 2  ;;  %v6195_v39 = vunpack.c.l.bf16 %v6324_v15  ;;  %v6196_v17 = vunpack.c.h.bf16 %v6324_v15 }
 0x5ac   : > { %v5234_v19 = vsel %vm5217_vm9, %v5231_v42, %v5233_v23  ;;  %v5078_v35 = vmul.f32 %v8477_v50, %v5038_v30 }
 0x5ad   : > { %v5420_v36 = vor.u32 %v5419_v57, %v5416_v47  ;;  %v5334_v30 = vadd.f32 %v6195_v39, %v5234_v19 }
 0x5ae   : > { %v5118_v13 = vadd.f32 %v8485_v40, %v5078_v35  ;;  %v8562_v35 = vpop.f32.mrf.mxu0 }
 0x5af   : > { %v5421_v56 = vsel %vm1326_vm5, %v5411_v18, %v5420_v36  ;;  %v8559_v18 = vpop.f32.mrf.mxu3 }
 0x5b0   : > { %v5154_v58 = vmax.f32 %v5118_v13, 0.0  ;;  %6158 = vmatmul.msk.bf16.gmra.mxu2 %vm361_vm1, %v5421_v56 }
 0x5b1   : > { %v4964_v54 = vpop.f32.mrf.mxu1 }
 0x5b2   : > { %v5235_v45 = vrot.slane %v5154_v58, 5  ;;  %v5039_v42 = vadd.f32 %v4964_v54, %v8431_v21 }
 0x5b4   : > { %v5236_v1 = vsel %vm5217_vm9, %v5233_v23, %v5235_v45  ;;  %v5079_v49 = vmul.f32 %v8477_v50, %v5039_v42  ;;  %6151 = vmatmul.msk.bf16.gmra.mxu1 %vm361_vm1, %v4866_v59 }
 0x5b5   : > { %v5335_v47 = vadd.f32 %v6196_v17, %v5236_v1  ;;  %v4545_v17 = vadd.f32 %v8511_v10, %v8277_v38 }
 0x5b6   : > { %v5119_v57 = vadd.f32 %v8485_v40, %v5079_v49 }
 0x5b7   : > { %v5367_v13 = vpack.c.bf16 %v5335_v47, %v5334_v30  ;;  %v8570_v1 = vpop.f32.mrf.mxu3  ;;  %v4846_v30 = vld [vmem:[#allocation2 + $0x10e] sm:$0xff]  ;;  %v4793_v47 = vadd.f32 %v8514_v34, %v4545_v17 }
 0x5b8   : > { %v5155_v56 = vmax.f32 %v5119_v57, 0.0  ;;  %v8575_v57 = vpop.f32.mrf.mxu0 }
 0x5b9   : > { %v4966_v58 = vpop.f32.mrf.mxu1  ;;  %v5423_v15 = vshrl.u32 %v5367_v13, 16  ;;  %v5426_v21 = vshll.u32 %v5367_v13, 16 }
 0x5ba   : > { %v5237_v51 = vrot.slane %v5155_v56, 5  ;;  %v5040_v23 = vadd.f32 %v4966_v58, %v8441_v22 }
 0x5bb   : > { %v5425_v54 = vrot.slane %v5423_v15, 1  ;;  %v5428_v44 = vrot.slane %v5426_v21, 2  ;;  %v4845_v15 = vld [vmem:[#allocation2 + $0x106] sm:$0xff] }
 0x5bc   : > { %v5238_v42 = vsel %vm5217_vm9, %v5235_v45, %v5237_v51  ;;  %v5080_v19 = vmul.f32 %v8477_v50, %v5040_v23  ;;  %v6325_v45 = vld [vmem:[%s6435_s26 + $0x30] sm:$0xff]   ;;  %v4867_v21 = vpack.c.bf16 %v4846_v30, %v4845_v15  ;;  %v4298_v23 = vadd.f32 %v8286_v28, %v8282_v2 }
 0x5bd   : > { %v5429_v39 = vor.u32 %v5428_v44, %v5425_v54  ;;  %v6199_v13 = vunpack.c.l.bf16 %v6325_v45  ;;  %v6200_v56 = vunpack.c.h.bf16 %v6325_v45 }
 0x5be   : > { %v5120_v59 = vadd.f32 %v8485_v40, %v5080_v19  ;;  %v4546_v19 = vadd.f32 %v8524_v53, %v4298_v23  ;;  %v4848_v23 = vld [vmem:[#allocation2 + $0x11e] sm:$0xff] }
 0x5bf   : > { %v5430_v49 = vsel %vm1326_vm5, %v5420_v36, %v5429_v39  ;;  %v5336_v54 = vadd.f32 %v6199_v13, %v5238_v42  ;;  %v8586_v30 = vpop.f32.mrf.mxu3 }
 0x5c0   : > { %v5156_v22 = vmax.f32 %v5120_v59, 0.0  ;;  %6159 = vmatmul.msk.bf16.gmra.mxu2 %vm361_vm1, %v5430_v49  ;;  %v4794_v49 = vadd.f32 %v8526_v32, %v4546_v19  ;;  %v4547_v32 = vadd.f32 %v8534_v20, %v8299_v61  ;;  %v4300_v61 = vadd.f32 %v8308_v62, %v8304_v33 }
 0x5c1   : > { %v4969_v58 = vpop.f32.mrf.mxu1 }
 0x5c2   : > { %v5239_v38 = vrot.slane %v5156_v22, 5  ;;  %v5041_v10 = vadd.f32 %v4969_v58, %v4793_v47  ;;  %v8588_v58 = vpop.f32.mrf.mxu0 }
 0x5c4   : > { %v5240_v36 = vsel %vm5217_vm9, %v5237_v51, %v5239_v38  ;;  %v5081_v34 = vmul.f32 %v8477_v50, %v5041_v10  ;;  %6152 = vmatmul.msk.bf16.gmra.mxu1 %vm361_vm1, %v4867_v21 }
 0x5c5   : > { %v5337_v44 = vadd.f32 %v6200_v56, %v5240_v36  ;;  %v4795_v36 = vadd.f32 %v8538_v14, %v4547_v32 }
 0x5c6   : > { %v5121_v17 = vadd.f32 %v8485_v40, %v5081_v34 }
 0x5c7   : > { %v5368_v59 = vpack.c.bf16 %v5337_v44, %v5336_v54  ;;  %v6326_v54 = vld [vmem:[%s6435_s26 + $0x38] sm:$0xff]  }
 0x5c8   : > { %v5157_v47 = vmax.f32 %v5121_v17, 0.0  ;;  %v6203_v44 = vunpack.c.l.bf16 %v6326_v54  ;;  %v6204_v19 = vunpack.c.h.bf16 %v6326_v54  ;;  %v4847_v17 = vld [vmem:[#allocation2 + $0x116] sm:$0xff] }
 0x5c9   : > { %v4971_v22 = vpop.f32.mrf.mxu1  ;;  %v5432_v2 = vshrl.u32 %v5368_v59, 16  ;;  %v5435_v28 = vshll.u32 %v5368_v59, 16 }
 0x5ca   : > { %v5241_v51 = vrot.slane %v5157_v47, 5  ;;  %v5042_v45 = vadd.f32 %v4971_v22, %v4794_v49  ;;  %v4868_v47 = vpack.c.bf16 %v4848_v23, %v4847_v17  ;;  %v8599_v22 = vpop.f32.mrf.mxu3  ;;  %v4849_v17 = vld [vmem:[#allocation2 + $0x126] sm:$0xff] }
 0x5cb   : > { %v5434_v42 = vrot.slane %v5432_v2, 1  ;;  %v5437_v13 = vrot.slane %v5435_v28, 2 }
 0x5cc   : > { %v5242_v53 = vsel %vm5217_vm9, %v5239_v38, %v5241_v51  ;;  %v5082_v56 = vmul.f32 %v8477_v50, %v5042_v45  ;;  %v4548_v45 = vadd.f32 %v8545_v9, %v4300_v61 }
 0x5cd   : > { %v5438_v15 = vor.u32 %v5437_v13, %v5434_v42  ;;  %v5338_v2 = vadd.f32 %v6203_v44, %v5242_v53  ;;  %v4549_v44 = vadd.f32 %v8559_v18, %v8321_v25  ;;  %v4302_v18 = vadd.f32 %v8330_v11, %v8326_v24 }
 0x5ce   : > { %v5122_v10 = vadd.f32 %v8485_v40, %v5082_v56  ;;  %v4796_v56 = vadd.f32 %v8549_v48, %v4548_v45 }
 0x5cf   : > { %v5439_v21 = vsel %vm1326_vm5, %v5429_v39, %v5438_v15  ;;  %v8606_v39 = vpop.f32.mrf.mxu0 }
 0x5d0   : > { %v5158_v34 = vmax.f32 %v5122_v10, 0.0  ;;  %6160 = vmatmul.msk.bf16.gmra.mxu2 %vm361_vm1, %v5439_v21 }
 0x5d1   : > { %v4974_v38 = vpop.f32.mrf.mxu1 }
 0x5d2   : > { %v5243_v59 = vrot.slane %v5158_v34, 5  ;;  %v5043_v49 = vadd.f32 %v4974_v38, %v4795_v36  ;;  %v8613_v54 = vpop.f32.mrf.mxu3 }
 0x5d4   : > { %v5244_v20 = vsel %vm5217_vm9, %v5241_v51, %v5243_v59  ;;  %v5083_v14 = vmul.f32 %v8477_v50, %v5043_v49  ;;  %6153 = vmatmul.msk.bf16.gmra.mxu1 %vm361_vm1, %v4868_v47  ;;  %v4850_v49 = vld [vmem:[#allocation2 + $0x12e] sm:$0xff]  ;;  %v4797_v47 = vadd.f32 %v8562_v35, %v4549_v44 }
 0x5d5   : > { %v5339_v28 = vadd.f32 %v6204_v19, %v5244_v20  ;;  %v4869_v25 = vpack.c.bf16 %v4850_v49, %v4849_v17  ;;  %v4851_v17 = vld [vmem:[#allocation2 + $0x136] sm:$0xff]  ;;  %v4852_v49 = vld [vmem:[#allocation2 + $0x13e] sm:$0xff] }
 0x5d6   : > { %v5123_v42 = vadd.f32 %v8485_v40, %v5083_v14 }
 0x5d7   : > { %v5369_v13 = vpack.c.bf16 %v5339_v28, %v5338_v2  ;;  %v8618_v19 = vpop.f32.mrf.mxu0 }
 0x5d8   : > { %v5159_v32 = vmax.f32 %v5123_v42, 0.0 }
 0x5d9   : > { %v4976_v10 = vpop.f32.mrf.mxu1  ;;  %v5441_v33 = vshrl.u32 %v5369_v13, 16  ;;  %v5444_v62 = vshll.u32 %v5369_v13, 16 }
 0x5da   : > { %v5245_v51 = vrot.slane %v5159_v32, 5  ;;  %v5044_v21 = vadd.f32 %v4976_v10, %v4796_v56  ;;  %v4550_v56 = vadd.f32 %v8570_v1, %v4302_v18  ;;  %v8631_v10 = vpop.f32.mrf.mxu3 }
 0x5db   : > { %v5443_v23 = vrot.slane %v5441_v33, 1  ;;  %v5446_v36 = vrot.slane %v5444_v62, 2 }
 0x5dc   : > { %v5246_v34 = vsel %vm5217_vm9, %v5243_v59, %v5245_v51  ;;  %v5084_v53 = vmul.f32 %v8477_v50, %v5044_v21  ;;  %v6327_v59 = vld [vmem:[%s6435_s26 + $0x40] sm:$0xff]   ;;  %v4798_v62 = vadd.f32 %v8575_v57, %v4550_v56  ;;  %v4551_v57 = vadd.f32 %v8586_v30, %v8341_v8 }
 0x5dd   : > { %v5447_v9 = vor.u32 %v5446_v36, %v5443_v23  ;;  %v6207_v20 = vunpack.c.l.bf16 %v6327_v59  ;;  %v6208_v14 = vunpack.c.h.bf16 %v6327_v59  ;;  %v4304_v8 = vadd.f32 %v8352_v52, %v8348_v41 }
 0x5de   : > { %v5124_v48 = vadd.f32 %v8485_v40, %v5084_v53  ;;  %v4799_v59 = vadd.f32 %v8588_v58, %v4551_v57 }
 0x5df   : > { %v5448_v38 = vsel %vm1326_vm5, %v5438_v15, %v5447_v9  ;;  %v5340_v35 = vadd.f32 %v6207_v20, %v5246_v34  ;;  %v8634_v23 = vpop.f32.mrf.mxu0  ;;  %v4552_v56 = vadd.f32 %v8599_v22, %v4304_v8 }
 0x5e0   : > { %v5160_v61 = vmax.f32 %v5124_v48, 0.0  ;;  %6161 = vmatmul.msk.bf16.gmra.mxu2 %vm361_vm1, %v5448_v38 }
 0x5e1   : > { %v4979_v2 = vpop.f32.mrf.mxu1 }
 0x5e2   : > { %v5247_v28 = vrot.slane %v5160_v61, 5  ;;  %v5045_v45 = vadd.f32 %v4979_v2, %v4797_v47  ;;  %v8644_v2 = vpop.f32.mrf.mxu3 }
 0x5e4   : > { %v5248_v42 = vsel %vm5217_vm9, %v5245_v51, %v5247_v28  ;;  %v5085_v15 = vmul.f32 %v8477_v50, %v5045_v45  ;;  %6154 = vmatmul.msk.bf16.gmra.mxu1 %vm361_vm1, %v4869_v25 }
 0x5e5   : > { %v5341_v13 = vadd.f32 %v6208_v14, %v5248_v42  ;;  %v4870_v14 = vpack.c.bf16 %v4852_v49, %v4851_v17 }
 0x5e6   : > { %v5125_v32 = vadd.f32 %v8485_v40, %v5085_v15 }
 0x5e7   : > { %v5370_v33 = vpack.c.bf16 %v5341_v13, %v5340_v35  ;;  %v8647_v35 = vpop.f32.mrf.mxu0 }
 0x5e8   : > { %v5161_v21 = vmax.f32 %v5125_v32, 0.0 }
 0x5e9   : > { %v4981_v24 = vpop.f32.mrf.mxu1  ;;  %v5450_v11 = vshrl.u32 %v5370_v33, 16  ;;  %v5453_v51 = vshll.u32 %v5370_v33, 16 }
 0x5ea   : > { %v5249_v36 = vrot.slane %v5161_v21, 5  ;;  %v5046_v53 = vadd.f32 %v4981_v24, %v4798_v62  ;;  %v4800_v62 = vadd.f32 %v8606_v39, %v4552_v56  ;;  %v4553_v39 = vadd.f32 %v8613_v54, %v8359_v55 }
 0x5eb   : > { %v5452_v34 = vrot.slane %v5450_v11, 1  ;;  %v5455_v44 = vrot.slane %v5453_v51, 2 }
 0x5ec   : > { %v5250_v1 = vsel %vm5217_vm9, %v5247_v28, %v5249_v36  ;;  %v5086_v48 = vmul.f32 %v8477_v50, %v5046_v53  ;;  %v6328_v28 = vld [vmem:[%s6435_s26 + $0x48] sm:$0xff]   ;;  %v4801_v57 = vadd.f32 %v8618_v19, %v4553_v39  ;;  %v6330_v39 = vld [vmem:[%s6435_s26 + $0x58] sm:$0xff]  }
 0x5ed   : > { %v5456_v38 = vor.u32 %v5455_v44, %v5452_v34  ;;  %v6211_v45 = vunpack.c.l.bf16 %v6328_v28  ;;  %v6212_v25 = vunpack.c.h.bf16 %v6328_v28 }
 0x5ee   : > { %v5126_v47 = vadd.f32 %v8485_v40, %v5086_v48 }
 0x5ef   : > { %v5457_v61 = vsel %vm1326_vm5, %v5447_v9, %v5456_v38  ;;  %v5342_v9 = vadd.f32 %v6211_v45, %v5250_v1  ;;  %v8661_v1 = vpop.f32.mrf.mxu0 }
 0x5f0   : > { %v5162_v20 = vmax.f32 %v5126_v47, 0.0  ;;  %6162 = vmatmul.msk.bf16.gmra.mxu2 %vm361_vm1, %v5457_v61  ;;  %v6329_v61 = vld [vmem:[%s6435_s26 + $0x50] sm:$0xff]  }
 0x5f1   : > { %v4984_v18 = vpop.f32.mrf.mxu1 }
 0x5f2   : > { %v5251_v42 = vrot.slane %v5162_v20, 5  ;;  %v5047_v15 = vadd.f32 %v4984_v18, %v4799_v59  ;;  %v6215_v59 = vunpack.c.l.bf16 %v6329_v61  ;;  %v6216_v20 = vunpack.c.h.bf16 %v6329_v61 }
 0x5f4   : > { %v5252_v30 = vsel %vm5217_vm9, %v5249_v36, %v5251_v42  ;;  %v5087_v58 = vmul.f32 %v8477_v50, %v5047_v15  ;;  %6155 = vmatmul.msk.bf16.gmra.mxu1 %vm361_vm1, %v4870_v14  ;;  %v8657_v36 = vpop.f32.mrf.mxu3 }
 0x5f5   : > { %v5343_v13 = vadd.f32 %v6212_v25, %v5252_v30  ;;  %v4306_v25 = vadd.f32 %v8370_v37, %v8366_v12 }
 0x5f6   : > { %v5127_v32 = vadd.f32 %v8485_v40, %v5087_v58 }
 0x5f7   : > { %v5371_v33 = vpack.c.bf16 %v5343_v13, %v5342_v9  ;;  %v8678_v8 = vpop.f32.mrf.mxu0 }
 0x5f8   : > { %v5163_v21 = vmax.f32 %v5127_v32, 0.0 }
 0x5f9   : > { %v4986_v24 = vpop.f32.mrf.mxu1  ;;  %v5459_v11 = vshrl.u32 %v5371_v33, 16  ;;  %v5462_v51 = vshll.u32 %v5371_v33, 16  ;;  %v8681_v33 = vpop.f32.mrf.mxu2 }
 0x5fa   : > { %v5253_v41 = vrot.slane %v5163_v21, 5  ;;  %v5048_v52 = vadd.f32 %v4986_v24, %v4800_v62 }
 0x5fb   : > { %v5461_v53 = vrot.slane %v5459_v11, 1  ;;  %v5464_v34 = vrot.slane %v5462_v51, 2 }
 0x5fc   : > { %v5254_v44 = vsel %vm5217_vm9, %v5251_v42, %v5253_v41  ;;  %v5088_v22 = vmul.f32 %v8477_v50, %v5048_v52  ;;  %v8674_v18 = vpop.f32.mrf.mxu3  ;;  %v4554_v42 = vadd.f32 %v8631_v10, %v4306_v25 }
 0x5fd   : > { %v5465_v48 = vor.u32 %v5464_v34, %v5461_v53 }
 0x5fe   : > { %v5128_v17 = vadd.f32 %v8485_v40, %v5088_v22  ;;  %v4802_v58 = vadd.f32 %v8634_v23, %v4554_v42  ;;  %v4555_v23 = vadd.f32 %v8644_v2, %v8377_v27  ;;  %v6219_v27 = vunpack.c.l.bf16 %v6330_v39 }
 0x5ff   : > { %v5466_v49 = vsel %vm1326_vm5, %v5456_v38, %v5465_v48  ;;  %v5344_v38 = vadd.f32 %v6215_v59, %v5254_v44  ;;  %v8697_v44 = vld [vmem:[%s8930_s9] ss:$0 sm:$0xff]  ;;  %v4753_v22 = vpop.f32.mrf.mxu0  ;;  %v6220_v2 = vunpack.c.h.bf16 %v6330_v39 }
 0x600   : > { %v5164_v47 = vmax.f32 %v5128_v17, 0.0  ;;  %6163 = vmatmul.msk.bf16.gmra.mxu2 %vm361_vm1, %v5466_v49  ;;  %v4803_v53 = vadd.f32 %v8647_v35, %v4555_v23 }
 0x601   : > { %v4989_v14 = vpop.f32.mrf.mxu1 }
 0x602   : > { %v5255_v28 = vrot.slane %v5164_v47, 5  ;;  %v5049_v45 = vadd.f32 %v4989_v14, %v4801_v57 }
 0x604   : > { %v5256_v55 = vsel %vm5217_vm9, %v5253_v41, %v5255_v28  ;;  %v5089_v54 = vmul.f32 %v8477_v50, %v5049_v45  ;;  %v8688_v41 = vpop.f32.mrf.mxu3 }
 0x605   : > { %v5345_v19 = vadd.f32 %v6216_v20, %v5256_v55 }
 0x606   : > { %v5129_v15 = vadd.f32 %v8485_v40, %v5089_v54 }
 0x607   : > { %v5372_v30 = vpack.c.bf16 %v5345_v19, %v5344_v38 }
 0x608   : > { %v5165_v9 = vmax.f32 %v5129_v15, 0.0 }
 0x609   : > { %v4991_v12 = vpop.f32.mrf.mxu1  ;;  %v5468_v37 = vshrl.u32 %v5372_v30, 16  ;;  %v5471_v13 = vshll.u32 %v5372_v30, 16  ;;  %v4756_v30 = vpop.f32.mrf.mxu0 }
 0x60a   : > { %v5257_v56 = vrot.slane %v5165_v9, 5  ;;  %v5050_v32 = vadd.f32 %v4991_v12, %v4802_v58 }
 0x60b   : > { %v5470_v62 = vrot.slane %v5468_v37, 1  ;;  %v5473_v21 = vrot.slane %v5471_v13, 2 }
 0x60c   : > { %v5258_v10 = vsel %vm5217_vm9, %v5255_v28, %v5257_v56  ;;  %v5090_v24 = vmul.f32 %v8477_v50, %v5050_v32  ;;  %v4508_v38 = vpop.f32.mrf.mxu3 }
 0x60d   : > { %v5474_v11 = vor.u32 %v5473_v21, %v5470_v62  ;;  %v5346_v20 = vadd.f32 %v6219_v27, %v5258_v10 }
 0x60e   : > { %v5130_v51 = vadd.f32 %v8485_v40, %v5090_v24  ;;  %v6331_v24 = vld [vmem:[%s6435_s26 + $0x60] sm:$0xff]  }
 0x60f   : > { %v5475_v52 = vsel %vm1326_vm5, %v5465_v48, %v5474_v11  ;;  %v4308_v48 = vadd.f32 %v8388_v26, %v8384_v5  ;;  %v6223_v23 = vunpack.c.l.bf16 %v6331_v24 }
 0x610   : > { %v5166_v34 = vmax.f32 %v5130_v51, 0.0  ;;  %6164 = vmatmul.msk.bf16.gmra.mxu2 %vm361_vm1, %v5475_v52  ;;  %v6224_v51 = vunpack.c.h.bf16 %v6331_v24 }
 0x611   : > { %v4994_v17 = vpop.f32.mrf.mxu1  ;;  %v4556_v28 = vadd.f32 %v8657_v36, %v4308_v48 }
 0x612   : > { %v5259_v49 = vrot.slane %v5166_v34, 5  ;;  %v5051_v57 = vadd.f32 %v4994_v17, %v4803_v53 }
 0x613   : > { %v5623_v35 = vpop.f32.mrf.mxu2  ;;  %v4804_v55 = vadd.f32 %v8661_v1, %v4556_v28 }
 0x614   : > { %v5260_v47 = vsel %vm5217_vm9, %v5257_v56, %v5259_v49  ;;  %v5091_v61 = vmul.f32 %v8477_v50, %v5051_v57  ;;  %v5624_v59 = vadd.f32 %v8697_v44, %v5623_v35  ;;  %v4557_v56 = vadd.f32 %v8674_v18, %v8395_v63  ;;  %v4510_v39 = vpop.f32.mrf.mxu3 }
 0x615   : > { %v5347_v14 = vadd.f32 %v6220_v2, %v5260_v47  ;;  %v4310_v18 = vadd.f32 %v8406_v6, %v8402_v16  ;;  %v4758_v2 = vpop.f32.mrf.mxu0 }
 0x616   : > { %v5131_v45 = vadd.f32 %v8485_v40, %v5091_v61  ;;  %5714 = vst.msk [vmem:[%s8703_s14] sm:$0xff] %vm5713_vm10, %v5624_v59  ;;  %v4805_v21 = vadd.f32 %v8678_v8, %v4557_v56 }
 0x617   : > { %v5373_v25 = vpack.c.bf16 %v5347_v14, %v5346_v20  ;;  %v4558_v57 = vadd.f32 %v8688_v41, %v4310_v18 }
 0x618   : > { %v5167_v54 = vmax.f32 %v5131_v45, 0.0 }
 0x619   : > { %v4996_v5 = vpop.f32.mrf.mxu1  ;;  %v5477_v26 = vshrl.u32 %v5373_v25, 16  ;;  %v5480_v19 = vshll.u32 %v5373_v25, 16  ;;  %v4806_v47 = vadd.f32 %v4753_v22, %v4558_v57  ;;  %v4559_v22 = vadd.f32 %v4508_v38, %v8413_v43 }
 0x61a   : > { %v5261_v42 = vrot.slane %v5167_v54, 5  ;;  %v5052_v15 = vadd.f32 %v4996_v5, %v4804_v55  ;;  %v4312_v43 = vadd.f32 %v8423_v46, %v8420_v4 }
 0x61b   : > { %v5625_v58 = vpop.f32.mrf.mxu2  ;;  %v5479_v9 = vrot.slane %v5477_v26, 1  ;;  %v5482_v36 = vrot.slane %v5480_v19, 2 }
 0x61c   : > { %v5262_v12 = vsel %vm5217_vm9, %v5259_v49, %v5261_v42  ;;  %v5092_v37 = vmul.f32 %v8477_v50, %v5052_v15  ;;  %v5626_v13 = vadd.f32 %v8697_v44, %v5625_v58  ;;  %v4513_v5 = vpop.f32.mrf.mxu3  ;;  %v4807_v58 = vadd.f32 %v4756_v30, %v4559_v22 }
 0x61d   : > { %v5483_v1 = vor.u32 %v5482_v36, %v5479_v9  ;;  %v5348_v17 = vadd.f32 %v6223_v23, %v5262_v12  ;;  %v6332_v36 = vld [vmem:[%s6435_s26 + $0x68] sm:$0xff]   ;;  %v4560_v24 = vadd.f32 %v4510_v39, %v4312_v43 }
 0x61e   : > { %v5132_v32 = vadd.f32 %v8485_v40, %v5092_v37  ;;  %5715 = vst.msk [vmem:[%s8703_s14 + $0x8] sm:$0xff] %vm5713_vm10, %v5626_v13  ;;  %v6227_v12 = vunpack.c.l.bf16 %v6332_v36  ;;  %v6228_v37 = vunpack.c.h.bf16 %v6332_v36 }
 0x61f   : > { %v5484_v62 = vsel %vm1326_vm5, %v5474_v11, %v5483_v1 }
 0x620   : > { %v5168_v10 = vmax.f32 %v5132_v32, 0.0  ;;  %6165 = vmatmul.msk.bf16.gmra.mxu2 %vm361_vm1, %v5484_v62 }
 0x621   : > { %v4999_v52 = vpop.f32.mrf.mxu1 }
 0x622   : > { %v5263_v53 = vrot.slane %v5168_v10, 5  ;;  %v5053_v34 = vadd.f32 %v4999_v52, %v4805_v21 }
 0x623   : > { %v5628_v63 = vpop.f32.mrf.mxu2 }
 0x624   : > { %v5264_v27 = vsel %vm5217_vm9, %v5261_v42, %v5263_v53  ;;  %v5093_v11 = vmul.f32 %v8477_v50, %v5053_v34  ;;  %v5629_v8 = vadd.f32 %v8697_v44, %v5628_v63  ;;  %v4761_v42 = vpop.f32.mrf.mxu0 }
 0x625   : > { %v5349_v49 = vadd.f32 %v6224_v51, %v5264_v27  ;;  %v4515_v51 = vpop.f32.mrf.mxu3 }
 0x626   : > { %v5133_v35 = vadd.f32 %v8485_v40, %v5093_v11  ;;  %5716 = vst.msk [vmem:[%s8703_s14 + $0x10] sm:$0xff] %vm5713_vm10, %v5629_v8 }
 0x627   : > { %v5374_v48 = vpack.c.bf16 %v5349_v49, %v5348_v17 }
 0x628   : > { %v5169_v61 = vmax.f32 %v5133_v35, 0.0 }
 0x629   : > { %v5001_v16 = vpop.f32.mrf.mxu1  ;;  %v5486_v6 = vshrl.u32 %v5374_v48, 16  ;;  %v5489_v59 = vshll.u32 %v5374_v48, 16 }
 0x62a   : > { %v5265_v20 = vrot.slane %v5169_v61, 5  ;;  %v5054_v14 = vadd.f32 %v5001_v16, %v4806_v47 }
 0x62b   : > { %v5630_v28 = vpop.f32.mrf.mxu2  ;;  %v5488_v45 = vrot.slane %v5486_v6, 1  ;;  %v5491_v25 = vrot.slane %v5489_v59, 2 }
 0x62c   : > { %v5266_v55 = vsel %vm5217_vm9, %v5263_v53, %v5265_v20  ;;  %v5094_v41 = vmul.f32 %v8477_v50, %v5054_v14  ;;  %v5631_v54 = vadd.f32 %v8697_v44, %v5630_v28  ;;  %v4808_v53 = vadd.f32 %v4758_v2, %v4560_v24  ;;  %v4763_v63 = vpop.f32.mrf.mxu0 }
 0x62d   : > { %v5492_v26 = vor.u32 %v5491_v25, %v5488_v45  ;;  %v4561_v2 = vadd.f32 %v4513_v5, %v8429_v0  ;;  %v4518_v59 = vpop.f32.mrf.mxu3 }
 0x62e   : > { %v5134_v19 = vadd.f32 %v8485_v40, %v5094_v41  ;;  %5717 = vst.msk [vmem:[%s8703_s14 + $0x18] sm:$0xff] %vm5713_vm10, %v5631_v54  ;;  %v4314_v54 = vadd.f32 %v8439_v60, %v8436_v3  ;;  %v4563_v24 = vadd.f32 %v4518_v59, %v8445_v31 }
 0x62f   : > { %v5493_v15 = vsel %vm1326_vm5, %v5483_v1, %v5492_v26  ;;  %v5350_v1 = vadd.f32 %v6227_v12, %v5266_v55  ;;  %v4809_v16 = vadd.f32 %v4761_v42, %v4561_v2 }
 0x630   : > { %v5170_v9 = vmax.f32 %v5134_v19, 0.0  ;;  %6166 = vmatmul.msk.bf16.gmra.mxu2 %vm361_vm1, %v5493_v15  ;;  %v4562_v15 = vadd.f32 %v4515_v51, %v4314_v54 }
 0x631   : > { %v5004_v13 = vpop.f32.mrf.mxu1 }
 0x632   : > { %v5267_v56 = vrot.slane %v5170_v9, 5  ;;  %v5055_v32 = vadd.f32 %v5004_v13, %v4807_v58  ;;  %v4810_v36 = vadd.f32 %v4763_v63, %v4562_v15  ;;  %v6336_v63 = vld [vmem:[%s6435_s26 + $0x78] sm:$0xff]  }
 0x633   : > { %v5633_v62 = vpop.f32.mrf.mxu2 }
 0x634   : > { %v5268_v38 = vsel %vm5217_vm9, %v5265_v20, %v5267_v56  ;;  %v5095_v21 = vmul.f32 %v8477_v50, %v5055_v32  ;;  %v5634_v30 = vadd.f32 %v8697_v44, %v5633_v62  ;;  %v6333_v20 = vld [vmem:[%s6435_s26 + $0x70] sm:$0xff]   ;;  %v4766_v41 = vpop.f32.mrf.mxu0 }
 0x635   : > { %v5351_v10 = vadd.f32 %v6228_v37, %v5268_v38  ;;  %v6231_v14 = vunpack.c.l.bf16 %v6333_v20  ;;  %v6232_v28 = vunpack.c.h.bf16 %v6333_v20  ;;  %v4520_v32 = vpop.f32.mrf.mxu3 }
 0x636   : > { %v5135_v23 = vadd.f32 %v8485_v40, %v5095_v21  ;;  %5718 = vst.msk [vmem:[%s8703_s14 + $0x20] sm:$0xff] %vm5713_vm10, %v5634_v30 }
 0x637   : > { %v5375_v52 = vpack.c.bf16 %v5351_v10, %v5350_v1 }
 0x638   : > { %v5171_v34 = vmax.f32 %v5135_v23, 0.0  ;;  %v8784_v23 = vld [vmem:[%s8928_s7] ss:$0 sm:$0xff] }
 0x639   : > { %v5006_v4 = vpop.f32.mrf.mxu1  ;;  %v5495_v46 = vshrl.u32 %v5375_v52, 16  ;;  %v5498_v18 = vshll.u32 %v5375_v52, 16 }
 0x63a   : > { %v5269_v27 = vrot.slane %v5171_v34, 5  ;;  %v5056_v11 = vadd.f32 %v5006_v4, %v4808_v53  ;;  %v4811_v53 = vadd.f32 %v4766_v41, %v4563_v24  ;;  %v6235_v4 = vunpack.c.l.bf16 %v6336_v63 }
 0x63b   : > { %v5635_v8 = vpop.f32.mrf.mxu2  ;;  %v5497_v17 = vrot.slane %v5495_v46, 1  ;;  %v5500_v49 = vrot.slane %v5498_v18, 2  ;;  %v6236_v46 = vunpack.c.h.bf16 %v6336_v63 }
 0x63c   : > { %v5270_v39 = vsel %vm5217_vm9, %v5267_v56, %v5269_v27  ;;  %v5096_v57 = vmul.f32 %v8477_v50, %v5056_v11  ;;  %v5636_v35 = vadd.f32 %v8697_v44, %v5635_v8  ;;  %v4768_v1 = vpop.f32.mrf.mxu0  ;;  %v4316_v8 = vadd.f32 %v8453_v7, %v8450_v29 }
 0x63d   : > { %v5501_v48 = vor.u32 %v5500_v49, %v5497_v17  ;;  %v5352_v19 = vadd.f32 %v6231_v14, %v5270_v39 }
 0x63e   : > { %v5136_v47 = vadd.f32 %v8485_v40, %v5096_v57  ;;  %5719 = vst.msk [vmem:[%s8703_s14 + $0x28] sm:$0xff] %vm5713_vm10, %v5636_v35  ;;  %v4523_v57 = vpop.f32.mrf.mxu3  ;;  %v4564_v2 = vadd.f32 %v4520_v32, %v4316_v8 }
 0x63f   : > { %v5502_v61 = vsel %vm1326_vm5, %v5492_v26, %v5501_v48 }
 0x640   : > { %v5172_v6 = vmax.f32 %v5136_v47, 0.0  ;;  %6167 = vmatmul.msk.bf16.gmra.mxu2 %vm361_vm1, %v5502_v61 }
 0x641   : > { %v5009_v45 = vpop.f32.mrf.mxu1 }
 0x642   : > { %v5271_v25 = vrot.slane %v5172_v6, 5  ;;  %v5057_v55 = vadd.f32 %v5009_v45, %v4809_v16  ;;  %v4812_v6 = vadd.f32 %v4768_v1, %v4564_v2  ;;  %v9137_v2 = vld [vmem:[#allocation16_spill] sm:$0xff] }
 0x643   : > { %v5638_v0 = vpop.f32.mrf.mxu2 }
 0x644   : > { %v5272_v5 = vsel %vm5217_vm9, %v5269_v27, %v5271_v25  ;;  %v5097_v26 = vmul.f32 %v8477_v50, %v5057_v55  ;;  %v5639_v22 = vadd.f32 %v8697_v44, %v5638_v0  ;;  %v4771_v61 = vpop.f32.mrf.mxu0 }
 0x645   : > { %v5353_v42 = vadd.f32 %v6232_v28, %v5272_v5 }
 0x646   : > { %v5137_v58 = vadd.f32 %v8485_v40, %v5097_v26  ;;  %5720 = vst.msk [vmem:[%s8703_s14 + $0x30] sm:$0xff] %vm5713_vm10, %v5639_v22  ;;  %v8776_v40 = vld [vmem:[%s8927_s6] ss:$0 sm:$0xff]  ;;  %v9134_v26 = vld [vmem:[#allocation13_spill] sm:$0xff] }
 0x647   : > { %v5376_v9 = vpack.c.bf16 %v5353_v42, %v5352_v19  ;;  %v4565_v22 = vadd.f32 %v4523_v57, %v9134_v26  ;;  %v4525_v42 = vpop.f32.mrf.mxu3 }
 0x648   : > { %v5173_v12 = vmax.f32 %v5137_v58, 0.0 }
 0x649   : > { %v5011_v37 = vpop.f32.mrf.mxu1  ;;  %v5504_v13 = vshrl.u32 %v5376_v9, 16  ;;  %v5507_v56 = vshll.u32 %v5376_v9, 16  ;;  %v4813_v58 = vadd.f32 %v4771_v61, %v4565_v22 }
 0x64a   : > { %v5273_v3 = vrot.slane %v5173_v12, 5  ;;  %v5058_v60 = vadd.f32 %v5011_v37, %v4810_v36  ;;  %v6337_v12 = vld [vmem:[%s6435_s26 + $0x80] sm:$0xff]  }
 0x64b   : > { %v5640_v50 = vpop.f32.mrf.mxu2  ;;  %v5506_v62 = vrot.slane %v5504_v13, 1  ;;  %v5509_v43 = vrot.slane %v5507_v56, 2  ;;  %v6239_v37 = vunpack.c.l.bf16 %v6337_v12  ;;  %v6240_v13 = vunpack.c.h.bf16 %v6337_v12 }
 0x64c   : > { %v5274_v38 = vsel %vm5217_vm9, %v5271_v25, %v5273_v3  ;;  %v5098_v21 = vmul.f32 %v8776_v40, %v5058_v60  ;;  %v5641_v30 = vadd.f32 %v8697_v44, %v5640_v50  ;;  %v4773_v36 = vpop.f32.mrf.mxu0  ;;  %v9135_v50 = vld [vmem:[#allocation38_spill] sm:$0xff] }
 0x64d   : > { %v5510_v10 = vor.u32 %v5509_v43, %v5506_v62  ;;  %v5354_v35 = vadd.f32 %v6235_v4, %v5274_v38  ;;  %v9136_v62 = vld [vmem:[#allocation39_spill] sm:$0xff] }
 0x64e   : > { %v5138_v51 = vadd.f32 %v8784_v23, %v5098_v21  ;;  %5721 = vst.msk [vmem:[%s8703_s14 + $0x38] sm:$0xff] %vm5713_vm10, %v5641_v30  ;;  %v4318_v43 = vadd.f32 %v9136_v62, %v9135_v50 }
 0x64f   : > { %v5511_v52 = vsel %vm1326_vm5, %v5501_v48, %v5510_v10  ;;  %v4528_v63 = vpop.f32.mrf.mxu3 }
 0x650   : > { %v5174_v34 = vmax.f32 %v5138_v51, 0.0  ;;  %6168 = vmatmul.msk.bf16.gmra.mxu2 %vm361_vm1, %v5511_v52  ;;  %v4566_v24 = vadd.f32 %v4525_v42, %v4318_v43 }
 0x651   : > { %v5014_v31 = vpop.f32.mrf.mxu1 }
 0x652   : > { %v5275_v18 = vrot.slane %v5174_v34, 5  ;;  %v5059_v27 = vadd.f32 %v5014_v31, %v4811_v53  ;;  %v4814_v53 = vadd.f32 %v4773_v36, %v4566_v24  ;;  %v6339_v24 = vld [vmem:[%s6435_s26 + $0x90] sm:$0xff]  }
 0x653   : > { %v5643_v11 = vpop.f32.mrf.mxu2 }
 0x654   : > { %v5276_v17 = vsel %vm5217_vm9, %v5273_v3, %v5275_v18  ;;  %v5099_v49 = vmul.f32 %v8776_v40, %v5059_v27  ;;  %v5644_v39 = vadd.f32 %v8697_v44, %v5643_v11  ;;  %v4776_v11 = vpop.f32.mrf.mxu0 }
 0x655   : > { %v5355_v48 = vadd.f32 %v6236_v46, %v5276_v17 }
 0x656   : > { %v5139_v47 = vadd.f32 %v8784_v23, %v5099_v49  ;;  %5722 = vst.msk [vmem:[%s8703_s14 + $0x40] sm:$0xff] %vm5713_vm10, %v5644_v39 }
 0x657   : > { %v5377_v16 = vpack.c.bf16 %v5355_v48, %v5354_v35 }
 0x658   : > { %v5175_v59 = vmax.f32 %v5139_v47, 0.0  ;;  %v4567_v47 = vadd.f32 %v4528_v63, %v9137_v2 }
 0x659   : > { %v5016_v29 = vpop.f32.mrf.mxu1  ;;  %v5513_v7 = vshrl.u32 %v5377_v16, 16  ;;  %v5516_v20 = vshll.u32 %v5377_v16, 16 }
 0x65a   : > { %v5277_v14 = vrot.slane %v5175_v59, 5  ;;  %v5060_v28 = vadd.f32 %v5016_v29, %v4812_v6  ;;  %v4815_v6 = vadd.f32 %v4776_v11, %v4567_v47  ;;  %v6338_v29 = vld [vmem:[%s6435_s26 + $0x88] sm:$0xff]  }
 0x65b   : > { %v5645_v45 = vpop.f32.mrf.mxu2  ;;  %v5515_v25 = vrot.slane %v5513_v7, 1  ;;  %v5518_v55 = vrot.slane %v5516_v20, 2  ;;  %v6243_v7 = vunpack.c.l.bf16 %v6338_v29  ;;  %v6244_v20 = vunpack.c.h.bf16 %v6338_v29 }
 0x65c   : > { %v5278_v41 = vsel %vm5217_vm9, %v5275_v18, %v5277_v14  ;;  %v5100_v0 = vmul.f32 %v8776_v40, %v5060_v28  ;;  %v5646_v54 = vadd.f32 %v8697_v44, %v5645_v45  ;;  %v4778_v22 = vpop.f32.mrf.mxu0 }
 0x65d   : > { %v5519_v5 = vor.u32 %v5518_v55, %v5515_v25  ;;  %v5356_v1 = vadd.f32 %v6239_v37, %v5278_v41  ;;  %v4530_v25 = vpop.f32.mrf.mxu3  ;;  %v9138_v41 = vld [vmem:[#allocation14_spill] sm:$0xff] }
 0x65e   : > { %v5140_v19 = vadd.f32 %v8784_v23, %v5100_v0  ;;  %5723 = vst.msk [vmem:[%s8703_s14 + $0x48] sm:$0xff] %vm5713_vm10, %v5646_v54  ;;  %v4320_v0 = vadd.f32 %v8681_v33, %v9138_v41 }
 0x65f   : > { %v5520_v15 = vsel %vm1326_vm5, %v5510_v10, %v5519_v5 }
 0x660   : > { %v5176_v9 = vmax.f32 %v5140_v19, 0.0  ;;  %6169 = vmatmul.msk.bf16.gmra.mxu2 %vm361_vm1, %v5520_v15  ;;  %v4568_v15 = vadd.f32 %v4530_v25, %v4320_v0 }
 0x661   : > { %v5019_v56 = vpop.f32.mrf.mxu1 }
 0x662   : > { %v5279_v3 = vrot.slane %v5176_v9, 5  ;;  %v5061_v60 = vadd.f32 %v5019_v56, %v4813_v58  ;;  %v4816_v36 = vadd.f32 %v4778_v22, %v4568_v15 }
 0x663   : > { %v5648_v32 = vpop.f32.mrf.mxu2 }
 0x664   : > { %v5280_v38 = vsel %vm5217_vm9, %v5277_v14, %v5279_v3  ;;  %v5101_v21 = vmul.f32 %v8776_v40, %v5061_v60  ;;  %v5649_v30 = vadd.f32 %v8697_v44, %v5648_v32 }
 0x665   : > { %v5357_v10 = vadd.f32 %v6240_v13, %v5280_v38 }
 0x666   : > { %v5141_v51 = vadd.f32 %v8784_v23, %v5101_v21  ;;  %5724 = vst.msk [vmem:[%s8703_s14 + $0x50] sm:$0xff] %vm5713_vm10, %v5649_v30 }
 0x667   : > { %v5378_v52 = vpack.c.bf16 %v5357_v10, %v5356_v1 }
 0x668   : > { %v5177_v34 = vmax.f32 %v5141_v51, 0.0  ;;  %v6248_v51 = vunpack.c.h.bf16 %v6339_v24 }
 0x669   : > { %v5021_v4 = vpop.f32.mrf.mxu1  ;;  %v5522_v46 = vshrl.u32 %v5378_v52, 16  ;;  %v5525_v31 = vshll.u32 %v5378_v52, 16 }
 0x66a   : > { %v5281_v18 = vrot.slane %v5177_v34, 5  ;;  %v5062_v27 = vadd.f32 %v5021_v4, %v4814_v53 }
 0x66b   : > { %v5650_v8 = vpop.f32.mrf.mxu2  ;;  %v5524_v17 = vrot.slane %v5522_v46, 1  ;;  %v5527_v49 = vrot.slane %v5525_v31, 2  ;;  %v9140_v46 = vld [vmem:[#allocation11_spill] sm:$0xff] }
 0x66c   : > { %v5282_v39 = vsel %vm5217_vm9, %v5279_v3, %v5281_v18  ;;  %v5102_v57 = vmul.f32 %v8776_v40, %v5062_v27  ;;  %v5651_v35 = vadd.f32 %v8697_v44, %v5650_v8 }
 0x66d   : > { %v5528_v48 = vor.u32 %v5527_v49, %v5524_v17  ;;  %v5358_v19 = vadd.f32 %v6243_v7, %v5282_v39 }
 0x66e   : > { %v5142_v61 = vadd.f32 %v8784_v23, %v5102_v57  ;;  %5725 = vst.msk [vmem:[%s8703_s14 + $0x58] sm:$0xff] %vm5713_vm10, %v5651_v35 }
 0x66f   : > { %v5529_v16 = vsel %vm1326_vm5, %v5519_v5, %v5528_v48 }
 0x670   : > { %v5178_v59 = vmax.f32 %v5142_v61, 0.0  ;;  %6170 = vmatmul.msk.bf16.gmra.mxu2 %vm361_vm1, %v5529_v16 }
 0x671   : > { %v5024_v14 = vpop.f32.mrf.mxu1 }
 0x672   : > { %v5283_v28 = vrot.slane %v5178_v59, 5  ;;  %v5063_v45 = vadd.f32 %v5024_v14, %v4815_v6 }
 0x673   : > { %v5653_v55 = vpop.f32.mrf.mxu2 }
 0x674   : > { %v5284_v54 = vsel %vm5217_vm9, %v5281_v18, %v5283_v28  ;;  %v5103_v5 = vmul.f32 %v8776_v40, %v5063_v45  ;;  %v5654_v26 = vadd.f32 %v8697_v44, %v5653_v55 }
 0x675   : > { %v5359_v42 = vadd.f32 %v6244_v20, %v5284_v54 }
 0x676   : > { %v5143_v58 = vadd.f32 %v8784_v23, %v5103_v5  ;;  %5726 = vst.msk [vmem:[%s8703_s14 + $0x60] sm:$0xff] %vm5713_vm10, %v5654_v26 }
 0x677   : > { %v5379_v9 = vpack.c.bf16 %v5359_v42, %v5358_v19 }
 0x678   : > { %v5179_v12 = vmax.f32 %v5143_v58, 0.0 }
 0x679   : > { %v5026_v37 = vpop.f32.mrf.mxu1  ;;  %v5531_v33 = vshrl.u32 %v5379_v9, 16  ;;  %v5534_v13 = vshll.u32 %v5379_v9, 16 }
 0x67a   : > { %v5285_v56 = vrot.slane %v5179_v12, 5  ;;  %v5064_v3 = vadd.f32 %v5026_v37, %v4816_v36 }
 0x67b   : > { %v5655_v60 = vpop.f32.mrf.mxu2  ;;  %v5533_v32 = vrot.slane %v5531_v33, 1  ;;  %v5536_v50 = vrot.slane %v5534_v13, 2 }
 0x67c   : > { %v5286_v62 = vsel %vm5217_vm9, %v5283_v28, %v5285_v56  ;;  %v5104_v43 = vmul.f32 %v8776_v40, %v5064_v3  ;;  %v5656_v38 = vadd.f32 %v8697_v44, %v5655_v60  ;;  %v9139_v40 = vld [vmem:[#allocation32_spill] sm:$0xff] }
 0x67d   : > { %v5537_v21 = vor.u32 %v5536_v50, %v5533_v32  ;;  %v5360_v31 = vadd.f32 %v9140_v46, %v5286_v62 }
 0x67e   : > { %v5144_v30 = vadd.f32 %v8784_v23, %v5104_v43  ;;  %5727 = vst.msk [vmem:[%s8703_s14 + $0x68] sm:$0xff] %vm5713_vm10, %v5656_v38 }
 0x67f   : > { %v5538_v1 = vsel %vm1326_vm5, %v5528_v48, %v5537_v21 }
 0x680   : > { %v5180_v10 = vmax.f32 %v5144_v30, 0.0  ;;  %6171 = vmatmul.msk.bf16.gmra.mxu2 %vm361_vm1, %v5538_v1 }
 0x682   : > { %v5287_v52 = vrot.slane %v5180_v10, 5 }
 0x683   : > { %v5658_v53 = vpop.f32.mrf.mxu2 }
 0x684   : > { %v5288_v34 = vsel %vm5217_vm9, %v5285_v56, %v5287_v52  ;;  %v5362_v63 = vadd.f32 %v9139_v40, %v5287_v52  ;;  %v5659_v4 = vadd.f32 %v8697_v44, %v5658_v53 }
 0x685   : > { %v5361_v23 = vadd.f32 %v6248_v51, %v5288_v34 }
 0x686   : > { %v5381_v18 = vpack.c.bf16 %v5362_v63, %v5362_v63  ;;  %5728 = vst.msk [vmem:[%s8703_s14 + $0x70] sm:$0xff] %vm5713_vm10, %v5659_v4 }
 0x687   : > { %v5380_v27 = vpack.c.bf16 %v5361_v23, %v5360_v31 }
 0x688   : > { %v5549_v11 = vshrl.u32 %v5381_v18, 16  ;;  %v5552_v8 = vshll.u32 %v5381_v18, 16 }
 0x689   : > { %v5540_v17 = vshrl.u32 %v5380_v27, 16  ;;  %v5543_v49 = vshll.u32 %v5380_v27, 16 }
 0x68a   : > { %v5551_v39 = vrot.slane %v5549_v11, 1  ;;  %v5554_v57 = vrot.slane %v5552_v8, 2 }
 0x68b   : > { %v5660_v35 = vpop.f32.mrf.mxu2  ;;  %v5542_v48 = vrot.slane %v5540_v17, 1  ;;  %v5545_v2 = vrot.slane %v5543_v49, 2 }
 0x68c   : > { %v5661_v47 = vadd.f32 %v8697_v44, %v5660_v35  ;;  %v5555_v61 = vor.u32 %v5554_v57, %v5551_v39 }
 0x68d   : > { %v5546_v16 = vor.u32 %v5545_v2, %v5542_v48 }
 0x68e   : > { %5729 = vst.msk [vmem:[%s8703_s14 + $0x78] sm:$0xff] %vm5713_vm10, %v5661_v47 }
 0x68f   : > { %v5547_v6 = vsel %vm1326_vm5, %v5537_v21, %v5546_v16  ;;  %v5556_v59 = vsel %vm1326_vm5, %v5546_v16, %v5555_v61 }
 0x690   : > { %6172 = vmatmul.msk.bf16.gmra.mxu2 %vm361_vm1, %v5547_v6 }
 0x693   : > { %v5663_v29 = vpop.f32.mrf.mxu2 }
 0x694   : > { %v5664_v7 = vadd.f32 %v8697_v44, %v5663_v29 }
 0x696   : > { %5730 = vst.msk [vmem:[%s8703_s14 + $0x80] sm:$0xff] %vm5713_vm10, %v5664_v7 }
 0x69b   : > { %v5665_v20 = vpop.f32.mrf.mxu2 }
 0x69c   : > { %v5666_v14 = vadd.f32 %v8697_v44, %v5665_v20 }
 0x69e   : > { %5731 = vst.msk [vmem:[%s8703_s14 + $0x88] sm:$0xff] %vm5713_vm10, %v5666_v14 }
 0x6a0   : > { %6173 = vmatmul.msk.bf16.gmra.mxu2 %vm361_vm1, %v5556_v59 }
 0x6a3   : > { %v5668_v28 = vpop.f32.mrf.mxu2 }
 0x6a4   : > { %v5669_v45 = vadd.f32 %v8697_v44, %v5668_v28 }
 0x6a6   : > { %5732 = vst.msk [vmem:[%s8703_s14 + $0x90] sm:$0xff] %vm5713_vm10, %v5669_v45 }
 0x6ab   : > { %v5670_v25 = vpop.f32.mrf.mxu2 }
 0x6ac   : > { %v5671_v55 = vadd.f32 %v8697_v44, %v5670_v25 }
 0x6ae   : > { %5733 = vst.msk [vmem:[%s8703_s14 + $0x98] sm:$0xff] %vm5713_vm10, %v5671_v55 }
 0x6b3   : > { %v5673_v41 = vpop.f32.mrf.mxu2 }
 0x6b4   : > { %v5674_v0 = vadd.f32 %v8697_v44, %v5673_v41 }
 0x6b6   : > { %5734 = vst.msk [vmem:[%s8703_s14 + $0xa0] sm:$0xff] %vm5713_vm10, %v5674_v0 }
 0x6bb   : > { %v5675_v54 = vpop.f32.mrf.mxu2 }
 0x6bc   : > { %v5676_v5 = vadd.f32 %v8697_v44, %v5675_v54 }
 0x6be   : > { %5735 = vst.msk [vmem:[%s8703_s14 + $0xa8] sm:$0xff] %vm5713_vm10, %v5676_v5 }
 0x6c3   : > { %v5678_v26 = vpop.f32.mrf.mxu2 }
 0x6c4   : > { %v5679_v22 = vadd.f32 %v8697_v44, %v5678_v26 }
 0x6c6   : > { %5736 = vst.msk [vmem:[%s8703_s14 + $0xb0] sm:$0xff] %vm5713_vm10, %v5679_v22 }
 0x6cb   : > { %v5680_v19 = vpop.f32.mrf.mxu2 }
 0x6cc   : > { %v5681_v42 = vadd.f32 %v8697_v44, %v5680_v19 }
 0x6ce   : > { %5737 = vst.msk [vmem:[%s8703_s14 + $0xb8] sm:$0xff] %vm5713_vm10, %v5681_v42 }
 0x6d3   : > { %v5683_v15 = vpop.f32.mrf.mxu2 }
 0x6d4   : > { %v5684_v58 = vadd.f32 %v8697_v44, %v5683_v15 }
 0x6d6   : > { %5738 = vst.msk [vmem:[%s8703_s14 + $0xc0] sm:$0xff] %vm5713_vm10, %v5684_v58 }
 0x6db   : > { %v5685_v9 = vpop.f32.mrf.mxu2 }
 0x6dc   : > { %v5686_v36 = vadd.f32 %v8697_v44, %v5685_v9 }
 0x6de   : > { %5739 = vst.msk [vmem:[%s8703_s14 + $0xc8] sm:$0xff] %vm5713_vm10, %v5686_v36 }
 0x6e3   : > { %v5688_v12 = vpop.f32.mrf.mxu2 }
 0x6e4   : > { %v5689_v37 = vadd.f32 %v8697_v44, %v5688_v12 }
 0x6e6   : > { %5740 = vst.msk [vmem:[%s8703_s14 + $0xd0] sm:$0xff] %vm5713_vm10, %v5689_v37 }
 0x6eb   : > { %v5690_v33 = vpop.f32.mrf.mxu2 }
 0x6ec   : > { %v5691_v13 = vadd.f32 %v8697_v44, %v5690_v33 }
 0x6ee   : > { %5741 = vst.msk [vmem:[%s8703_s14 + $0xd8] sm:$0xff] %vm5713_vm10, %v5691_v13 }
 0x6f3   : > { %v5693_v56 = vpop.f32.mrf.mxu2 }
 0x6f4   : > { %v5694_v3 = vadd.f32 %v8697_v44, %v5693_v56 }
 0x6f6   : > { %5742 = vst.msk [vmem:[%s8703_s14 + $0xe0] sm:$0xff] %vm5713_vm10, %v5694_v3 }
 0x6fb   : > { %v5695_v60 = vpop.f32.mrf.mxu2 }
 0x6fc   : > { %v5696_v32 = vadd.f32 %v8697_v44, %v5695_v60 }
 0x6fe   : > { %5743 = vst.msk [vmem:[%s8703_s14 + $0xe8] sm:$0xff] %vm5713_vm10, %v5696_v32 }
 0x703   : > { %v5698_v50 = vpop.f32.mrf.mxu2 }
 0x704   : > { %v5699_v62 = vadd.f32 %v8697_v44, %v5698_v50 }
 0x706   : > { %5744 = vst.msk [vmem:[%s8703_s14 + $0xf0] sm:$0xff] %vm5713_vm10, %v5699_v62 }
 0x70b   : > { %v5700_v43 = vpop.f32.mrf.mxu2 }
 0x70c   : > { %v5701_v38 = vadd.f32 %v8697_v44, %v5700_v43 }
 0x70e   : > { %5745 = vst.msk [vmem:[%s8703_s14 + $0xf8] sm:$0xff] %vm5713_vm10, %v5701_v38 }
 0x713   : > { %v5703_v21 = vpop.f32.mrf.mxu2 }
 0x714   : > { %v5704_v30 = vadd.f32 %v8697_v44, %v5703_v21 }
 0x716   : > { %5746 = vst.msk [vmem:[%s8703_s14 + $0x100] sm:$0xff] %vm5713_vm10, %v5704_v30 }
 0x71b   : > { %v5705_v1 = vpop.f32.mrf.mxu2 }
 0x71c   : > { %v5706_v10 = vadd.f32 %v8697_v44, %v5705_v1 }
 0x71e   : > { %5747 = vst.msk [vmem:[%s8703_s14 + $0x108] sm:$0xff] %vm5713_vm10, %v5706_v10 }
 0x723   : > { %v5708_v24 = vpop.f32.mrf.mxu2 }
 0x724   : > { %v5709_v51 = vadd.f32 %v8697_v44, %v5708_v24 }
 0x726   : > { %5748 = vst.msk [vmem:[%s8703_s14 + $0x110] sm:$0xff] %vm5713_vm10, %v5709_v51 }
 0x72b   : > { %v5710_v52 = vpop.f32.mrf.mxu2 }
 0x72c   : > { %v5711_v53 = vadd.f32 %v8697_v44, %v5710_v52 }
 0x72e   : > { %5749 = vst.msk [vmem:[%s8703_s14 + $0x118] sm:$0xff] %vm5713_vm10, %v5711_v53 }
 0x72f PF: > { %s20_s13 = sadd.s32 1, %s6346_s13  }
 0x730   : > { %p17_p4 = scmp.ge.s32.totalorder %s20_s13, 4  }
 0x732   :  { %19 = sbr.rel (!%p17_p4) target bundleno = 1 (0x1), region = 106 }

</bundles_post_ra>
